<compile_context>
chip_gen: v7x
topology: tpu7x:2x2x1
jax: 0.10.0
libtpu: 0.0.40
codegen_flags: <defaults>
</compile_context>

<pallas_src>
import functools
import math

import jax
import jax.numpy as jnp
import numpy as np
from jax import lax
from jax.experimental import pallas as pl
from jax.experimental.pallas import tpu as pltpu


# ----------------------------- small helpers -----------------------------

def _tpu_vmem_capacity_bytes():
    """Physical VMEM per TensorCore (generation-aware); conservative 64 MiB fallback."""
    try:
        info = pltpu.get_tpu_info()
        for attr in ("vmem_capacity_bytes", "vmem_bytes", "vmem_size_bytes"):
            v = getattr(info, attr, None)
            if v:
                return int(v)
    except Exception:
        pass
    return 64 * 1024 * 1024


def _vmem_limit_bytes():
    # Leave headroom for compiler-internal scratch: ~50 MiB on v7x (64 MiB physical),
    # ~100 MiB on v5e / v6e (128 MiB physical).
    cap = _tpu_vmem_capacity_bytes()
    return int(max(32 * 1024 * 1024, min(cap - (14 << 20), 100 * 1024 * 1024)))


def _pick_tile(total, target):
    t = max(8, min(total, target))
    while t > 8 and total % t != 0:
        t //= 2
    return t if total % t == 0 else total


def _const_spec(shape, single_buffer):
    """BlockSpec for a grid-invariant (weight / bias) input."""
    nd = len(shape)

    def idx(*_):
        return (0,) * nd

    if single_buffer:
        # Weights never change across the grid -> no prefetch overlap needed; single buffering
        # halves their VMEM footprint (the difference between fitting and not on v7x).
        return pl.BlockSpec(shape, idx, pipeline_mode=pl.Buffered(1))
    return pl.BlockSpec(shape, idx)


def _layer_norm(v, s_ref, b_ref, eps=1e-5):
    m = jnp.mean(v, axis=-1, keepdims=True)
    var = jnp.mean((v - m) ** 2, axis=-1, keepdims=True)
    return (v - m) * lax.rsqrt(var + eps) * s_ref[0] + b_ref[0]


# ----------------------------- kernel 1: LN1 + fused QKV projection -----------------------------

def _ln_qkv_kernel(x_ref, ln1_s_ref, ln1_b_ref, wqkv_ref, qkv_ref):
    # x_ref: (1, Tt, D) f32; wqkv_ref: (D, 3D) bf16 = [Wq/sqrt(hd) | Wk | Wv]; qkv_ref: (1, Tt, 3D) bf16
    x = x_ref[0].astype(jnp.float32)                                      # (Tt, D)
    xn = _layer_norm(x, ln1_s_ref, ln1_b_ref).astype(jnp.bfloat16)
    qkv_ref[0] = jnp.dot(xn, wqkv_ref[...],
                         preferred_element_type=jnp.float32).astype(qkv_ref.dtype)


# ------------------- kernel 2: flash-style causal attention + out-proj + LN2 + FFN -------------------

def _flash_attn_ffn_kernel(
    x_ref,                     # (1, TQ, D)   f32   residual base (original x tile)
    q_ref,                     # (1, H, TQ, hd)  bf16 (pre-scaled by 1/sqrt(hd))
    k_ref,                     # (1, H, TKV, hd) bf16
    v_ref,                     # (1, H, TKV, hd) bf16
    wo_ref, bo_ref,            # (D, D) bf16, (1, D) f32
    ln2_s_ref, ln2_b_ref,      # (1, D) f32
    w1_ref, b1_ref,            # (D, 4D) bf16, (1, 4D) f32
    w2_ref, b2_ref,            # (4D, D) bf16, (1, D)  f32
    o_ref,                     # (1, TQ, D)
    m_sc, l_sc, acc_sc,        # (H, TQ, 1) f32, (H, TQ, 1) f32, (H, TQ, hd) f32
    *, num_heads: int, q_tile: int, kv_tile: int,
):
    H = num_heads
    TQ, TKV = q_tile, kv_tile
    qi = pl.program_id(1)
    kv = pl.program_id(2)

    # Last KV tile that intersects the causal region of this query tile.
    last_kv = ((qi + 1) * TQ - 1) // TKV

    @pl.when(kv == 0)
    def _init():
        m_sc[...] = jnp.full_like(m_sc, -1e30)
        l_sc[...] = jnp.zeros_like(l_sc)
        acc_sc[...] = jnp.zeros_like(acc_sc)

    # ---- structural causal skip: fully-masked KV tiles do no compute (and no new DMA, see wrapper) ----
    @pl.when(kv <= last_kv)
    def _accumulate():
        q = q_ref[0]                                                       # (H, TQ, hd)
        k = k_ref[0]                                                       # (H, TKV, hd)
        v = v_ref[0]                                                       # (H, TKV, hd)

        s = lax.dot_general(q, k, (((2,), (2,)), ((0,), (0,))),
                            preferred_element_type=jnp.float32)            # (H, TQ, TKV) f32

        # Element-level causal mask (only actually masks anything on the diagonal tile).
        q_pos = qi * TQ + lax.broadcasted_iota(jnp.int32, (TQ, TKV), 0)
        k_pos = kv * TKV + lax.broadcasted_iota(jnp.int32, (TQ, TKV), 1)
        s = jnp.where((k_pos > q_pos)[None], jnp.float32(-1e30), s)        # keep mask in f32

        # Online softmax update (f32 elementwise; v5e has no bf16 VPU/EUP).
        m_prev = m_sc[...]
        m_new = jnp.maximum(m_prev, jnp.max(s, axis=-1, keepdims=True))    # (H, TQ, 1)
        alpha = jnp.exp(m_prev - m_new)
        p = jnp.exp(s - m_new)                                             # (H, TQ, TKV)
        l_sc[...] = alpha * l_sc[...] + jnp.sum(p, axis=-1, keepdims=True)
        acc_sc[...] = alpha * acc_sc[...] + lax.dot_general(
            p.astype(jnp.bfloat16), v, (((2,), (1,)), ((0,), (0,))),
            preferred_element_type=jnp.float32)                            # (H, TQ, hd)
        m_sc[...] = m_new

    # ---- epilogue on the diagonal (last contributing) KV tile ----
    @pl.when(kv == last_kv)
    def _epilogue():
        inv_l = pl.reciprocal(l_sc[...], approx=True)                      # EUP reciprocal
        ctx = acc_sc[...] * inv_l                                          # (H, TQ, hd) f32
        # Regroup heads into lanes -> (TQ, H*hd), head-major feature order (== torch .view(b, T, D)).
        ctx_flat = jnp.concatenate([ctx[h] for h in range(H)], axis=-1)    # (TQ, D)

        # Single full-depth output projection (K = D, N = D).
        attn_out = jnp.dot(ctx_flat.astype(jnp.bfloat16), wo_ref[...],
                           preferred_element_type=jnp.float32) + bo_ref[0]
        x2 = x_ref[0].astype(jnp.float32) + attn_out                       # residual 1 (dropout = id)

        # LayerNorm 2 + FeedForward (Linear -> tanh-GELU -> Linear).
        xn2 = _layer_norm(x2, ln2_s_ref, ln2_b_ref).astype(jnp.bfloat16)
        h1 = jnp.dot(xn2, w1_ref[...], preferred_element_type=jnp.float32) + b1_ref[0]   # (TQ, 4D)
        c = math.sqrt(2.0 / math.pi)
        g = 0.5 * h1 * (1.0 + jnp.tanh(c * (h1 + 0.044715 * (h1 * h1 * h1))))
        ff = jnp.dot(g.astype(jnp.bfloat16), w2_ref[...],
                     preferred_element_type=jnp.float32) + b2_ref[0]

        o_ref[0] = (x2 + ff).astype(o_ref.dtype)                           # residual 2 (dropout = id)


# ----------------------------- wrapper -----------------------------------

def _prepare_params(params, num_heads):
    """Rearrange math-layout params (x @ W convention) into kernel layout (bf16 weights, f32 biases)."""
    (ln1_s, ln1_b, wq, wk, wv, wo, bo, ln2_s, ln2_b, w1, b1, w2, b2) = params
    D = wq.shape[0]
    hd = D // num_heads
    inv_sqrt_hd = 1.0 / math.sqrt(hd)
    f32, bf16 = jnp.float32, jnp.bfloat16
    return dict(
        ln1_s=ln1_s.reshape(1, D).astype(f32),
        ln1_b=ln1_b.reshape(1, D).astype(f32),
        # Fused lane-dense QKV weight; 1/sqrt(hd) folded into Wq.
        wqkv=jnp.concatenate([wq * inv_sqrt_hd, wk, wv], axis=1).astype(bf16),   # (D, 3D)
        wo=wo.astype(bf16),
        bo=bo.reshape(1, D).astype(f32),
        ln2_s=ln2_s.reshape(1, D).astype(f32),
        ln2_b=ln2_b.reshape(1, D).astype(f32),
        w1=w1.astype(bf16), b1=b1.reshape(1, -1).astype(f32),
        w2=w2.astype(bf16), b2=b2.reshape(1, -1).astype(f32),
    )


def _transformer_block_impl(x, kp, num_heads, q_tile, kv_tile, single_buffer_weights):
    B, T, D = x.shape
    H = num_heads
    assert D % H == 0
    hd = D // H

    if q_tile is None:
        # Larger tiles on 128 MiB VMEM parts (v5e/v6e), smaller on v7x (64 MiB).
        q_tile = _pick_tile(T, 256 if _tpu_vmem_capacity_bytes() >= (96 << 20) else 128)
    if kv_tile is None:
        kv_tile = q_tile
    assert T % q_tile == 0 and T % kv_tile == 0

    vmem_limit = _vmem_limit_bytes()
    cspec = functools.partial(_const_spec, single_buffer=single_buffer_weights)

    # ---------------- pallas_call 1: LN1 + fused lane-dense QKV projection (done once) -------------
    seq_tile = _pick_tile(T, 256)
    qkv_cost = pl.CostEstimate(
        flops=2 * B * T * D * 3 * D,
        transcendentals=B * T,
        bytes_accessed=int(x.nbytes) + int(kp["wqkv"].nbytes) + 2 * B * T * 3 * D,
    )
    qkv = pl.pallas_call(
        _ln_qkv_kernel,
        out_shape=jax.ShapeDtypeStruct((B, T, 3 * D), jnp.bfloat16),
        grid_spec=pltpu.PrefetchScalarGridSpec(
            num_scalar_prefetch=0,
            grid=(B, T // seq_tile),
            in_specs=[
                pl.BlockSpec((1, seq_tile, D), lambda b, t: (b, t, 0)),
                cspec((1, D)), cspec((1, D)), cspec((D, 3 * D)),
            ],
            out_specs=pl.BlockSpec((1, seq_tile, 3 * D), lambda b, t: (b, t, 0)),
        ),
        compiler_params=pltpu.CompilerParams(
            dimension_semantics=("parallel", "parallel"),
            vmem_limit_bytes=vmem_limit,
        ),
        cost_estimate=qkv_cost,
    )(x, kp["ln1_s"], kp["ln1_b"], kp["wqkv"])

    # Head split q/k/v -> (B, H, T, hd): cheap XLA relayout between the two kernels so the attention
    # kernel never reshapes / transposes activations internally.
    def to_heads(a):
        return a.reshape(B, T, H, hd).transpose(0, 2, 1, 3)
    q, k, v = (to_heads(a) for a in jnp.split(qkv, 3, axis=-1))

    # ------------- pallas_call 2: flash-style causal attention + out-proj + LN2 + FFN --------------
    nq, nkv = T // q_tile, T // kv_tile

    def kv_index(b, qi, kv):
        # Clamp fully-masked KV tiles to the last causally-relevant tile -> block index unchanged
        # -> Pallas skips the DMA for those steps.
        last_kv = ((qi + 1) * q_tile - 1) // kv_tile
        return (b, 0, jnp.minimum(kv, last_kv), 0)

    weight_bytes = sum(int(kp[n].nbytes)
                       for n in ("wo", "bo", "ln2_s", "ln2_b", "w1", "b1", "w2", "b2"))
    attn_cost = pl.CostEstimate(
        flops=2 * B * H * T * T * hd + 2 * B * T * D * D + 16 * B * T * D * D,
        transcendentals=B * H * T * T // 2 + 4 * B * T * D,
        bytes_accessed=2 * int(x.nbytes) + 3 * 2 * B * T * D + weight_bytes,
    )

    kernel = functools.partial(_flash_attn_ffn_kernel,
                               num_heads=H, q_tile=q_tile, kv_tile=kv_tile)
    return pl.pallas_call(
        kernel,
        out_shape=jax.ShapeDtypeStruct((B, T, D), x.dtype),
        grid_spec=pltpu.PrefetchScalarGridSpec(
            num_scalar_prefetch=0,
            grid=(B, nq, nkv),
            in_specs=[
                pl.BlockSpec((1, q_tile, D), lambda b, qi, kv: (b, qi, 0)),          # x (residual)
                pl.BlockSpec((1, H, q_tile, hd), lambda b, qi, kv: (b, 0, qi, 0)),   # q
                pl.BlockSpec((1, H, kv_tile, hd), kv_index),                         # k
                pl.BlockSpec((1, H, kv_tile, hd), kv_index),                         # v
                cspec((D, D)),          # wo
                cspec((1, D)),          # bo
                cspec((1, D)),          # ln2_s
                cspec((1, D)),          # ln2_b
                cspec((D, 4 * D)),      # w1
                cspec((1, 4 * D)),      # b1
                cspec((4 * D, D)),      # w2
                cspec((1, D)),          # b2
            ],
            out_specs=pl.BlockSpec((1, q_tile, D), lambda b, qi, kv: (b, qi, 0)),
            scratch_shapes=[
                pltpu.VMEM((H, q_tile, 1), jnp.float32),     # running max
                pltpu.VMEM((H, q_tile, 1), jnp.float32),     # running sum
                pltpu.VMEM((H, q_tile, hd), jnp.float32),    # output accumulator
            ],
        ),
        compiler_params=pltpu.CompilerParams(
            dimension_semantics=("parallel", "parallel", "arbitrary"),
            vmem_limit_bytes=vmem_limit,
        ),
        cost_estimate=attn_cost,
    )(x, q, k, v, kp["wo"], kp["bo"], kp["ln2_s"], kp["ln2_b"],
      kp["w1"], kp["b1"], kp["w2"], kp["b2"])


def transformer_block(x, params, num_heads, q_tile=None, kv_tile=None):
    """x: (B, T, D) float32.  params: math-layout list (see _prepare_params / transformer_block_ref)."""
    kp = _prepare_params(params, num_heads)
    try:
        return _transformer_block_impl(x, kp, num_heads, q_tile, kv_tile,
                                       single_buffer_weights=True)
    except Exception:
        # This jax version may not support BlockSpec(pipeline_mode=pl.Buffered(1));
        # fall back to default double-buffered weight blocks.
        return _transformer_block_impl(x, kp, num_heads, q_tile, kv_tile,
                                       single_buffer_weights=False)


# ----------------------------- reference (pure JAX f32) ------------------

def transformer_block_ref(x, params, num_heads):
    (ln1_s, ln1_b, wq, wk, wv, wo, bo, ln2_s, ln2_b, w1, b1, w2, b2) = params
    eps = 1e-5
    B, T, D = x.shape
    hd = D // num_heads

    def ln(v, s, b):
        m = v.mean(-1, keepdims=True)
        va = ((v - m) ** 2).mean(-1, keepdims=True)
        return (v - m) / jnp.sqrt(va + eps) * s + b

    xn = ln(x, ln1_s, ln1_b)
    q = (xn @ wq).reshape(B, T, num_heads, hd).transpose(0, 2, 1, 3)
    k = (xn @ wk).reshape(B, T, num_heads, hd).transpose(0, 2, 1, 3)
    v = (xn @ wv).reshape(B, T, num_heads, hd).transpose(0, 2, 1, 3)
    scores = jnp.einsum("bhqd,bhkd->bhqk", q, k) / math.sqrt(hd)
    mask = jnp.triu(jnp.ones((T, T), bool), k=1)
    scores = jnp.where(mask, -jnp.inf, scores)
    attn = jax.nn.softmax(scores, axis=-1)
    ctx = jnp.einsum("bhqk,bhkd->bhqd", attn, v).transpose(0, 2, 1, 3).reshape(B, T, D)
    x2 = x + (ctx @ wo + bo)
    xn2 = ln(x2, ln2_s, ln2_b)
    h = xn2 @ w1 + b1
    c = math.sqrt(2.0 / math.pi)
    g = 0.5 * h * (1.0 + jnp.tanh(c * (h + 0.044715 * h ** 3)))
    return x2 + (g @ w2 + b2)


# ----------------------------- main ---------------------------------------

if __name__ == "__main__":
    # Lane-aligned small config: emb_dim=256 (mult of 128), n_heads=4 (head_dim=64),
    # context_length=256, query/kv tile=128 (exercises multi-tile flash + causal skipping), batch=2.
    B, T, D, NUM_HEADS = 2, 256, 256, 4
    Q_TILE = 128
    D_FF = 4 * D

    key = jax.random.PRNGKey(0)
    ks = jax.random.split(key, 14)

    x = jax.random.normal(ks[0], (B, T, D), dtype=jnp.float32)

    scale = 0.02
    ln1_s = 1.0 + 0.1 * jax.random.normal(ks[1], (D,), jnp.float32)
    ln1_b = 0.1 * jax.random.normal(ks[2], (D,), jnp.float32)
    wq = scale * jax.random.normal(ks[3], (D, D), jnp.float32)
    wk = scale * jax.random.normal(ks[4], (D, D), jnp.float32)
    wv = scale * jax.random.normal(ks[5], (D, D), jnp.float32)
    wo = scale * jax.random.normal(ks[6], (D, D), jnp.float32)
    bo = scale * jax.random.normal(ks[7], (D,), jnp.float32)
    ln2_s = 1.0 + 0.1 * jax.random.normal(ks[8], (D,), jnp.float32)
    ln2_b = 0.1 * jax.random.normal(ks[9], (D,), jnp.float32)
    w1 = scale * jax.random.normal(ks[10], (D, D_FF), jnp.float32)
    b1 = scale * jax.random.normal(ks[11], (D_FF,), jnp.float32)
    w2 = scale * jax.random.normal(ks[12], (D_FF, D), jnp.float32)
    b2 = scale * jax.random.normal(ks[13], (D,), jnp.float32)

    params = [ln1_s, ln1_b, wq, wk, wv, wo, bo, ln2_s, ln2_b, w1, b1, w2, b2]

    out = jax.block_until_ready(transformer_block(x, params, NUM_HEADS, q_tile=Q_TILE))
    ref = jax.block_until_ready(transformer_block_ref(x, params, NUM_HEADS))

    # bf16 MXU operands + approx reciprocal => compare against f32 reference with relaxed tolerance.
    np.testing.assert_allclose(np.asarray(out), np.asarray(ref), rtol=2e-2, atol=2e-2)

    print("KERNEL_OK")
</pallas_src>

<mosaic_0001>
module attributes {stable_mosaic.version = 11 : i64} {
  func.func @_ln_qkv_kernel(%arg0: i32, %arg1: i32, %arg2: memref<1x256x256xf32, #tpu.memory_space<vmem>>, %arg3: memref<1x256xf32, #tpu.memory_space<vmem>>, %arg4: memref<1x256xf32, #tpu.memory_space<vmem>>, %arg5: memref<256x768xbf16, #tpu.memory_space<vmem>>, %arg6: memref<1x256x768xbf16, #tpu.memory_space<vmem>>) attributes {dimension_semantics = [#tpu.dimension_semantics<parallel>, #tpu.dimension_semantics<parallel>], iteration_bounds = array<i64: 2, 1>, scalar_prefetch = 0 : i64, scratch_operands = 0 : i64, tpu.core_type = #tpu.core_type<tc>, window_params = [{transform_indices = @transform_0, window_bounds = array<i64: 1, 256, 256>}, {pipeline_mode = #tpu.pipeline_mode<synchronous>, transform_indices = @transform_1, window_bounds = array<i64: 1, 256>}, {pipeline_mode = #tpu.pipeline_mode<synchronous>, transform_indices = @transform_2, window_bounds = array<i64: 1, 256>}, {pipeline_mode = #tpu.pipeline_mode<synchronous>, transform_indices = @transform_3, window_bounds = array<i64: 256, 768>}, {transform_indices = @transform_4, window_bounds = array<i64: 1, 256, 768>}]} {
    %c0 = arith.constant 0 : index
    %c0_0 = arith.constant 0 : index
    %c0_1 = arith.constant 0 : index
    %0 = vector.load %arg2[%c0, %c0_0, %c0_1] : memref<1x256x256xf32, #tpu.memory_space<vmem>>, vector<1x256x256xf32>
    %1 = vector.shape_cast %0 : vector<1x256x256xf32> to vector<256x256xf32>
    %cst = arith.constant dense<0.000000e+00> : vector<256xf32>
    %2 = vector.multi_reduction <add>, %1, %cst [1] : vector<256x256xf32> to vector<256xf32>
    %3 = vector.shape_cast %2 : vector<256xf32> to vector<256x1xf32>
    %cst_2 = arith.constant 2.560000e+02 : f32
    %4 = vector.broadcast %cst_2 : f32 to vector<256x1xf32>
    %5 = arith.divf %3, %4 : vector<256x1xf32>
    %6 = vector.broadcast %5 : vector<256x1xf32> to vector<256x256xf32>
    %7 = arith.subf %1, %6 : vector<256x256xf32>
    %8 = arith.mulf %7, %7 : vector<256x256xf32>
    %cst_3 = arith.constant dense<0.000000e+00> : vector<256xf32>
    %9 = vector.multi_reduction <add>, %8, %cst_3 [1] : vector<256x256xf32> to vector<256xf32>
    %10 = vector.shape_cast %9 : vector<256xf32> to vector<256x1xf32>
    %cst_4 = arith.constant 2.560000e+02 : f32
    %11 = vector.broadcast %cst_4 : f32 to vector<256x1xf32>
    %12 = arith.divf %10, %11 : vector<256x1xf32>
    %13 = vector.broadcast %5 : vector<256x1xf32> to vector<256x256xf32>
    %14 = arith.subf %1, %13 : vector<256x256xf32>
    %cst_5 = arith.constant 9.99999974E-6 : f32
    %15 = vector.broadcast %cst_5 : f32 to vector<256x1xf32>
    %16 = arith.addf %12, %15 : vector<256x1xf32>
    %17 = math.rsqrt %16 : vector<256x1xf32>
    %18 = vector.broadcast %17 : vector<256x1xf32> to vector<256x256xf32>
    %19 = arith.mulf %14, %18 : vector<256x256xf32>
    %c0_6 = arith.constant 0 : index
    %c0_7 = arith.constant 0 : index
    %20 = vector.load %arg3[%c0_6, %c0_7] : memref<1x256xf32, #tpu.memory_space<vmem>>, vector<1x256xf32>
    %21 = vector.shape_cast %20 : vector<1x256xf32> to vector<256xf32>
    %22 = vector.shape_cast %21 : vector<256xf32> to vector<1x256xf32>
    %23 = vector.broadcast %22 : vector<1x256xf32> to vector<256x256xf32>
    %24 = arith.mulf %19, %23 : vector<256x256xf32>
    %c0_8 = arith.constant 0 : index
    %c0_9 = arith.constant 0 : index
    %25 = vector.load %arg4[%c0_8, %c0_9] : memref<1x256xf32, #tpu.memory_space<vmem>>, vector<1x256xf32>
    %26 = vector.shape_cast %25 : vector<1x256xf32> to vector<256xf32>
    %27 = vector.shape_cast %26 : vector<256xf32> to vector<1x256xf32>
    %28 = vector.broadcast %27 : vector<1x256xf32> to vector<256x256xf32>
    %29 = arith.addf %24, %28 : vector<256x256xf32>
    %30 = arith.truncf %29 : vector<256x256xf32> to vector<256x256xbf16>
    %c0_10 = arith.constant 0 : index
    %c0_11 = arith.constant 0 : index
    %31 = vector.load %arg5[%c0_10, %c0_11] : memref<256x768xbf16, #tpu.memory_space<vmem>>, vector<256x768xbf16>
    %cst_12 = arith.constant dense<0.000000e+00> : vector<256x768xf32>
    %32 = tpu.matmul %30, %31, %cst_12 {dimension_numbers = #tpu.dot_dimension_numbers<[1], [0], [0], [1], [0, 0, 1, 1], [], []>} : vector<256x256xbf16>, vector<256x768xbf16>, vector<256x768xf32> -> vector<256x768xf32>
    %33 = arith.truncf %32 : vector<256x768xf32> to vector<256x768xbf16>
    %c0_13 = arith.constant 0 : index
    %c0_14 = arith.constant 0 : index
    %c0_15 = arith.constant 0 : index
    %34 = vector.load %arg6[%c0_13, %c0_14, %c0_15] : memref<1x256x768xbf16, #tpu.memory_space<vmem>>, vector<1x256x768xbf16>
    %35 = vector.shape_cast %34 : vector<1x256x768xbf16> to vector<256x768xbf16>
    %36 = vector.shape_cast %33 : vector<256x768xbf16> to vector<1x256x768xbf16>
    tpu.vector_store %arg6[%c0_13, %c0_14, %c0_15], %36 {strides = array<i32>} : memref<1x256x768xbf16, #tpu.memory_space<vmem>>, vector<1x256x768xbf16>,
    return
  }
  func.func @transform_0(%arg0: i32, %arg1: i32) -> (i32, i32, i32) {
    %c0_i32 = arith.constant 0 : i32
    %c0_i32_0 = arith.constant 0 : i32
    return %arg0, %arg1, %c0_i32 : i32, i32, i32
  }
  func.func @transform_1(%arg0: i32, %arg1: i32) -> (i32, i32) {
    %c0_i32 = arith.constant 0 : i32
    %c0_i32_0 = arith.constant 0 : i32
    %c0_i32_1 = arith.constant 0 : i32
    return %c0_i32, %c0_i32_0 : i32, i32
  }
  func.func @transform_2(%arg0: i32, %arg1: i32) -> (i32, i32) {
    %c0_i32 = arith.constant 0 : i32
    %c0_i32_0 = arith.constant 0 : i32
    %c0_i32_1 = arith.constant 0 : i32
    return %c0_i32, %c0_i32_0 : i32, i32
  }
  func.func @transform_3(%arg0: i32, %arg1: i32) -> (i32, i32) {
    %c0_i32 = arith.constant 0 : i32
    %c0_i32_0 = arith.constant 0 : i32
    %c0_i32_1 = arith.constant 0 : i32
    return %c0_i32, %c0_i32_0 : i32, i32
  }
  func.func @transform_4(%arg0: i32, %arg1: i32) -> (i32, i32, i32) {
    %c0_i32 = arith.constant 0 : i32
    %c0_i32_0 = arith.constant 0 : i32
    return %arg0, %arg1, %c0_i32 : i32, i32, i32
  }
}

module attributes {stable_mosaic.version = 11 : i64} {
  func.func @_ln_qkv_kernel(%arg0: i32, %arg1: i32, %arg2: memref<1x256x256xf32, #tpu.memory_space<vmem>>, %arg3: memref<1x256xf32, #tpu.memory_space<vmem>>, %arg4: memref<1x256xf32, #tpu.memory_space<vmem>>, %arg5: memref<256x768xbf16, #tpu.memory_space<vmem>>, %arg6: memref<1x256x768xbf16, #tpu.memory_space<vmem>>) attributes {dimension_semantics = [#tpu.dimension_semantics<parallel>, #tpu.dimension_semantics<parallel>], iteration_bounds = array<i64: 2, 1>, scalar_prefetch = 0 : i64, scratch_operands = 0 : i64, tpu.core_type = #tpu.core_type<tc>, window_params = [{transform_indices = @transform_0, window_bounds = array<i64: 1, 256, 256>}, {pipeline_mode = #tpu.pipeline_mode<synchronous>, transform_indices = @transform_1, window_bounds = array<i64: 1, 256>}, {pipeline_mode = #tpu.pipeline_mode<synchronous>, transform_indices = @transform_2, window_bounds = array<i64: 1, 256>}, {pipeline_mode = #tpu.pipeline_mode<synchronous>, transform_indices = @transform_3, window_bounds = array<i64: 256, 768>}, {transform_indices = @transform_4, window_bounds = array<i64: 1, 256, 768>}]} {
    %c0 = arith.constant 0 : index
    %c0_0 = arith.constant 0 : index
    %c0_1 = arith.constant 0 : index
    %0 = vector.load %arg2[%c0, %c0_0, %c0_1] : memref<1x256x256xf32, #tpu.memory_space<vmem>>, vector<1x256x256xf32>
    %1 = vector.shape_cast %0 : vector<1x256x256xf32> to vector<256x256xf32>
    %cst = arith.constant dense<0.000000e+00> : vector<256xf32>
    %2 = vector.multi_reduction <add>, %1, %cst [1] : vector<256x256xf32> to vector<256xf32>
    %3 = vector.shape_cast %2 : vector<256xf32> to vector<256x1xf32>
    %cst_2 = arith.constant 2.560000e+02 : f32
    %4 = vector.broadcast %cst_2 : f32 to vector<256x1xf32>
    %5 = arith.divf %3, %4 : vector<256x1xf32>
    %6 = vector.broadcast %5 : vector<256x1xf32> to vector<256x256xf32>
    %7 = arith.subf %1, %6 : vector<256x256xf32>
    %8 = arith.mulf %7, %7 : vector<256x256xf32>
    %cst_3 = arith.constant dense<0.000000e+00> : vector<256xf32>
    %9 = vector.multi_reduction <add>, %8, %cst_3 [1] : vector<256x256xf32> to vector<256xf32>
    %10 = vector.shape_cast %9 : vector<256xf32> to vector<256x1xf32>
    %cst_4 = arith.constant 2.560000e+02 : f32
    %11 = vector.broadcast %cst_4 : f32 to vector<256x1xf32>
    %12 = arith.divf %10, %11 : vector<256x1xf32>
    %13 = vector.broadcast %5 : vector<256x1xf32> to vector<256x256xf32>
    %14 = arith.subf %1, %13 : vector<256x256xf32>
    %cst_5 = arith.constant 9.99999974E-6 : f32
    %15 = vector.broadcast %cst_5 : f32 to vector<256x1xf32>
    %16 = arith.addf %12, %15 : vector<256x1xf32>
    %17 = math.rsqrt %16 : vector<256x1xf32>
    %18 = vector.broadcast %17 : vector<256x1xf32> to vector<256x256xf32>
    %19 = arith.mulf %14, %18 : vector<256x256xf32>
    %c0_6 = arith.constant 0 : index
    %c0_7 = arith.constant 0 : index
    %20 = vector.load %arg3[%c0_6, %c0_7] : memref<1x256xf32, #tpu.memory_space<vmem>>, vector<1x256xf32>
    %21 = vector.shape_cast %20 : vector<1x256xf32> to vector<256xf32>
    %22 = vector.shape_cast %21 : vector<256xf32> to vector<1x256xf32>
    %23 = vector.broadcast %22 : vector<1x256xf32> to vector<256x256xf32>
    %24 = arith.mulf %19, %23 : vector<256x256xf32>
    %c0_8 = arith.constant 0 : index
    %c0_9 = arith.constant 0 : index
    %25 = vector.load %arg4[%c0_8, %c0_9] : memref<1x256xf32, #tpu.memory_space<vmem>>, vector<1x256xf32>
    %26 = vector.shape_cast %25 : vector<1x256xf32> to vector<256xf32>
    %27 = vector.shape_cast %26 : vector<256xf32> to vector<1x256xf32>
    %28 = vector.broadcast %27 : vector<1x256xf32> to vector<256x256xf32>
    %29 = arith.addf %24, %28 : vector<256x256xf32>
    %30 = arith.truncf %29 : vector<256x256xf32> to vector<256x256xbf16>
    %c0_10 = arith.constant 0 : index
    %c0_11 = arith.constant 0 : index
    %31 = vector.load %arg5[%c0_10, %c0_11] : memref<256x768xbf16, #tpu.memory_space<vmem>>, vector<256x768xbf16>
    %cst_12 = arith.constant dense<0.000000e+00> : vector<256x768xf32>
    %32 = tpu.matmul %30, %31, %cst_12 {dimension_numbers = #tpu.dot_dimension_numbers<[1], [0], [0], [1], [0, 0, 1, 1], [], []>} : vector<256x256xbf16>, vector<256x768xbf16>, vector<256x768xf32> -> vector<256x768xf32>
    %33 = arith.truncf %32 : vector<256x768xf32> to vector<256x768xbf16>
    %c0_13 = arith.constant 0 : index
    %c0_14 = arith.constant 0 : index
    %c0_15 = arith.constant 0 : index
    %34 = vector.load %arg6[%c0_13, %c0_14, %c0_15] : memref<1x256x768xbf16, #tpu.memory_space<vmem>>, vector<1x256x768xbf16>
    %35 = vector.shape_cast %34 : vector<1x256x768xbf16> to vector<256x768xbf16>
    %36 = vector.shape_cast %33 : vector<256x768xbf16> to vector<1x256x768xbf16>
    tpu.vector_store %arg6[%c0_13, %c0_14, %c0_15], %36 {strides = array<i32>} : memref<1x256x768xbf16, #tpu.memory_space<vmem>>, vector<1x256x768xbf16>,
    return
  }
  func.func @transform_0(%arg0: i32, %arg1: i32) -> (i32, i32, i32) {
    %c0_i32 = arith.constant 0 : i32
    %c0_i32_0 = arith.constant 0 : i32
    return %arg0, %arg1, %c0_i32 : i32, i32, i32
  }
  func.func @transform_1(%arg0: i32, %arg1: i32) -> (i32, i32) {
    %c0_i32 = arith.constant 0 : i32
    %c0_i32_0 = arith.constant 0 : i32
    %c0_i32_1 = arith.constant 0 : i32
    return %c0_i32, %c0_i32_0 : i32, i32
  }
  func.func @transform_2(%arg0: i32, %arg1: i32) -> (i32, i32) {
    %c0_i32 = arith.constant 0 : i32
    %c0_i32_0 = arith.constant 0 : i32
    %c0_i32_1 = arith.constant 0 : i32
    return %c0_i32, %c0_i32_0 : i32, i32
  }
  func.func @transform_3(%arg0: i32, %arg1: i32) -> (i32, i32) {
    %c0_i32 = arith.constant 0 : i32
    %c0_i32_0 = arith.constant 0 : i32
    %c0_i32_1 = arith.constant 0 : i32
    return %c0_i32, %c0_i32_0 : i32, i32
  }
  func.func @transform_4(%arg0: i32, %arg1: i32) -> (i32, i32, i32) {
    %c0_i32 = arith.constant 0 : i32
    %c0_i32_0 = arith.constant 0 : i32
    return %arg0, %arg1, %c0_i32 : i32, i32, i32
  }
}

</mosaic_0001>

<bundles_post_ra>
// kernel: tpu_custom_call.1
= control target key start
LH: loop header
LB: loop body
LE: loop exit
PB: predicated region body
PF: predicated region fallthrough
CT: control target
= control target key end

     0   :  { %9 = vsyncpa [#allocation3], 0  ;;  %s5099_s0 = inlined_call_operand.hbm [shape: f32[2,256,256], index: 0, kind: input, shape index: {}]   ;;  %s5100_s1 = inlined_call_operand.vmem [shape: f32[1,256], index: 1, kind: input, shape index: {}]   ;;  %s5101_s2 = inlined_call_operand.vmem [shape: f32[1,256], index: 2, kind: input, shape index: {}]   ;;  %s5102_s3 = inlined_call_operand.hbm [shape: bf16[256,768], index: 3, kind: input, shape index: {}]   ;;  %s5103_s4 = inlined_call_operand.hbm [shape: bf16[2,256,768], index: 4, kind: output, shape index: {}]  }
   0x1   :  { %11 = vsyncpa [#allocation3 + $0x1], 0 }
   0x2   :  { %12 = vsyncpa [#allocation6], 0 }
   0x3   :  { %13 = vsyncpa [#allocation4], 0 }
   0x4   :  { %15 = vsyncpa [#allocation4 + $0x1], 0  ;;  %s3758_s15 = smov 0   ;;  %s3760_s16 = smov 0  }
   0x5   :  { %s3762_s17 = smov 0   ;;  %s3764_s18 = smov 0  }
   0x6   :  { %s3766_s19 = smov 0   ;;  %s3768_s20 = smov 0  }
   0x7 LB: > { %s2954_s21 = sadd.s32 4294967295, %s3722_s20   ;;  %s2955_s22 = sadd.s32 4294967294, %s3722_s20   ;;  %s3722_s20 = sphi %s3768_s20, %s21_s20   ;;  %s3718_s19 = sphi %s3766_s19, %s5245_s19   ;;  %s3714_s18 = sphi %s3764_s18, %s5244_s18   ;;  %s3710_s17 = sphi %s3762_s17, %s5243_s17   ;;  %s3706_s16 = sphi %s3760_s16, %s5242_s16   ;;  %s3702_s15 = sphi %s3758_s15, %s5241_s15  }
   0x8   : > { %p55_p0 = scmp.ne.s32.totalorder %s3706_s16, %s3702_s15  ;;  %p3792_p1 = scmp.eq.s32.totalorder %s2954_s21, 0 }
   0x9   : > { %p3796_p2 = scmp.eq.s32.totalorder %s2954_s21, 1  ;;  %p150_p3 = scmp.eq.s32.totalorder %s2955_s22, 1 }
   0xa   : > { %s5148_s23 = scalar_select %p3792_p1, 1, 0 }
   0xb   : > { %s5149_s24 = scalar_select %p3796_p2, 1, 0 }
   0xc   : > { %p3802_p4 = por %p3792_p1, %p55_p0  ;;  %p2956_p5 = scmp.ge.s32.totalorder %s3722_s20, 1 }
   0xd   : > { %p3807_p6 = por %p150_p3, %p55_p0  ;;  %p157_p7 = scmp.lt.s32.totalorder %s3722_s20, 3 }
   0xe   : > { %s5150_s25 = scalar_select %p3802_p4, 1, 0 }
   0xf   : > { %s5151_s26 = scalar_select %p3807_p6, 1, 0 }
  0x10   : > { %p3812_p8 = pnand %p2956_p5, %p157_p7  ;;  %s3724_s28 = smov [#allocation5]  }
  0x11   : > { %s175_s29 = sshll.u32 %s3724_s28, 4  ;;  %s33_s5 = sadd.s32 1, %s3718_s19  ;;  %s176_s29 = int_to_ptr.vmem [resolvable:$true] %s175_s29 }
  0x12   : > { %s5152_s27 = scalar_select %p3812_p8, 1, 0 }
  0x13   : > { %p3299_p9 = pneg %p3812_p8  ;;  %s3578_s8 = scalar_lea.hbm %s5102_s3, 12288 }
  0x14   : > { %p3579_p12 = scmp.ne.s32.totalorder %s5102_s3, %s3578_s8  ;;  %p3585_p5 = scmp.lt.u32.totalorder %s3578_s8, %s5102_s3 }
  0x15   : > { %p3821_p11 = pnand %p3299_p9, %p3792_p1 }
  0x17   : > { %p3580_p13 = pneg %p3821_p11 }
  0x19   : > { %p3581_p0 = pnand %p3580_p13, %p3579_p12 }
  0x1b   : > { %p3582_p3 = pneg %p3581_p0 }
  0x1d   : > { %p3587_p7 = pnand %p3585_p5, %p3582_p3 }
  0x1f   : > { %3590 = shalt.err (!%p3587_p7)
}
  0x20   : > { %s3591_s13 = scalar_lea.vmem %s176_s29, 12288  ;;  %p3599_p1 = scmp.lt.s32.totalorder %s176_s29, %s176_s29 }
  0x21   : > { %p3592_p9 = scmp.ne.s32.totalorder %s176_s29, %s3591_s13  ;;  %p3600_p4 = scmp.lt.s32.totalorder %s3591_s13, %s3591_s13 }
  0x23   : > { %p3594_p10 = pnand %p3592_p9, %p3580_p13  ;;  %p3601_p8 = por %p3600_p4, %p3599_p1 }
  0x25   : > { %p3595_p6 = pneg %p3594_p10 }
  0x27   : > { %p3602_p2 = pnand %p3601_p8, %p3595_p6 }
  0x29   : > { %3605 = shalt.err (!%p3602_p2)
}
  0x2a   : > { %s3725_s14 = smov 384   ;;  %s3726_s21 = smov 24  }
  0x2b   : > { %3302 = dma.hbm_to_vmem [thread:$0]  (!%p3821_p11), %s5102_s3, 12288, %s176_s29, [#allocation6], %s3725_s14, %s3725_s14, %s3726_s21  }
  0x2c   : > { %p35_p1 = scmp.ge.s32.totalorder %s33_s5, 2  ;;  %s42_s6 = sadd.s32 1, %s3710_s17 }
  0x2d   : > { %p49_p2 = scmp.ne.s32.totalorder %s3710_s17, %s3706_s16  ;;  %p50_p4 = scmp.eq.s32.totalorder %s3722_s20, 0 }
  0x2e   : > { %s5247_s5 = smov (%p35_p1, %s33_s5), 0  ;;  %p5155_p8 = scmp.ne.s32.totalorder %s5149_s24, 0 }
  0x2f   : > { %p3848_p6 = por %p50_p4, %p49_p2  ;;  %s37_s30 = ssub.s32 %s3718_s19, %s5247_s5 }
  0x30   : > { %p3854_p10 = por %p5155_p8, %p49_p2  ;;  %p3312_p12 = scmp.lt.s32.totalorder %s3722_s20, 2 }
  0x31   : > { %p40_p11 = scmp.eq.s32.totalorder %s37_s30, 0  ;;  %s189_s29 = sand.u32 1, %s3710_s17  }
  0x32   : > { %s2959_s9 = sshll.u32 %s189_s29, 9  ;;  %s3160_s11 = sshll.u32 %s3718_s19, 13 }
  0x33   : > { %s3863_s10 = scalar_select %p40_p11, %s3710_s17, %s42_s6  }
  0x34   : > { %s3869_s14 = scalar_lea.hbm %s5099_s0, %s3160_s11  ;;  %s193_s24 = scalar_lea.vmem [#allocation2], %s2959_s9 }
  0x35   : > { %s203_s21 = sshll.u32 %s193_s24, 4  ;;  %p3875_p13 = pnand %p3312_p12, %p3848_p6  ;;  %s3871_s21 = int_to_ptr.vmem [resolvable:$true] %s203_s21 }
  0x36   : > { %s3879_s28 = scalar_lea.sflag [#allocation3], %s189_s29  ;;  %s3606_s6 = scalar_lea.hbm %s3869_s14, 8192 }
  0x37   : > { %p3607_p0 = scmp.ne.s32.totalorder %s3869_s14, %s3606_s6  ;;  %p3608_p3 = pneg %p3875_p13 }
  0x38   : > { %s3611_s7 = scalar_lea.hbm %s5099_s0, 16384  ;;  %p3612_p9 = scmp.lt.u32.totalorder %s3869_s14, %s5099_s0 }
  0x39   : > { %p3609_p5 = pnand %p3608_p3, %p3607_p0  ;;  %p3613_p1 = scmp.lt.u32.totalorder %s3611_s7, %s3606_s6 }
  0x3a   : > { %p3615_p4 = scmp.lt.u32.totalorder %s3606_s6, %s3869_s14 }
  0x3b   : > { %p3610_p7 = pneg %p3609_p5  ;;  %p3614_p2 = por %p3613_p1, %p3612_p9 }
  0x3d   : > { %p3616_p6 = por %p3615_p4, %p3614_p2 }
  0x3f   : > { %p3617_p8 = pnand %p3616_p6, %p3610_p7 }
  0x41   : > { %3620 = shalt.err (!%p3617_p8)
}
  0x42   : > { %s3621_s29 = scalar_lea.vmem %s3871_s21, 8192  ;;  %s3727_s13 = smov [#allocation2]  }
  0x43   : > { %p3622_p12 = scmp.ne.s32.totalorder %s3871_s21, %s3621_s29  ;;  %s3626_s24 = sshll.u32 %s3727_s13, 4  ;;  %s3627_s24 = int_to_ptr.vmem [resolvable:$false] %s3626_s24 }
  0x44   : > { %s3628_s30 = scalar_lea.vmem %s3627_s24, 16384  ;;  %p3629_p5 = scmp.lt.s32.totalorder %s3871_s21, %s3627_s24 }
  0x45   : > { %p3624_p11 = pnand %p3622_p12, %p3608_p3  ;;  %p3630_p9 = scmp.lt.s32.totalorder %s3628_s30, %s3621_s29 }
  0x47   : > { %p3625_p0 = pneg %p3624_p11  ;;  %p3631_p1 = por %p3630_p9, %p3629_p5 }
  0x49   : > { %p3632_p2 = pnand %p3631_p1, %p3625_p0 }
  0x4b   : > { %3635 = shalt.err (!%p3632_p2)
}
  0x4c   : > { %s3728_s6 = smov 256   ;;  %s3729_s9 = smov 16  }
  0x4d   : > { %3306 = dma.hbm_to_vmem [thread:$0]  (!%p3875_p13), %s3869_s14, 8192, %s3871_s21, %s3879_s28, %s3728_s6, %s3728_s6, %s3729_s9  }
  0x4e   : > { %p5158_p3 = scmp.ne.s32.totalorder %s5152_s27, 0 }
  0x50   : > { %215 = sbr.rel (%p5158_p3) target bundleno = 849 (0x351), region = 36 }
  0x57   : > { %s3910_s7 = sand.u32 1, %s3706_s16   ;;  %p5159_p7 = scmp.ne.s32.totalorder %s5150_s25, 0 }
  0x58   : > { %s2963_s11 = sshll.u32 %s3910_s7, 9  ;;  %s218_s12 = scalar_lea.sflag [#allocation3], %s3910_s7 }
  0x59   : > { %s3914_s29 = scalar_lea.vmem [#allocation2], %s2963_s11 }
  0x5a   : > { %3689 = dma.done.wait (%p5159_p7), %s218_s12, 8192  }
  0x5b   : > { %3691 = vsyncadd (%p5159_p7), %s218_s12, 4294959104  ;;  %p5160_p13 = scmp.ne.s32.totalorder %s5148_s23, 0 }
  0x5d   : > { %3693 = dma.done.wait (%p5160_p13), [#allocation6], 12288  }
  0x5e   : > { %3695 = vsyncadd (%p5160_p13), [#allocation6], 4294955008  ;;  %v3925_v0 = vld [vmem:[%s3914_s29] sm:$0xff]  ;;  %v3928_v1 = vld [vmem:[%s3914_s29 + $0x8] sm:$0xff]  ;;  %s3289_s21 = smul.u32 768, %s3910_s7  ;;  %s3730_s11 = smov [#allocation7]  }
  0x5f   : > { %v3931_v2 = vld [vmem:[%s3914_s29 + $0x100] sm:$0xff]  ;;  %v316_v3 = vadd.f32 %v3928_v1, %v3925_v0  ;;  %v3936_v4 = vld [vmem:[%s3914_s29 + $0x108] sm:$0xff]  ;;  %v3939_v5 = vld [vmem:[%s3914_s29 + $0x10] sm:$0xff]  ;;  %s3290_s28 = smul.u32 12288, %s3714_s18  ;;  %s2841_s18 = scalar_lea.sflag [#allocation4], %s3910_s7 }
  0x60   : > { %v3942_v6 = vld [vmem:[%s3914_s29 + $0x18] sm:$0xff]  ;;  %v364_v7 = vadd.f32 %v3936_v4, %v3931_v2  ;;  %v3947_v8 = vld [vmem:[%s3914_s29 + $0x110] sm:$0xff]  ;;  %v3957_v12 = vld [vmem:[%s3914_s29 + $0x20] sm:$0xff]  ;;  %s4945_s22 = scalar_lea.vmem [#allocation7], %s3289_s21  ;;  %s3640_s12 = sshll.u32 %s3730_s11, 4  ;;  %s3641_s12 = int_to_ptr.vmem [resolvable:$false] %s3640_s12 }
  0x61   : > { %v3950_v9 = vld [vmem:[%s3914_s29 + $0x118] sm:$0xff]  ;;  %317 = vadd.xlane.f32.xlu0 %v316_v3  ;;  %v319_v10 = vadd.f32 %v3942_v6, %v3939_v5  ;;  %v3960_v13 = vld [vmem:[%s3914_s29 + $0x28] sm:$0xff]  ;;  %v3963_v14 = vld [vmem:[%s3914_s29 + $0x30] sm:$0xff]  ;;  %s2857_s13 = sshll.u32 %s4945_s22, 4  ;;  %s5046_s6 = scalar_lea.hbm %s5103_s4, %s3290_s28  ;;  %s5049_s13 = int_to_ptr.vmem [resolvable:$true] %s2857_s13 }
  0x62   : > { %365 = vadd.xlane.f32.xlu1 %v364_v7  ;;  %v367_v11 = vadd.f32 %v3950_v9, %v3947_v8  ;;  %v3966_v15 = vld [vmem:[%s3914_s29 + $0x38] sm:$0xff]  ;;  %v322_v16 = vadd.f32 %v3960_v13, %v3957_v12  ;;  %v3973_v18 = vld [vmem:[%s3914_s29 + $0x120] sm:$0xff]  ;;  %v3976_v19 = vld [vmem:[%s3914_s29 + $0x128] sm:$0xff]  ;;  %s3636_s9 = scalar_lea.vmem %s5049_s13, 12288  ;;  %p3643_p12 = scmp.lt.s32.totalorder %s5049_s13, %s3641_s12 }
  0x63   : > { %v325_v17 = vadd.f32 %v3966_v15, %v3963_v14  ;;  %v3979_v20 = vld [vmem:[%s3914_s29 + $0x130] sm:$0xff]  ;;  %v3982_v21 = vld [vmem:[%s3914_s29 + $0x138] sm:$0xff]  ;;  %v370_v22 = vadd.f32 %v3976_v19, %v3973_v18  ;;  %v3989_v24 = vld [vmem:[%s3914_s29 + $0x40] sm:$0xff]  ;;  %p3637_p4 = scmp.ne.s32.totalorder %s5049_s13, %s3636_s9 }
  0x64   : > { %v373_v23 = vadd.f32 %v3982_v21, %v3979_v20  ;;  %v3992_v25 = vld [vmem:[%s3914_s29 + $0x48] sm:$0xff]  ;;  %v3995_v26 = vld [vmem:[%s3914_s29 + $0x50] sm:$0xff]  ;;  %v3998_v27 = vld [vmem:[%s3914_s29 + $0x58] sm:$0xff] }
  0x65   : > { %320 = vadd.xlane.f32.xlu0 %v319_v10  ;;  %v328_v28 = vadd.f32 %v3992_v25, %v3989_v24  ;;  %v331_v29 = vadd.f32 %v3998_v27, %v3995_v26  ;;  %v4005_v30 = vld [vmem:[%s3914_s29 + $0x140] sm:$0xff]  ;;  %v4008_v31 = vld [vmem:[%s3914_s29 + $0x148] sm:$0xff]  ;;  %v4011_v32 = vld [vmem:[%s3914_s29 + $0x150] sm:$0xff]  ;;  %p3638_p6 = pnand %p3637_p4, %p3854_p10 }
  0x66   : > { %368 = vadd.xlane.f32.xlu1 %v367_v11  ;;  %v4014_v33 = vld [vmem:[%s3914_s29 + $0x158] sm:$0xff]  ;;  %v376_v34 = vadd.f32 %v4008_v31, %v4005_v30  ;;  %v4021_v36 = vld [vmem:[%s3914_s29 + $0x60] sm:$0xff]  ;;  %v4024_v37 = vld [vmem:[%s3914_s29 + $0x68] sm:$0xff] }
  0x67   : > { %v379_v35 = vadd.f32 %v4014_v33, %v4011_v32  ;;  %v4027_v38 = vld [vmem:[%s3914_s29 + $0x70] sm:$0xff]  ;;  %v4030_v39 = vld [vmem:[%s3914_s29 + $0x78] sm:$0xff]  ;;  %v4033_v40 = vld [vmem:[%s3914_s29 + $0x160] sm:$0xff]  ;;  %v334_v42 = vadd.f32 %v4024_v37, %v4021_v36  ;;  %p3639_p8 = pneg %p3638_p6 }
  0x68   : > { %v4036_v41 = vld [vmem:[%s3914_s29 + $0x168] sm:$0xff]  ;;  %v4041_v43 = vld [vmem:[%s3914_s29 + $0x170] sm:$0xff]  ;;  %v4044_v44 = vld [vmem:[%s3914_s29 + $0x178] sm:$0xff]  ;;  %v337_v45 = vadd.f32 %v4030_v39, %v4027_v38 }
  0x69   : > { %323 = vadd.xlane.f32.xlu0 %v322_v16  ;;  %v4049_v46 = vld [vmem:[%s3914_s29 + $0x80] sm:$0xff]  ;;  %v4052_v47 = vld [vmem:[%s3914_s29 + $0x88] sm:$0xff]  ;;  %v382_v48 = vadd.f32 %v4036_v41, %v4033_v40  ;;  %v4057_v49 = vld [vmem:[%s3914_s29 + $0x90] sm:$0xff]  ;;  %v385_v51 = vadd.f32 %v4044_v44, %v4041_v43 }
  0x6a   : > { %326 = vadd.xlane.f32.xlu1 %v325_v17  ;;  %v4060_v50 = vld [vmem:[%s3914_s29 + $0x98] sm:$0xff]  ;;  %v4065_v52 = vld [vmem:[%s3914_s29 + $0x180] sm:$0xff]  ;;  %v4068_v53 = vld [vmem:[%s3914_s29 + $0x188] sm:$0xff]  ;;  %v340_v54 = vadd.f32 %v4052_v47, %v4049_v46 }
  0x6b   : > { %v4073_v55 = vld [vmem:[%s3914_s29 + $0x190] sm:$0xff]  ;;  %v4076_v56 = vld [vmem:[%s3914_s29 + $0x198] sm:$0xff]  ;;  %v343_v57 = vadd.f32 %v4060_v50, %v4057_v49  ;;  %v4081_v58 = vld [vmem:[%s3914_s29 + $0xa0] sm:$0xff]  ;;  %v388_v60 = vadd.f32 %v4068_v53, %v4065_v52 }
  0x6c   : > { %v4084_v59 = vld [vmem:[%s3914_s29 + $0xa8] sm:$0xff]  ;;  %v4089_v61 = vld [vmem:[%s3914_s29 + $0xb0] sm:$0xff]  ;;  %v4092_v62 = vld [vmem:[%s3914_s29 + $0xb8] sm:$0xff]  ;;  %v391_v63 = vadd.f32 %v4076_v56, %v4073_v55 }
  0x6d   : > { %371 = vadd.xlane.f32.xlu0 %v370_v22  ;;  %v4097_v3 = vld [vmem:[%s3914_s29 + $0x1a0] sm:$0xff]  ;;  %v4100_v7 = vld [vmem:[%s3914_s29 + $0x1a8] sm:$0xff]  ;;  %v346_v10 = vadd.f32 %v4084_v59, %v4081_v58  ;;  %v4105_v11 = vld [vmem:[%s3914_s29 + $0x1b0] sm:$0xff]  ;;  %v349_v17 = vadd.f32 %v4092_v62, %v4089_v61 }
  0x6e   : > { %374 = vadd.xlane.f32.xlu1 %v373_v23  ;;  %v4108_v16 = vld [vmem:[%s3914_s29 + $0x1b8] sm:$0xff]  ;;  %v4113_v22 = vld [vmem:[%s3914_s29 + $0xc0] sm:$0xff]  ;;  %v4116_v23 = vld [vmem:[%s3914_s29 + $0xc8] sm:$0xff] }
  0x6f   : > { %5161 = vst [vmem:[#allocation11_spill] sm:$0xff] %v4116_v23 }
  0x71   : > { %329 = vadd.xlane.f32.xlu0 %v328_v28  ;;  %v394_v28 = vadd.f32 %v4100_v7, %v4097_v3 }
  0x72   : > { %332 = vadd.xlane.f32.xlu1 %v331_v29  ;;  %v4121_v29 = vld [vmem:[%s3914_s29 + $0xd0] sm:$0xff] }
  0x73   : > { %5162 = vst [vmem:[#allocation12_spill] sm:$0xff] %v4121_v29 }
  0x75   : > { %377 = vadd.xlane.f32.xlu0 %v376_v34  ;;  %v4124_v34 = vld [vmem:[%s3914_s29 + $0xd8] sm:$0xff] }
  0x76   : > { %380 = vadd.xlane.f32.xlu1 %v379_v35  ;;  %5163 = vst [vmem:[#allocation13_spill] sm:$0xff] %v4124_v34  ;;  %v397_v35 = vadd.f32 %v4108_v16, %v4105_v11 }
  0x79   : > { %335 = vadd.xlane.f32.xlu0 %v334_v42  ;;  %v4129_v42 = vld [vmem:[%s3914_s29 + $0x1c0] sm:$0xff] }
  0x7a   : > { %338 = vadd.xlane.f32.xlu1 %v337_v45  ;;  %v4132_v45 = vld [vmem:[%s3914_s29 + $0x1c8] sm:$0xff] }
  0x7b   : > { %5164 = vst [vmem:[#allocation14_spill] sm:$0xff] %v4132_v45 }
  0x7d   : > { %383 = vadd.xlane.f32.xlu0 %v382_v48  ;;  %v352_v48 = vadd.f32 %v4116_v23, %v4113_v22  ;;  %v4168_v23 = vld [vmem:[%s3914_s29 + $0x1e8] sm:$0xff] }
  0x7e   : > { %386 = vadd.xlane.f32.xlu1 %v385_v51  ;;  %v4137_v51 = vld [vmem:[%s3914_s29 + $0x1d0] sm:$0xff]  ;;  %5170 = vst [vmem:[#allocation20_spill] sm:$0xff] %v4168_v23 }
  0x81   : > { %341 = vadd.xlane.f32.xlu0 %v340_v54  ;;  %v4140_v54 = vld [vmem:[%s3914_s29 + $0x1d8] sm:$0xff] }
  0x82   : > { %344 = vadd.xlane.f32.xlu1 %v343_v57  ;;  %5165 = vst [vmem:[#allocation15_spill] sm:$0xff] %v4140_v54  ;;  %v355_v57 = vadd.f32 %v4124_v34, %v4121_v29 }
  0x85   : > { %389 = vadd.xlane.f32.xlu0 %v388_v60  ;;  %v4145_v60 = vld [vmem:[%s3914_s29 + $0xe0] sm:$0xff] }
  0x86   : > { %392 = vadd.xlane.f32.xlu1 %v391_v63  ;;  %v4148_v63 = vld [vmem:[%s3914_s29 + $0xe8] sm:$0xff] }
  0x87   : > { %5166 = vst [vmem:[#allocation16_spill] sm:$0xff] %v4148_v63  ;;  %v358_v34 = vadd.f32 %v4148_v63, %v4145_v60  ;;  %v3375_v63 = vld [vmem:[#allocation5 + $0x30] ss:$24 sps:$4 sm:$0xff]  }
  0x89   : > { %347 = vadd.xlane.f32.xlu0 %v346_v10  ;;  %v400_v10 = vadd.f32 %v4132_v45, %v4129_v42  ;;  %v4174_v45 = vld [vmem:[%s3914_s29 + $0x1f8] sm:$0xff] }
  0x8a   : > { %350 = vadd.xlane.f32.xlu1 %v349_v17  ;;  %v403_v17 = vadd.f32 %v4140_v54, %v4137_v51  ;;  %5172 = vst [vmem:[#allocation22_spill] sm:$0xff] %v4174_v45 }
  0x8d   : > { %395 = vadd.xlane.f32.xlu0 %v394_v28  ;;  %v4155_v28 = vld [vmem:[%s3914_s29 + $0xf0] sm:$0xff] }
  0x8e   : > { %398 = vadd.xlane.f32.xlu1 %v397_v35  ;;  %5167 = vst [vmem:[#allocation17_spill] sm:$0xff] %v4155_v28  ;;  %v4158_v35 = vld [vmem:[%s3914_s29 + $0xf8] sm:$0xff] }
  0x8f   : > { %5168 = vst [vmem:[#allocation18_spill] sm:$0xff] %v4158_v35  ;;  %v361_v29 = vadd.f32 %v4158_v35, %v4155_v28  ;;  %v3372_v35 = vld [vmem:[#allocation5] ss:$24 sps:$4 sm:$0xff]   ;;  %v3373_v28 = vld [vmem:[#allocation5 + $0x34] ss:$24 sps:$4 sm:$0xff]  }
  0x91   : > { %353 = vadd.xlane.f32.xlu0 %v352_v48  ;;  %v4165_v48 = vld [vmem:[%s3914_s29 + $0x1e0] sm:$0xff] }
  0x92   : > { %356 = vadd.xlane.f32.xlu1 %v355_v57  ;;  %5169 = vst [vmem:[#allocation19_spill] sm:$0xff] %v4165_v48  ;;  %v4171_v57 = vld [vmem:[%s3914_s29 + $0x1f0] sm:$0xff]  ;;  %v406_v54 = vadd.f32 %v4168_v23, %v4165_v48  ;;  %v3378_v23 = vld [vmem:[#allocation5 + $0x60] ss:$24 sps:$4 sm:$0xff]   ;;  %s3642_s29 = scalar_lea.vmem %s3641_s12, 24576 }
  0x93   : > { %5171 = vst [vmem:[#allocation21_spill] sm:$0xff] %v4171_v57  ;;  %p3644_p11 = scmp.lt.s32.totalorder %s3642_s29, %s3636_s9 }
  0x95   : > { %401 = vadd.xlane.f32.xlu0 %v400_v10  ;;  %v409_v10 = vadd.f32 %v4174_v45, %v4171_v57  ;;  %p3645_p0 = por %p3644_p11, %p3643_p12 }
  0x96   : > { %404 = vadd.xlane.f32.xlu1 %v403_v17  ;;  %v3370_v17 = vld [vmem:[#allocation5 + $0x4] ss:$24 sps:$4 sm:$0xff]  }
  0x97   : > { %1589 = vmatprep.subr.bf16.mxu0 %v3370_v17  ;;  %3257 = vmatprep.subr.bf16.mxu1 %v3370_v17  ;;  %v3384_v17 = vld [vmem:[#allocation5 + $0xc0] ss:$24 sps:$4 sm:$0xff]   ;;  %p3646_p5 = pnand %p3645_p0, %p3639_p8 }
  0x98   : > { %1590 = vmatpush1.bf16.msra.mxu0 %v3372_v35  ;;  %3273 = vmatpush1.bf16.msra.mxu1 %v3372_v35  ;;  %v3385_v35 = vld [vmem:[#allocation5 + $0xf4] ss:$24 sps:$4 sm:$0xff]  }
  0x99   : > { %359 = vadd.xlane.f32.xlu0 %v358_v34  ;;  %1591 = vmatprep.subr.bf16.mxu0 %v3373_v28  ;;  %v3376_v34 = vld [vmem:[#allocation5 + $0x64] ss:$24 sps:$4 sm:$0xff]  }
  0x9a   : > { %362 = vadd.xlane.f32.xlu1 %v361_v29  ;;  %3258 = vmatprep.subr.bf16.mxu1 %v3373_v28  ;;  %v3379_v29 = vld [vmem:[#allocation5 + $0x94] ss:$24 sps:$4 sm:$0xff]   ;;  %v3387_v28 = vld [vmem:[#allocation5 + $0xf0] ss:$24 sps:$4 sm:$0xff]  }
  0x9c   : > { %1592 = vmatpush1.bf16.msra.mxu0 %v3375_v63  ;;  %3274 = vmatpush1.bf16.msra.mxu1 %v3375_v63  ;;  %v3388_v63 = vld [vmem:[#allocation5 + $0x124] ss:$24 sps:$4 sm:$0xff]  }
  0x9d   : > { %407 = vadd.xlane.f32.xlu0 %v406_v54  ;;  %1593 = vmatprep.subr.bf16.mxu0 %v3376_v34  ;;  %v3381_v54 = vld [vmem:[#allocation5 + $0x90] ss:$24 sps:$4 sm:$0xff]  }
  0x9e   : > { %410 = vadd.xlane.f32.xlu1 %v409_v10  ;;  %3259 = vmatprep.subr.bf16.mxu1 %v3376_v34  ;;  %v3382_v10 = vld [vmem:[#allocation5 + $0xc4] ss:$24 sps:$4 sm:$0xff]   ;;  %v3390_v34 = vld [vmem:[#allocation5 + $0x120] ss:$24 sps:$4 sm:$0xff]  }
  0xa0   : > { %1594 = vmatpush1.bf16.msra.mxu0 %v3378_v23  ;;  %3275 = vmatpush1.bf16.msra.mxu1 %v3378_v23  ;;  %v3391_v23 = vld [vmem:[#allocation5 + $0x154] ss:$24 sps:$4 sm:$0xff]  }
  0xa1   : > { %1595 = vmatprep.subr.bf16.mxu0 %v3379_v29  ;;  %3260 = vmatprep.subr.bf16.mxu1 %v3379_v29  ;;  %v3393_v29 = vld [vmem:[#allocation5 + $0x150] ss:$24 sps:$4 sm:$0xff]  }
  0xa4   : > { %1596 = vmatpush1.bf16.msra.mxu0 %v3381_v54  ;;  %3276 = vmatpush1.bf16.msra.mxu1 %v3381_v54  ;;  %v3394_v54 = vld [vmem:[#allocation5 + $0x184] ss:$24 sps:$4 sm:$0xff]  }
  0xa5   : > { %1597 = vmatprep.subr.bf16.mxu0 %v3382_v10  ;;  %3261 = vmatprep.subr.bf16.mxu1 %v3382_v10  ;;  %v3396_v10 = vld [vmem:[#allocation5 + $0x180] ss:$24 sps:$4 sm:$0xff]  }
  0xa8   : > { %1598 = vmatpush1.bf16.msra.mxu0 %v3384_v17  ;;  %3277 = vmatpush1.bf16.msra.mxu1 %v3384_v17 }
  0xa9   : > { %1599 = vmatprep.subr.bf16.mxu0 %v3385_v35  ;;  %3262 = vmatprep.subr.bf16.mxu1 %v3385_v35 }
  0xac   : > { %1600 = vmatpush1.bf16.msra.mxu0 %v3387_v28  ;;  %3278 = vmatpush1.bf16.msra.mxu1 %v3387_v28 }
  0xad   : > { %1601 = vmatprep.subr.bf16.mxu0 %v3388_v63  ;;  %3263 = vmatprep.subr.bf16.mxu1 %v3388_v63 }
  0xb0   : > { %1602 = vmatpush1.bf16.msra.mxu0 %v3390_v34  ;;  %3279 = vmatpush1.bf16.msra.mxu1 %v3390_v34 }
  0xb1   : > { %1603 = vmatprep.subr.bf16.mxu0 %v3391_v23  ;;  %3264 = vmatprep.subr.bf16.mxu1 %v3391_v23 }
  0xb4   : > { %1604 = vmatpush1.bf16.msra.mxu0 %v3393_v29  ;;  %3280 = vmatpush1.bf16.msra.mxu1 %v3393_v29 }
  0xb5   : > { %1605 = vmatprep.subr.bf16.mxu0 %v3394_v54  ;;  %3265 = vmatprep.subr.bf16.mxu1 %v3394_v54 }
  0xb8   : > { %1606 = vmatpush1.bf16.msra.mxu0 %v3396_v10  ;;  %3281 = vmatpush1.bf16.msra.mxu1 %v3396_v10 }
  0xee   : > { %v318_v17 = vpop.xlane.xlu0 %317 }
  0xef   : > { %v413_v35 = vmul.f32 0.00390625, %v318_v17  ;;  %v366_v28 = vpop.xlane.xlu1 %365 }
  0xf0   : > { %v429_v45 = vmul.f32 0.00390625, %v366_v28 }
  0xf1   : > { %v4181_v63 = vsub.f32 %v3925_v0, %v413_v35  ;;  %v4184_v34 = vsub.f32 %v3928_v1, %v413_v35 }
  0xf2   : > { %v4187_v23 = vsub.f32 %v3931_v2, %v429_v45  ;;  %v4190_v29 = vsub.f32 %v3936_v4, %v429_v45  ;;  %v321_v57 = vpop.xlane.xlu0 %320 }
  0xf3   : > { %5173 = vst [vmem:[#allocation23_spill] sm:$0xff] %v4181_v63  ;;  %5174 = vst [vmem:[#allocation24_spill] sm:$0xff] %v4184_v34  ;;  %v414_v54 = vmul.f32 0.00390625, %v321_v57  ;;  %v369_v48 = vpop.xlane.xlu1 %368  ;;  %v509_v10 = vmul.f32 %v4181_v63, %v4181_v63  ;;  %v510_v17 = vmul.f32 %v4184_v34, %v4184_v34 }
  0xf4   : > { %5175 = vst [vmem:[#allocation25_spill] sm:$0xff] %v4187_v23  ;;  %5176 = vst [vmem:[#allocation26_spill] sm:$0xff] %v4190_v29  ;;  %v430_v0 = vmul.f32 0.00390625, %v369_v48  ;;  %v541_v1 = vmul.f32 %v4187_v23, %v4187_v23  ;;  %v542_v2 = vmul.f32 %v4190_v29, %v4190_v29 }
  0xf5   : > { %v4201_v35 = vsub.f32 %v3939_v5, %v414_v54  ;;  %v4204_v4 = vsub.f32 %v3942_v6, %v414_v54  ;;  %v573_v45 = vadd.f32 %v510_v17, %v509_v10 }
  0xf6   : > { %v4207_v57 = vsub.f32 %v3947_v8, %v430_v0  ;;  %v4210_v28 = vsub.f32 %v3950_v9, %v430_v0  ;;  %v324_v48 = vpop.xlane.xlu0 %323  ;;  %v621_v34 = vadd.f32 %v542_v2, %v541_v1 }
  0xf7   : > { %v415_v63 = vmul.f32 0.00390625, %v324_v48  ;;  %574 = vadd.xlane.f32.xlu0 %v573_v45  ;;  %v327_v23 = vpop.xlane.xlu1 %326  ;;  %v511_v29 = vmul.f32 %v4201_v35, %v4201_v35  ;;  %v512_v5 = vmul.f32 %v4204_v4, %v4204_v4 }
  0xf8   : > { %v416_v6 = vmul.f32 0.00390625, %v327_v23  ;;  %v543_v54 = vmul.f32 %v4207_v57, %v4207_v57  ;;  %v544_v8 = vmul.f32 %v4210_v28, %v4210_v28 }
  0xf9   : > { %v4221_v9 = vsub.f32 %v3957_v12, %v415_v63  ;;  %v4224_v10 = vsub.f32 %v3960_v13, %v415_v63  ;;  %v576_v17 = vadd.f32 %v512_v5, %v511_v29 }
  0xfa   : > { %v4227_v0 = vsub.f32 %v3963_v14, %v416_v6  ;;  %v4230_v1 = vsub.f32 %v3966_v15, %v416_v6  ;;  %v372_v23 = vpop.xlane.xlu0 %371  ;;  %v624_v48 = vadd.f32 %v544_v8, %v543_v54 }
  0xfb   : > { %v431_v2 = vmul.f32 0.00390625, %v372_v23  ;;  %622 = vadd.xlane.f32.xlu0 %v621_v34  ;;  %577 = vadd.xlane.f32.xlu1 %v576_v17  ;;  %v375_v45 = vpop.xlane.xlu1 %374  ;;  %v513_v12 = vmul.f32 %v4221_v9, %v4221_v9  ;;  %v514_v13 = vmul.f32 %v4224_v10, %v4224_v10 }
  0xfc   : > { %v432_v63 = vmul.f32 0.00390625, %v375_v45  ;;  %v515_v14 = vmul.f32 %v4227_v0, %v4227_v0  ;;  %v516_v15 = vmul.f32 %v4230_v1, %v4230_v1 }
  0xfd   : > { %v4241_v29 = vsub.f32 %v3973_v18, %v431_v2  ;;  %v4244_v34 = vsub.f32 %v3976_v19, %v431_v2  ;;  %v579_v5 = vadd.f32 %v514_v13, %v513_v12 }
  0xfe   : > { %v4247_v6 = vsub.f32 %v3979_v20, %v432_v63  ;;  %v4250_v54 = vsub.f32 %v3982_v21, %v432_v63  ;;  %v330_v8 = vpop.xlane.xlu0 %329  ;;  %v582_v45 = vadd.f32 %v516_v15, %v515_v14 }
  0xff   : > { %v417_v17 = vmul.f32 0.00390625, %v330_v8  ;;  %625 = vadd.xlane.f32.xlu1 %v624_v48  ;;  %580 = vadd.xlane.f32.xlu0 %v579_v5  ;;  %v333_v23 = vpop.xlane.xlu1 %332  ;;  %v545_v18 = vmul.f32 %v4241_v29, %v4241_v29  ;;  %v546_v19 = vmul.f32 %v4244_v34, %v4244_v34 }
 0x100   : > { %v418_v2 = vmul.f32 0.00390625, %v333_v23  ;;  %v547_v20 = vmul.f32 %v4247_v6, %v4247_v6  ;;  %v548_v21 = vmul.f32 %v4250_v54, %v4250_v54 }
 0x101   : > { %v4261_v12 = vsub.f32 %v3989_v24, %v417_v17  ;;  %v4264_v48 = vsub.f32 %v3992_v25, %v417_v17  ;;  %v627_v13 = vadd.f32 %v546_v19, %v545_v18  ;;  %v3397_v17 = vld [vmem:[#allocation5 + $0x1b4] ss:$24 sps:$4 sm:$0xff]   ;;  %v3399_v19 = vld [vmem:[#allocation5 + $0x1b0] ss:$24 sps:$4 sm:$0xff]  }
 0x102   : > { %v4267_v63 = vsub.f32 %v3995_v26, %v418_v2  ;;  %v4270_v14 = vsub.f32 %v3998_v27, %v418_v2  ;;  %v378_v15 = vpop.xlane.xlu0 %377  ;;  %v630_v23 = vadd.f32 %v548_v21, %v547_v20  ;;  %1607 = vmatprep.subr.bf16.mxu0 %v3397_v17  ;;  %3266 = vmatprep.subr.bf16.mxu1 %v3397_v17 }
 0x103   : > { %v433_v5 = vmul.f32 0.00390625, %v378_v15  ;;  %583 = vadd.xlane.f32.xlu1 %v582_v45  ;;  %628 = vadd.xlane.f32.xlu0 %v627_v13  ;;  %v381_v8 = vpop.xlane.xlu1 %380  ;;  %v517_v24 = vmul.f32 %v4261_v12, %v4261_v12  ;;  %v518_v25 = vmul.f32 %v4264_v48, %v4264_v48 }
 0x104   : > { %5177 = vst [vmem:[#allocation27_spill] sm:$0xff] %v4267_v63  ;;  %v434_v18 = vmul.f32 0.00390625, %v381_v8  ;;  %v519_v26 = vmul.f32 %v4267_v63, %v4267_v63  ;;  %v520_v27 = vmul.f32 %v4270_v14, %v4270_v14  ;;  %1608 = vmatpush1.bf16.msra.mxu0 %v3399_v19  ;;  %3282 = vmatpush1.bf16.msra.mxu1 %v3399_v19 }
 0x105   : > { %v4281_v45 = vsub.f32 %v4005_v30, %v433_v5  ;;  %v4284_v2 = vsub.f32 %v4008_v31, %v433_v5  ;;  %v585_v20 = vadd.f32 %v518_v25, %v517_v24  ;;  %v3400_v25 = vld [vmem:[#allocation5 + $0x1e4] ss:$24 sps:$4 sm:$0xff]  }
 0x106   : > { %v4287_v21 = vsub.f32 %v4011_v32, %v434_v18  ;;  %v4290_v13 = vsub.f32 %v4014_v33, %v434_v18  ;;  %v336_v15 = vpop.xlane.xlu0 %335  ;;  %v588_v63 = vadd.f32 %v520_v27, %v519_v26  ;;  %v3402_v26 = vld [vmem:[#allocation5 + $0x1e0] ss:$24 sps:$4 sm:$0xff]   ;;  %1609 = vmatprep.subr.bf16.mxu0 %v3400_v25  ;;  %3267 = vmatprep.subr.bf16.mxu1 %v3400_v25 }
 0x107   : > { %v419_v8 = vmul.f32 0.00390625, %v336_v15  ;;  %631 = vadd.xlane.f32.xlu1 %v630_v23  ;;  %586 = vadd.xlane.f32.xlu0 %v585_v20  ;;  %v339_v30 = vpop.xlane.xlu1 %338  ;;  %v549_v31 = vmul.f32 %v4281_v45, %v4281_v45  ;;  %v550_v5 = vmul.f32 %v4284_v2, %v4284_v2 }
 0x108   : > { %v420_v24 = vmul.f32 0.00390625, %v339_v30  ;;  %v551_v32 = vmul.f32 %v4287_v21, %v4287_v21  ;;  %v552_v33 = vmul.f32 %v4290_v13, %v4290_v13  ;;  %1610 = vmatpush1.bf16.msra.mxu0 %v3402_v26  ;;  %3283 = vmatpush1.bf16.msra.mxu1 %v3402_v26 }
 0x109   : > { %v4301_v17 = vsub.f32 %v4021_v36, %v419_v8  ;;  %v4304_v23 = vsub.f32 %v4024_v37, %v419_v8  ;;  %v633_v18 = vadd.f32 %v550_v5, %v549_v31  ;;  %v3403_v5 = vld [vmem:[#allocation5 + $0x214] ss:$24 sps:$4 sm:$0xff]  }
 0x10a   : > { %v4307_v27 = vsub.f32 %v4027_v38, %v420_v24  ;;  %v4310_v19 = vsub.f32 %v4030_v39, %v420_v24  ;;  %v384_v20 = vpop.xlane.xlu0 %383  ;;  %v636_v36 = vadd.f32 %v552_v33, %v551_v32  ;;  %v3405_v33 = vld [vmem:[#allocation5 + $0x210] ss:$24 sps:$4 sm:$0xff]   ;;  %1611 = vmatprep.subr.bf16.mxu0 %v3403_v5  ;;  %3268 = vmatprep.subr.bf16.mxu1 %v3403_v5 }
 0x10b   : > { %v435_v15 = vmul.f32 0.00390625, %v384_v20  ;;  %589 = vadd.xlane.f32.xlu1 %v588_v63  ;;  %634 = vadd.xlane.f32.xlu0 %v633_v18  ;;  %v387_v30 = vpop.xlane.xlu1 %386  ;;  %v521_v37 = vmul.f32 %v4301_v17, %v4301_v17  ;;  %v522_v8 = vmul.f32 %v4304_v23, %v4304_v23 }
 0x10c   : > { %v436_v31 = vmul.f32 0.00390625, %v387_v30  ;;  %v523_v38 = vmul.f32 %v4307_v27, %v4307_v27  ;;  %v524_v39 = vmul.f32 %v4310_v19, %v4310_v19  ;;  %1612 = vmatpush1.bf16.msra.mxu0 %v3405_v33  ;;  %3284 = vmatpush1.bf16.msra.mxu1 %v3405_v33 }
 0x10d   : > { %v4321_v63 = vsub.f32 %v4033_v40, %v435_v15  ;;  %v4324_v24 = vsub.f32 %v4036_v41, %v435_v15  ;;  %v591_v32 = vadd.f32 %v522_v8, %v521_v37  ;;  %v3406_v8 = vld [vmem:[#allocation5 + $0x244] ss:$24 sps:$4 sm:$0xff]  }
 0x10e   : > { %v4327_v25 = vsub.f32 %v4041_v43, %v436_v31  ;;  %v4330_v18 = vsub.f32 %v4044_v44, %v436_v31  ;;  %v342_v20 = vpop.xlane.xlu0 %341  ;;  %v594_v40 = vadd.f32 %v524_v39, %v523_v38  ;;  %v3408_v39 = vld [vmem:[#allocation5 + $0x240] ss:$24 sps:$4 sm:$0xff]   ;;  %1613 = vmatprep.subr.bf16.mxu0 %v3406_v8  ;;  %3269 = vmatprep.subr.bf16.mxu1 %v3406_v8 }
 0x10f   : > { %v421_v30 = vmul.f32 0.00390625, %v342_v20  ;;  %637 = vadd.xlane.f32.xlu1 %v636_v36  ;;  %592 = vadd.xlane.f32.xlu0 %v591_v32  ;;  %v345_v26 = vpop.xlane.xlu1 %344  ;;  %v553_v41 = vmul.f32 %v4321_v63, %v4321_v63  ;;  %v554_v15 = vmul.f32 %v4324_v24, %v4324_v24 }
 0x110   : > { %v422_v37 = vmul.f32 0.00390625, %v345_v26  ;;  %v555_v43 = vmul.f32 %v4327_v25, %v4327_v25  ;;  %v556_v44 = vmul.f32 %v4330_v18, %v4330_v18  ;;  %1614 = vmatpush1.bf16.msra.mxu0 %v3408_v39  ;;  %3285 = vmatpush1.bf16.msra.mxu1 %v3408_v39 }
 0x111   : > { %v4341_v36 = vsub.f32 %v4049_v46, %v421_v30  ;;  %v4344_v31 = vsub.f32 %v4052_v47, %v421_v30  ;;  %v639_v38 = vadd.f32 %v554_v15, %v553_v41  ;;  %v3409_v15 = vld [vmem:[#allocation5 + $0x274] ss:$24 sps:$4 sm:$0xff]  }
 0x112   : > { %v4347_v5 = vsub.f32 %v4057_v49, %v422_v37  ;;  %v4350_v32 = vsub.f32 %v4060_v50, %v422_v37  ;;  %v390_v20 = vpop.xlane.xlu0 %389  ;;  %v642_v46 = vadd.f32 %v556_v44, %v555_v43  ;;  %v3411_v44 = vld [vmem:[#allocation5 + $0x270] ss:$24 sps:$4 sm:$0xff]   ;;  %1615 = vmatprep.subr.bf16.mxu0 %v3409_v15  ;;  %3270 = vmatprep.subr.bf16.mxu1 %v3409_v15 }
 0x113   : > { %v437_v26 = vmul.f32 0.00390625, %v390_v20  ;;  %595 = vadd.xlane.f32.xlu1 %v594_v40  ;;  %640 = vadd.xlane.f32.xlu0 %v639_v38  ;;  %v393_v33 = vpop.xlane.xlu1 %392  ;;  %v525_v47 = vmul.f32 %v4341_v36, %v4341_v36  ;;  %v526_v30 = vmul.f32 %v4344_v31, %v4344_v31 }
 0x114   : > { %v438_v41 = vmul.f32 0.00390625, %v393_v33  ;;  %v527_v49 = vmul.f32 %v4347_v5, %v4347_v5  ;;  %v528_v50 = vmul.f32 %v4350_v32, %v4350_v32  ;;  %1616 = vmatpush1.bf16.msra.mxu0 %v3411_v44  ;;  %3286 = vmatpush1.bf16.msra.mxu1 %v3411_v44 }
 0x115   : > { %v4361_v40 = vsub.f32 %v4065_v52, %v437_v26  ;;  %v4364_v37 = vsub.f32 %v4068_v53, %v437_v26  ;;  %v597_v43 = vadd.f32 %v526_v30, %v525_v47  ;;  %v3412_v30 = vld [vmem:[#allocation5 + $0x2a4] ss:$24 sps:$4 sm:$0xff]  }
 0x116   : > { %v4367_v8 = vsub.f32 %v4073_v55, %v438_v41  ;;  %v4370_v38 = vsub.f32 %v4076_v56, %v438_v41  ;;  %v348_v20 = vpop.xlane.xlu0 %347  ;;  %v600_v52 = vadd.f32 %v528_v50, %v527_v49  ;;  %v3414_v50 = vld [vmem:[#allocation5 + $0x2a0] ss:$24 sps:$4 sm:$0xff]   ;;  %1617 = vmatprep.subr.bf16.mxu0 %v3412_v30  ;;  %3271 = vmatprep.subr.bf16.mxu1 %v3412_v30 }
 0x117   : > { %v423_v33 = vmul.f32 0.00390625, %v348_v20  ;;  %643 = vadd.xlane.f32.xlu1 %v642_v46  ;;  %598 = vadd.xlane.f32.xlu0 %v597_v43  ;;  %v351_v39 = vpop.xlane.xlu1 %350  ;;  %v557_v53 = vmul.f32 %v4361_v40, %v4361_v40  ;;  %v558_v26 = vmul.f32 %v4364_v37, %v4364_v37 }
 0x118   : > { %v424_v47 = vmul.f32 0.00390625, %v351_v39  ;;  %v559_v55 = vmul.f32 %v4367_v8, %v4367_v8  ;;  %v560_v56 = vmul.f32 %v4370_v38, %v4370_v38  ;;  %1618 = vmatpush1.bf16.msra.mxu0 %v3414_v50  ;;  %3287 = vmatpush1.bf16.msra.mxu1 %v3414_v50 }
 0x119   : > { %v4381_v46 = vsub.f32 %v4081_v58, %v423_v33  ;;  %v4384_v41 = vsub.f32 %v4084_v59, %v423_v33  ;;  %v645_v49 = vadd.f32 %v558_v26, %v557_v53  ;;  %v3415_v26 = vld [vmem:[#allocation5 + $0x2d4] ss:$24 sps:$4 sm:$0xff]  }
 0x11a   : > { %v4387_v15 = vsub.f32 %v4089_v61, %v424_v47  ;;  %v4390_v43 = vsub.f32 %v4092_v62, %v424_v47  ;;  %v396_v20 = vpop.xlane.xlu0 %395  ;;  %v648_v58 = vadd.f32 %v560_v56, %v559_v55  ;;  %v3417_v56 = vld [vmem:[#allocation5 + $0x2d0] ss:$24 sps:$4 sm:$0xff]   ;;  %1619 = vmatprep.subr.bf16.mxu0 %v3415_v26  ;;  %3272 = vmatprep.subr.bf16.mxu1 %v3415_v26 }
 0x11b   : > { %v439_v39 = vmul.f32 0.00390625, %v396_v20  ;;  %601 = vadd.xlane.f32.xlu1 %v600_v52  ;;  %646 = vadd.xlane.f32.xlu0 %v645_v49  ;;  %v399_v44 = vpop.xlane.xlu1 %398  ;;  %v529_v59 = vmul.f32 %v4381_v46, %v4381_v46  ;;  %v530_v33 = vmul.f32 %v4384_v41, %v4384_v41  ;;  %v5186_v26 = vld [vmem:[#allocation12_spill] sm:$0xff] }
 0x11c   : > { %5178 = vst [vmem:[#allocation28_spill] sm:$0xff] %v4387_v15  ;;  %v440_v53 = vmul.f32 0.00390625, %v399_v44  ;;  %v531_v61 = vmul.f32 %v4387_v15, %v4387_v15  ;;  %v532_v62 = vmul.f32 %v4390_v43, %v4390_v43  ;;  %1620 = vmatpush1.bf16.msra.mxu0 %v3417_v56  ;;  %3288 = vmatpush1.bf16.msra.mxu1 %v3417_v56 }
 0x11d   : > { %v4401_v52 = vsub.f32 %v4097_v3, %v439_v39  ;;  %v4404_v47 = vsub.f32 %v4100_v7, %v439_v39  ;;  %v603_v55 = vadd.f32 %v530_v33, %v529_v59  ;;  %v3420_v33 = vld [vmem:[#allocation5 + $0x14] ss:$24 sps:$4 sm:$0xff]  }
 0x11e   : > { %v4407_v30 = vsub.f32 %v4105_v11, %v440_v53  ;;  %v4410_v49 = vsub.f32 %v4108_v16, %v440_v53  ;;  %v354_v20 = vpop.xlane.xlu0 %353  ;;  %v606_v3 = vadd.f32 %v532_v62, %v531_v61  ;;  %v5184_v53 = vld [vmem:[#allocation11_spill] sm:$0xff]  ;;  %1975 = vmatprep.subr.bf16.mxu0 %v3420_v33 }
 0x11f   : > { %5179 = vst [vmem:[#allocation29_spill] sm:$0xff] %v4401_v52  ;;  %5180 = vst [vmem:[#allocation30_spill] sm:$0xff] %v4404_v47  ;;  %v425_v44 = vmul.f32 0.00390625, %v354_v20  ;;  %649 = vadd.xlane.f32.xlu1 %v648_v58  ;;  %604 = vadd.xlane.f32.xlu0 %v603_v55  ;;  %v357_v50 = vpop.xlane.xlu1 %356  ;;  %v561_v7 = vmul.f32 %v4401_v52, %v4401_v52  ;;  %v562_v39 = vmul.f32 %v4404_v47, %v4404_v47  ;;  %v5188_v20 = vld [vmem:[#allocation13_spill] sm:$0xff] }
 0x120   : > { %5181 = vst [vmem:[#allocation31_spill] sm:$0xff] %v4407_v30  ;;  %5182 = vst [vmem:[#allocation32_spill] sm:$0xff] %v4410_v49  ;;  %v426_v59 = vmul.f32 0.00390625, %v357_v50  ;;  %v563_v11 = vmul.f32 %v4407_v30, %v4407_v30  ;;  %v564_v16 = vmul.f32 %v4410_v49, %v4410_v49 }
 0x121   : > { %v4421_v58 = vsub.f32 %v4113_v22, %v425_v44  ;;  %v4424_v61 = vsub.f32 %v5184_v53, %v425_v44  ;;  %v651_v62 = vadd.f32 %v562_v39, %v561_v7  ;;  %v3423_v53 = vld [vmem:[#allocation5 + $0xc] ss:$24 sps:$4 sm:$0xff]  }
 0x122   : > { %v4427_v55 = vsub.f32 %v5186_v26, %v426_v59  ;;  %v4430_v50 = vsub.f32 %v5188_v20, %v426_v59  ;;  %v402_v30 = vpop.xlane.xlu0 %401  ;;  %v654_v49 = vadd.f32 %v564_v16, %v563_v11  ;;  %1782 = vmatprep.subr.bf16.mxu1 %v3423_v53 }
 0x123   : > { %5183 = vst [vmem:[#allocation33_spill] sm:$0xff] %v4421_v58  ;;  %5185 = vst [vmem:[#allocation11_spill] sm:$0xff] %v4424_v61  ;;  %v441_v52 = vmul.f32 0.00390625, %v402_v30  ;;  %607 = vadd.xlane.f32.xlu1 %v606_v3  ;;  %652 = vadd.xlane.f32.xlu0 %v651_v62  ;;  %v405_v56 = vpop.xlane.xlu1 %404  ;;  %v533_v22 = vmul.f32 %v4421_v58, %v4421_v58  ;;  %v534_v44 = vmul.f32 %v4424_v61, %v4424_v61  ;;  %v5191_v3 = vld [vmem:[#allocation14_spill] sm:$0xff]  ;;  %v5194_v62 = vld [vmem:[#allocation15_spill] sm:$0xff] }
 0x124   : > { %5187 = vst [vmem:[#allocation12_spill] sm:$0xff] %v4427_v55  ;;  %5189 = vst [vmem:[#allocation13_spill] sm:$0xff] %v4430_v50  ;;  %v442_v7 = vmul.f32 0.00390625, %v405_v56  ;;  %v535_v39 = vmul.f32 %v4427_v55, %v4427_v55  ;;  %v536_v59 = vmul.f32 %v4430_v50, %v4430_v50 }
 0x125   : > { %v4441_v30 = vsub.f32 %v4129_v42, %v441_v52  ;;  %v4444_v33 = vsub.f32 %v5191_v3, %v441_v52  ;;  %v609_v11 = vadd.f32 %v534_v44, %v533_v22 }
 0x126   : > { %v4447_v16 = vsub.f32 %v4137_v51, %v442_v7  ;;  %v4450_v26 = vsub.f32 %v5194_v62, %v442_v7  ;;  %v360_v20 = vpop.xlane.xlu0 %359  ;;  %v612_v58 = vadd.f32 %v536_v59, %v535_v39  ;;  %v5199_v59 = vld [vmem:[#allocation17_spill] sm:$0xff] }
 0x127   : > { %5190 = vst [vmem:[#allocation34_spill] sm:$0xff] %v4441_v30  ;;  %5192 = vst [vmem:[#allocation14_spill] sm:$0xff] %v4444_v33  ;;  %v427_v56 = vmul.f32 0.00390625, %v360_v20  ;;  %655 = vadd.xlane.f32.xlu1 %v654_v49  ;;  %610 = vadd.xlane.f32.xlu0 %v609_v11  ;;  %v363_v55 = vpop.xlane.xlu1 %362  ;;  %v565_v42 = vmul.f32 %v4441_v30, %v4441_v30  ;;  %v566_v52 = vmul.f32 %v4444_v33, %v4444_v33  ;;  %v5197_v49 = vld [vmem:[#allocation16_spill] sm:$0xff]  ;;  %v5201_v11 = vld [vmem:[#allocation18_spill] sm:$0xff] }
 0x128   : > { %5193 = vst [vmem:[#allocation35_spill] sm:$0xff] %v4447_v16  ;;  %5195 = vst [vmem:[#allocation15_spill] sm:$0xff] %v4450_v26  ;;  %v428_v22 = vmul.f32 0.00390625, %v363_v55  ;;  %v567_v51 = vmul.f32 %v4447_v16, %v4447_v16  ;;  %v568_v44 = vmul.f32 %v4450_v26, %v4450_v26 }
 0x129   : > { %v4461_v7 = vsub.f32 %v4145_v60, %v427_v56  ;;  %v4464_v53 = vsub.f32 %v5197_v49, %v427_v56  ;;  %v657_v39 = vadd.f32 %v566_v52, %v565_v42 }
 0x12a   : > { %v4467_v3 = vsub.f32 %v5199_v59, %v428_v22  ;;  %v4470_v62 = vsub.f32 %v5201_v11, %v428_v22  ;;  %v408_v55 = vpop.xlane.xlu0 %407  ;;  %v660_v30 = vadd.f32 %v568_v44, %v567_v51  ;;  %v5203_v22 = vld [vmem:[#allocation19_spill] sm:$0xff]  ;;  %v5207_v44 = vld [vmem:[#allocation21_spill] sm:$0xff] }
 0x12b   : > { %5196 = vst [vmem:[#allocation36_spill] sm:$0xff] %v4461_v7  ;;  %5198 = vst [vmem:[#allocation16_spill] sm:$0xff] %v4464_v53  ;;  %v443_v20 = vmul.f32 0.00390625, %v408_v55  ;;  %613 = vadd.xlane.f32.xlu1 %v612_v58  ;;  %658 = vadd.xlane.f32.xlu0 %v657_v39  ;;  %v411_v16 = vpop.xlane.xlu1 %410  ;;  %v537_v60 = vmul.f32 %v4461_v7, %v4461_v7  ;;  %v538_v56 = vmul.f32 %v4464_v53, %v4464_v53  ;;  %v5205_v58 = vld [vmem:[#allocation20_spill] sm:$0xff]  ;;  %v5209_v55 = vld [vmem:[#allocation22_spill] sm:$0xff] }
 0x12c   : > { %5200 = vst [vmem:[#allocation17_spill] sm:$0xff] %v4467_v3  ;;  %5202 = vst [vmem:[#allocation18_spill] sm:$0xff] %v4470_v62  ;;  %v444_v49 = vmul.f32 0.00390625, %v411_v16  ;;  %v539_v42 = vmul.f32 %v4467_v3, %v4467_v3  ;;  %v540_v52 = vmul.f32 %v4470_v62, %v4470_v62 }
 0x12d   : > { %v4481_v59 = vsub.f32 %v5203_v22, %v443_v20  ;;  %v4484_v39 = vsub.f32 %v5205_v58, %v443_v20  ;;  %v615_v51 = vadd.f32 %v538_v56, %v537_v60 }
 0x12e   : > { %v4487_v11 = vsub.f32 %v5207_v44, %v444_v49  ;;  %v4490_v7 = vsub.f32 %v5209_v55, %v444_v49  ;;  %v618_v16 = vadd.f32 %v540_v52, %v539_v42  ;;  %v831_v42 = vlaneseq }
 0x12f   : > { %5204 = vst [vmem:[#allocation19_spill] sm:$0xff] %v4481_v59  ;;  %5206 = vst [vmem:[#allocation20_spill] sm:$0xff] %v4484_v39  ;;  %661 = vadd.xlane.f32.xlu1 %v660_v30  ;;  %616 = vadd.xlane.f32.xlu0 %v615_v51  ;;  %v569_v3 = vmul.f32 %v4481_v59, %v4481_v59  ;;  %v570_v22 = vmul.f32 %v4484_v39, %v4484_v39 }
 0x130   : > { %5208 = vst [vmem:[#allocation21_spill] sm:$0xff] %v4487_v11  ;;  %5210 = vst [vmem:[#allocation22_spill] sm:$0xff] %v4490_v7  ;;  %v571_v20 = vmul.f32 %v4487_v11, %v4487_v11  ;;  %v572_v60 = vmul.f32 %v4490_v7, %v4490_v7  ;;  %v832_v39 = vshrl.u32 %v831_v42, 7 }
 0x131   : > { %v663_v56 = vadd.f32 %v570_v22, %v569_v3 }
 0x132   : > { %v666_v49 = vadd.f32 %v572_v60, %v571_v20  ;;  %v837_v22 = vsub.s32 1, %v832_v39  ;;  %v833_v20 = vsub.s32 0, %v832_v39 }
 0x133   : > { %619 = vadd.xlane.f32.xlu1 %v618_v16  ;;  %664 = vadd.xlane.f32.xlu0 %v663_v56 }
 0x137   : > { %667 = vadd.xlane.f32.xlu1 %v666_v49  ;;  %v829_v49 = vld [vmem:[%s5100_s1] sm:$0x3] }
 0x184   : > { %v575_v30 = vpop.xlane.xlu0 %574 }
 0x185   : > { %v669_v58 = vmul.f32 0.00390625, %v575_v30 }
 0x187   : > { %v701_v52 = vadd.f32 1e-05, %v669_v58 }
 0x188   : > { %v578_v51 = vpop.xlane.xlu1 %577  ;;  %v623_v44 = vpop.xlane.xlu0 %622 }
 0x189   : > { %3514 = vrsqrt.f32 %v701_v52  ;;  %v670_v55 = vmul.f32 0.00390625, %v578_v51  ;;  %v685_v59 = vmul.f32 0.00390625, %v623_v44 }
 0x18b   : > { %v702_v62 = vadd.f32 1e-05, %v670_v55  ;;  %v717_v11 = vadd.f32 1e-05, %v685_v59  ;;  %v5211_v55 = vld [vmem:[#allocation24_spill] sm:$0xff] }
 0x18c   : > { %v626_v53 = vpop.xlane.xlu1 %625  ;;  %v581_v26 = vpop.xlane.xlu0 %580 }
 0x18d   : > { %3516 = vrsqrt.f32 %v702_v62  ;;  %v686_v3 = vmul.f32 0.00390625, %v626_v53  ;;  %v671_v16 = vmul.f32 0.00390625, %v581_v26  ;;  %v905_v62 = vld [vmem:[%s5101_s2] sm:$0x3]  ;;  %v4506_v53 = vrot.slane %v829_v49, %v837_v22 }
 0x18e   : > { %3518 = vrsqrt.f32 %v717_v11  ;;  %v4508_v26 = vrot.slane %v829_v49, %v833_v20  ;;  %v4516_v50 = vrot.slane %v905_v62, %v833_v20 }
 0x18f   : > { %v718_v60 = vadd.f32 1e-05, %v686_v3  ;;  %v703_v56 = vadd.f32 1e-05, %v671_v16  ;;  %v4511_v16 = vrot.slane %v905_v62, %v837_v22 }
 0x190   : > { %v584_v30 = vpop.xlane.xlu1 %583  ;;  %v629_v58 = vpop.xlane.xlu0 %628 }
 0x191   : > { %3520 = vrsqrt.f32 %v718_v60  ;;  %v672_v42 = vmul.f32 0.00390625, %v584_v30  ;;  %v687_v52 = vmul.f32 0.00390625, %v629_v58  ;;  %v5212_v60 = vld [vmem:[#allocation23_spill] sm:$0xff] }
 0x192   : > { %3522 = vrsqrt.f32 %v703_v56 }
 0x193   : > { %v3515_v59 = vpop.eup %3514  ;;  %v704_v39 = vadd.f32 1e-05, %v672_v42  ;;  %v719_v11 = vadd.f32 1e-05, %v687_v52 }
 0x194   : > { %v632_v51 = vpop.xlane.xlu1 %631  ;;  %v587_v44 = vpop.xlane.xlu0 %586  ;;  %v766_v3 = vmul.f32 %v3515_v59, %v5211_v55  ;;  %v765_v30 = vmul.f32 %v3515_v59, %v5212_v60 }
 0x195   : > { %3524 = vrsqrt.f32 %v704_v39  ;;  %v688_v58 = vmul.f32 0.00390625, %v632_v51  ;;  %v673_v7 = vmul.f32 0.00390625, %v587_v44 }
 0x196   : > { %v842_v33 = vmul.f32 %v4506_v53, %v766_v3  ;;  %v841_v49 = vmul.f32 %v4508_v26, %v765_v30  ;;  %3526 = vrsqrt.f32 %v719_v11  ;;  %v5213_v3 = vld [vmem:[#allocation26_spill] sm:$0xff] }
 0x197   : > { %v3517_v56 = vpop.eup %3516  ;;  %v720_v42 = vadd.f32 1e-05, %v688_v58  ;;  %v705_v52 = vadd.f32 1e-05, %v673_v7 }
 0x198   : > { %v3519_v61 = vpop.eup %3518  ;;  %v590_v47 = vpop.xlane.xlu1 %589  ;;  %v768_v22 = vmul.f32 %v3517_v56, %v4204_v4  ;;  %v918_v59 = vadd.f32 %v4511_v16, %v842_v33  ;;  %v767_v39 = vmul.f32 %v3517_v56, %v4201_v35  ;;  %v917_v7 = vadd.f32 %v4516_v50, %v841_v49  ;;  %v5214_v33 = vld [vmem:[#allocation25_spill] sm:$0xff] }
 0x199   : > { %v635_v55 = vpop.xlane.xlu0 %634  ;;  %3528 = vrsqrt.f32 %v720_v42  ;;  %v674_v51 = vmul.f32 0.00390625, %v590_v47  ;;  %v798_v60 = vmul.f32 %v3519_v61, %v5213_v3  ;;  %v797_v15 = vmul.f32 %v3519_v61, %v5214_v33  ;;  %v3418_v3 = vld [vmem:[#allocation5 + $0x10] ss:$24 sps:$4 sm:$0xff]  }
 0x19a   : > { %v689_v44 = vmul.f32 0.00390625, %v635_v55  ;;  %3530 = vrsqrt.f32 %v705_v52  ;;  %v844_v20 = vmul.f32 %v4506_v53, %v768_v22  ;;  %v843_v62 = vmul.f32 %v4508_v26, %v767_v39 }
 0x19b   : > { %v3521_v11 = vpop.eup %3520  ;;  %v706_v30 = vadd.f32 1e-05, %v674_v51  ;;  %v874_v4 = vmul.f32 %v4506_v53, %v798_v60 }
 0x19c   : > { %v721_v58 = vadd.f32 1e-05, %v689_v44  ;;  %v638_v35 = vpop.xlane.xlu1 %637  ;;  %v920_v47 = vadd.f32 %v4511_v16, %v844_v20  ;;  %v919_v42 = vadd.f32 %v4516_v50, %v843_v62  ;;  %v800_v52 = vmul.f32 %v3521_v11, %v4210_v28  ;;  %v3523_v22 = vpop.eup %3522 }
 0x19d   : > { %v593_v56 = vpop.xlane.xlu0 %592  ;;  %v799_v55 = vmul.f32 %v3521_v11, %v4207_v57  ;;  %3532 = vrsqrt.f32 %v706_v30  ;;  %v690_v49 = vmul.f32 0.00390625, %v638_v35  ;;  %v950_v51 = vadd.f32 %v4511_v16, %v874_v4  ;;  %v3426_v11 = vld [vmem:[#allocation5 + $0x44] ss:$24 sps:$4 sm:$0xff]  }
 0x19e   : > { %v675_v39 = vmul.f32 0.00390625, %v593_v56  ;;  %3534 = vrsqrt.f32 %v721_v58  ;;  %v4532_v44 = vpack.c.bf16 %v920_v47, %v918_v59  ;;  %v4534_v61 = vpack.c.bf16 %v919_v42, %v917_v7 }
 0x19f   : > { %v876_v60 = vmul.f32 %v4506_v53, %v800_v52  ;;  %v3525_v20 = vpop.eup %3524  ;;  %v722_v62 = vadd.f32 1e-05, %v690_v49  ;;  %v873_v28 = vmul.f32 %v4508_v26, %v797_v15  ;;  %v875_v57 = vmul.f32 %v4508_v26, %v799_v55  ;;  %v3424_v49 = vld [vmem:[#allocation5 + $0x40] ss:$24 sps:$4 sm:$0xff]  }
 0x1a0   : > { %v707_v33 = vadd.f32 1e-05, %v675_v39  ;;  %v596_v30 = vpop.xlane.xlu1 %595  ;;  %1621 = vmatprep.mubr.bf16.mxu0 %v4532_v44  ;;  %v770_v7 = vmul.f32 %v3523_v22, %v4224_v10  ;;  %v772_v58 = vmul.f32 %v3525_v20, %v4230_v1  ;;  %v769_v35 = vmul.f32 %v3523_v22, %v4221_v9  ;;  %v3527_v56 = vpop.eup %3526  ;;  %v3421_v9 = vld [vmem:[#allocation5 + $0x8] ss:$24 sps:$4 sm:$0xff]  }
 0x1a1   : > { %v641_v4 = vpop.xlane.xlu0 %640  ;;  %v952_v59 = vadd.f32 %v4511_v16, %v876_v60  ;;  %3536 = vrsqrt.f32 %v722_v62  ;;  %v676_v47 = vmul.f32 0.00390625, %v596_v30  ;;  %1622 = vmatmul.mubr.bf16.vlgmr.msra.gmra.mrb[0].mxu0 %v4534_v61  ;;  %v949_v52 = vadd.f32 %v4516_v50, %v873_v28  ;;  %v3432_v62 = vld [vmem:[#allocation5 + $0x74] ss:$24 sps:$4 sm:$0xff]  }
 0x1a2   : > { %v691_v42 = vmul.f32 0.00390625, %v641_v4  ;;  %1976 = vmatpush1.bf16.msra.mxu0 %v3418_v3  ;;  %v951_v55 = vadd.f32 %v4516_v50, %v875_v57  ;;  %v846_v10 = vmul.f32 %v4506_v53, %v770_v7  ;;  %3538 = vrsqrt.f32 %v707_v33  ;;  %v3429_v4 = vld [vmem:[#allocation5 + $0x3c] ss:$24 sps:$4 sm:$0xff]  }
 0x1a3   : > { %v4545_v15 = vpack.c.bf16 %v952_v59, %v950_v51  ;;  %v3529_v39 = vpop.eup %3528  ;;  %v708_v1 = vadd.f32 1e-05, %v676_v47  ;;  %1977 = vmatprep.subr.bf16.mxu0 %v3426_v11  ;;  %v848_v22 = vmul.f32 %v4506_v53, %v772_v58  ;;  %v771_v60 = vmul.f32 %v3525_v20, %v4227_v0  ;;  %v3427_v20 = vld [vmem:[#allocation5 + $0x38] ss:$24 sps:$4 sm:$0xff]  }
 0x1a4   : > { %v4552_v3 = vpop.eup %3530  ;;  %v723_v51 = vadd.f32 1e-05, %v691_v42  ;;  %v644_v30 = vpop.xlane.xlu1 %643  ;;  %v4555_v57 = vpack.c.bf16 %v951_v55, %v949_v52  ;;  %v845_v33 = vmul.f32 %v4508_v26, %v769_v35  ;;  %v802_v59 = vmul.f32 %v3527_v56, %v4244_v34  ;;  %v3430_v52 = vld [vmem:[#allocation5 + $0x70] ss:$24 sps:$4 sm:$0xff]  }
 0x1a5   : > { %1701 = vmatprep.mubr.bf16.mxu1 %v4545_v15  ;;  %v599_v28 = vpop.xlane.xlu0 %598  ;;  %v692_v11 = vmul.f32 0.00390625, %v644_v30  ;;  %v922_v58 = vadd.f32 %v4511_v16, %v846_v10  ;;  %v924_v0 = vadd.f32 %v4511_v16, %v848_v22  ;;  %3540 = vrsqrt.f32 %v708_v1  ;;  %v3438_v1 = vld [vmem:[#allocation5 + $0xa4] ss:$24 sps:$4 sm:$0xff]  }
 0x1a6   : > { %5215 = vst [vmem:[#allocation24_spill] sm:$0xff] %v4555_v57  ;;  %v677_v7 = vmul.f32 0.00390625, %v599_v28  ;;  %1702 = vmatmul.mubr.bf16.vlgmr.msra.gmra.mrb[0].mxu1 %v4555_v57  ;;  %1978 = vmatpush1.bf16.msra.mxu0 %v3424_v49  ;;  %v847_v47 = vmul.f32 %v4508_v26, %v771_v60  ;;  %v921_v42 = vadd.f32 %v4516_v50, %v845_v33  ;;  %3542 = vrsqrt.f32 %v723_v51  ;;  %v3444_v51 = vld [vmem:[#allocation5 + $0xd4] ss:$24 sps:$4 sm:$0xff]  }
 0x1a7   : > { %v804_v35 = vmul.f32 %v3529_v39, %v4250_v54  ;;  %v3533_v55 = vpop.eup %3532  ;;  %v724_v34 = vadd.f32 1e-05, %v692_v11  ;;  %1783 = vmatpush1.bf16.msra.mxu1 %v3421_v9  ;;  %v4565_v28 = vpack.c.bf16 %v924_v0, %v922_v58  ;;  %1979 = vmatprep.subr.bf16.mxu0 %v3432_v62  ;;  %v878_v10 = vmul.f32 %v4506_v53, %v802_v59  ;;  %v3435_v54 = vld [vmem:[#allocation5 + $0x6c] ss:$24 sps:$4 sm:$0xff]  }
 0x1a8   : > { %v709_v30 = vadd.f32 1e-05, %v677_v7  ;;  %v4568_v22 = vpop.eup %3534  ;;  %v602_v49 = vpop.xlane.xlu1 %601  ;;  %1784 = vmatprep.subr.bf16.mxu1 %v3429_v4  ;;  %v923_v33 = vadd.f32 %v4516_v50, %v847_v47  ;;  %v801_v11 = vmul.f32 %v3527_v56, %v4241_v29  ;;  %v803_v9 = vmul.f32 %v3529_v39, %v4247_v6  ;;  %v3436_v47 = vld [vmem:[#allocation5 + $0xa0] ss:$24 sps:$4 sm:$0xff]  }
 0x1a9   : > { %v647_v60 = vpop.xlane.xlu0 %646  ;;  %v880_v57 = vmul.f32 %v4506_v53, %v804_v35  ;;  %v678_v7 = vmul.f32 0.00390625, %v602_v49  ;;  %1631 = vmatprep.mubr.bf16.mxu0 %v4565_v28  ;;  %v954_v4 = vadd.f32 %v4511_v16, %v878_v10  ;;  %3544 = vrsqrt.f32 %v724_v34  ;;  %v3433_v6 = vld [vmem:[#allocation5 + $0x68] ss:$24 sps:$4 sm:$0xff]  }
 0x1aa   : > { %v693_v62 = vmul.f32 0.00390625, %v647_v60  ;;  %v4575_v59 = vpack.c.bf16 %v923_v33, %v921_v42  ;;  %1980 = vmatpush1.bf16.msra.mxu0 %v3430_v52  ;;  %v877_v0 = vmul.f32 %v4508_v26, %v801_v11  ;;  %v879_v56 = vmul.f32 %v4508_v26, %v803_v9  ;;  %v3439_v11 = vld [vmem:[#allocation5 + $0x98] ss:$24 sps:$4 sm:$0xff]  }
 0x1ab   : > { %v956_v58 = vadd.f32 %v4511_v16, %v880_v57  ;;  %v4580_v35 = vpop.eup %3536  ;;  %v710_v29 = vadd.f32 1e-05, %v678_v7  ;;  %1785 = vmatpush1.bf16.msra.mxu1 %v3427_v20  ;;  %1981 = vmatprep.subr.bf16.mxu0 %v3438_v1  ;;  %v774_v39 = vmul.f32 %v4552_v3, %v4264_v48  ;;  %3546 = vrsqrt.f32 %v709_v30  ;;  %v3441_v20 = vld [vmem:[#allocation5 + $0x9c] ss:$24 sps:$4 sm:$0xff]   ;;  %v3442_v9 = vld [vmem:[#allocation5 + $0xd0] ss:$24 sps:$4 sm:$0xff]  }
 0x1ac   : > { %v725_v42 = vadd.f32 1e-05, %v693_v62  ;;  %1632 = vmatmul.mubr.bf16.gmra.mrb[4].mxu0 %v4575_v59  ;;  %v650_v57 = vpop.xlane.xlu1 %649  ;;  %1786 = vmatprep.subr.bf16.mxu1 %v3435_v54  ;;  %v776_v34 = vmul.f32 %v3533_v55, %v4270_v14  ;;  %v4589_v49 = vpop.eup %3538  ;;  %v953_v33 = vadd.f32 %v4516_v50, %v877_v0  ;;  %v955_v48 = vadd.f32 %v4516_v50, %v879_v56 }
 0x1ad   : > { %v4586_v52 = vpack.c.bf16 %v956_v58, %v954_v4  ;;  %v605_v10 = vpop.xlane.xlu0 %604  ;;  %v694_v60 = vmul.f32 0.00390625, %v650_v57  ;;  %3548 = vrsqrt.f32 %v710_v29  ;;  %v850_v30 = vmul.f32 %v4506_v53, %v774_v39  ;;  %v5216_v58 = vld [vmem:[#allocation27_spill] sm:$0xff] }
 0x1ae   : > { %v679_v1 = vmul.f32 0.00390625, %v605_v10  ;;  %1982 = vmatpush1.bf16.msra.mxu0 %v3436_v47  ;;  %v852_v54 = vmul.f32 %v4506_v53, %v776_v34  ;;  %v773_v14 = vmul.f32 %v4552_v3, %v4261_v12  ;;  %v4598_v4 = vpack.c.bf16 %v955_v48, %v953_v33  ;;  %v3450_v29 = vld [vmem:[#allocation5 + $0x104] ss:$24 sps:$4 sm:$0xff]   ;;  %v3448_v33 = vld [vmem:[#allocation5 + $0x100] ss:$24 sps:$4 sm:$0xff]  }
 0x1af   : > { %1711 = vmatprep.mubr.bf16.mxu1 %v4586_v52  ;;  %v726_v7 = vadd.f32 1e-05, %v694_v60  ;;  %1787 = vmatpush1.bf16.msra.mxu1 %v3433_v6  ;;  %v775_v0 = vmul.f32 %v3533_v55, %v5216_v58  ;;  %v4601_v56 = vpop.eup %3540  ;;  %v926_v39 = vadd.f32 %v4511_v16, %v850_v30  ;;  %v806_v3 = vmul.f32 %v4568_v22, %v4284_v2  ;;  %v3447_v34 = vld [vmem:[#allocation5 + $0xcc] ss:$24 sps:$4 sm:$0xff]  }
 0x1b0   : > { %v711_v62 = vadd.f32 1e-05, %v679_v1  ;;  %1983 = vmatprep.subr.bf16.mxu0 %v3444_v51  ;;  %v608_v47 = vpop.xlane.xlu1 %607  ;;  %v928_v57 = vadd.f32 %v4511_v16, %v852_v54  ;;  %1788 = vmatprep.subr.bf16.mxu1 %v3441_v20  ;;  %v849_v12 = vmul.f32 %v4508_v26, %v773_v14  ;;  %3550 = vrsqrt.f32 %v725_v42  ;;  %v4615_v48 = vpop.eup %3542  ;;  %v3445_v14 = vld [vmem:[#allocation5 + $0xc8] ss:$24 sps:$4 sm:$0xff]  }
 0x1b1   : > { %v653_v10 = vpop.xlane.xlu0 %652  ;;  %1712 = vmatmul.mubr.bf16.gmra.mrb[4].mxu1 %v4598_v4  ;;  %v680_v55 = vmul.f32 0.00390625, %v608_v47  ;;  %v851_v51 = vmul.f32 %v4508_v26, %v775_v0  ;;  %3552 = vrsqrt.f32 %v726_v7  ;;  %v808_v20 = vmul.f32 %v4580_v35, %v4290_v13  ;;  %v3453_v47 = vld [vmem:[#allocation5 + $0xfc] ss:$24 sps:$4 sm:$0xff]  }
 0x1b2   : > { %v695_v6 = vmul.f32 0.00390625, %v653_v10  ;;  %v4610_v60 = vpack.c.bf16 %v928_v57, %v926_v39  ;;  %v925_v1 = vadd.f32 %v4516_v50, %v849_v12  ;;  %1984 = vmatpush1.bf16.msra.mxu0 %v3442_v9  ;;  %v882_v54 = vmul.f32 %v4506_v53, %v806_v3 }
 0x1b3   : > { %v712_v2 = vadd.f32 1e-05, %v680_v55  ;;  %v927_v30 = vadd.f32 %v4516_v50, %v851_v51  ;;  %1789 = vmatpush1.bf16.msra.mxu1 %v3439_v11  ;;  %1985 = vmatprep.subr.bf16.mxu0 %v3450_v29  ;;  %3554 = vrsqrt.f32 %v711_v62  ;;  %v884_v9 = vmul.f32 %v4506_v53, %v808_v20  ;;  %v3456_v11 = vld [vmem:[#allocation5 + $0x134] ss:$24 sps:$4 sm:$0xff]   ;;  %v4625_v39 = vpop.eup %3544  ;;  %v3462_v51 = vld [vmem:[#allocation5 + $0x164] ss:$24 sps:$4 sm:$0xff]  }
 0x1b4   : > { %v727_v42 = vadd.f32 1e-05, %v695_v6  ;;  %1641 = vmatprep.mubr.bf16.mxu0 %v4610_v60  ;;  %v656_v7 = vpop.xlane.xlu1 %655  ;;  %1790 = vmatprep.subr.bf16.mxu1 %v3447_v34  ;;  %v805_v58 = vmul.f32 %v4568_v22, %v4281_v45  ;;  %v807_v0 = vmul.f32 %v4580_v35, %v4287_v21  ;;  %v958_v57 = vadd.f32 %v4511_v16, %v882_v54  ;;  %v3454_v21 = vld [vmem:[#allocation5 + $0x130] ss:$24 sps:$4 sm:$0xff]  }
 0x1b5   : > { %v611_v13 = vpop.xlane.xlu0 %610  ;;  %3556 = vrsqrt.f32 %v712_v2  ;;  %v4627_v29 = vpack.c.bf16 %v927_v30, %v925_v1  ;;  %v696_v62 = vmul.f32 0.00390625, %v656_v7  ;;  %v4630_v10 = vpop.eup %3546  ;;  %v960_v12 = vadd.f32 %v4511_v16, %v884_v9  ;;  %v3451_v6 = vld [vmem:[#allocation5 + $0xf8] ss:$24 sps:$4 sm:$0xff]  }
 0x1b6   : > { %3558 = vrsqrt.f32 %v727_v42  ;;  %v681_v3 = vmul.f32 0.00390625, %v611_v13  ;;  %v881_v45 = vmul.f32 %v4508_v26, %v805_v58  ;;  %1986 = vmatpush1.bf16.msra.mxu0 %v3448_v33  ;;  %v883_v35 = vmul.f32 %v4508_v26, %v807_v0  ;;  %v3460_v0 = vld [vmem:[#allocation5 + $0x160] ss:$24 sps:$4 sm:$0xff]  }
 0x1b7   : > { %1642 = vmatmul.mubr.bf16.gmra.mrb[8].mxu0 %v4627_v29  ;;  %v728_v22 = vadd.f32 1e-05, %v696_v62  ;;  %1791 = vmatpush1.bf16.msra.mxu1 %v3445_v14  ;;  %v778_v34 = vmul.f32 %v4589_v49, %v4304_v23  ;;  %v780_v55 = vmul.f32 %v4601_v56, %v4310_v19  ;;  %v4640_v1 = vpop.eup %3548  ;;  %v4642_v20 = vpack.c.bf16 %v960_v12, %v958_v57  ;;  %v3459_v23 = vld [vmem:[#allocation5 + $0x12c] ss:$24 sps:$4 sm:$0xff]   ;;  %v3457_v57 = vld [vmem:[#allocation5 + $0x128] ss:$24 sps:$4 sm:$0xff]  }
 0x1b8   : > { %v713_v33 = vadd.f32 1e-05, %v681_v3  ;;  %v957_v2 = vadd.f32 %v4516_v50, %v881_v45  ;;  %v614_v42 = vpop.xlane.xlu1 %613  ;;  %1792 = vmatprep.subr.bf16.mxu1 %v3453_v47  ;;  %v777_v54 = vmul.f32 %v4589_v49, %v4301_v17  ;;  %1987 = vmatprep.subr.bf16.mxu0 %v3456_v11  ;;  %v959_v19 = vadd.f32 %v4516_v50, %v883_v35  ;;  %v3468_v12 = vld [vmem:[#allocation5 + $0x194] ss:$24 sps:$4 sm:$0xff]  }
 0x1b9   : > { %v659_v30 = vpop.xlane.xlu0 %658  ;;  %3560 = vrsqrt.f32 %v728_v22  ;;  %v682_v14 = vmul.f32 0.00390625, %v614_v42  ;;  %v854_v7 = vmul.f32 %v4506_v53, %v778_v34  ;;  %1721 = vmatprep.mubr.bf16.mxu1 %v4642_v20  ;;  %v856_v9 = vmul.f32 %v4506_v53, %v780_v55 }
 0x1ba   : > { %3562 = vrsqrt.f32 %v713_v33  ;;  %v697_v13 = vmul.f32 0.00390625, %v659_v30  ;;  %v779_v58 = vmul.f32 %v4601_v56, %v4307_v27  ;;  %1988 = vmatpush1.bf16.msra.mxu0 %v3454_v21  ;;  %v4653_v17 = vpop.eup %3550  ;;  %v4655_v49 = vpack.c.bf16 %v959_v19, %v957_v2  ;;  %v3463_v30 = vld [vmem:[#allocation5 + $0x158] ss:$24 sps:$4 sm:$0xff]  }
 0x1bb   : > { %v714_v47 = vadd.f32 1e-05, %v682_v14  ;;  %v930_v11 = vadd.f32 %v4511_v16, %v854_v7  ;;  %v853_v62 = vmul.f32 %v4508_v26, %v777_v54  ;;  %1793 = vmatpush1.bf16.msra.mxu1 %v3451_v6  ;;  %1989 = vmatprep.subr.bf16.mxu0 %v3462_v51  ;;  %v4659_v3 = vpop.eup %3552  ;;  %v932_v45 = vadd.f32 %v4511_v16, %v856_v9  ;;  %v3465_v51 = vld [vmem:[#allocation5 + $0x15c] ss:$24 sps:$4 sm:$0xff]   ;;  %v3466_v7 = vld [vmem:[#allocation5 + $0x190] ss:$24 sps:$4 sm:$0xff]  }
 0x1bc   : > { %v729_v27 = vadd.f32 1e-05, %v697_v13  ;;  %v855_v56 = vmul.f32 %v4508_v26, %v779_v58  ;;  %v662_v21 = vpop.xlane.xlu1 %661  ;;  %v810_v22 = vmul.f32 %v4615_v48, %v4324_v24  ;;  %1794 = vmatprep.subr.bf16.mxu1 %v3459_v23  ;;  %1722 = vmatmul.mubr.bf16.gmra.mrb[8].mxu1 %v4655_v49  ;;  %v812_v6 = vmul.f32 %v4625_v39, %v4330_v18 }
 0x1bd   : > { %v617_v35 = vpop.xlane.xlu0 %616  ;;  %3564 = vrsqrt.f32 %v714_v47  ;;  %v929_v34 = vadd.f32 %v4516_v50, %v853_v62  ;;  %v698_v55 = vmul.f32 0.00390625, %v662_v21  ;;  %v4669_v33 = vpop.eup %3554  ;;  %v4671_v2 = vpack.c.bf16 %v932_v45, %v930_v11 }
 0x1be   : > { %3566 = vrsqrt.f32 %v729_v27  ;;  %v931_v42 = vadd.f32 %v4516_v50, %v855_v56  ;;  %v886_v24 = vmul.f32 %v4506_v53, %v810_v22  ;;  %1990 = vmatpush1.bf16.msra.mxu0 %v3460_v0  ;;  %v888_v19 = vmul.f32 %v4506_v53, %v812_v6 }
 0x1bf   : > { %v4675_v54 = vpop.eup %3556  ;;  %v730_v23 = vadd.f32 1e-05, %v698_v55  ;;  %v683_v14 = vmul.f32 0.00390625, %v617_v35  ;;  %v809_v18 = vmul.f32 %v4615_v48, %v4321_v63  ;;  %1795 = vmatpush1.bf16.msra.mxu1 %v3457_v57  ;;  %1991 = vmatprep.subr.bf16.mxu0 %v3468_v12  ;;  %v811_v0 = vmul.f32 %v4625_v39, %v4327_v25  ;;  %v3471_v63 = vld [vmem:[#allocation5 + $0x18c] ss:$24 sps:$4 sm:$0xff]  }
 0x1c0   : > { %v4680_v9 = vpop.eup %3558  ;;  %1651 = vmatprep.mubr.bf16.mxu0 %v4671_v2  ;;  %v4683_v13 = vpack.c.bf16 %v931_v42, %v929_v34  ;;  %v962_v58 = vadd.f32 %v4511_v16, %v886_v24  ;;  %v620_v47 = vpop.xlane.xlu1 %619  ;;  %v782_v11 = vmul.f32 %v4630_v10, %v4344_v31  ;;  %v3474_v48 = vld [vmem:[#allocation5 + $0x1c4] ss:$24 sps:$4 sm:$0xff]   ;;  %v964_v57 = vadd.f32 %v4511_v16, %v888_v19  ;;  %v3469_v34 = vld [vmem:[#allocation5 + $0x188] ss:$24 sps:$4 sm:$0xff]  }
 0x1c1   : > { %v665_v62 = vpop.xlane.xlu0 %664  ;;  %3568 = vrsqrt.f32 %v730_v23  ;;  %v715_v12 = vadd.f32 1e-05, %v683_v14  ;;  %v885_v45 = vmul.f32 %v4508_v26, %v809_v18  ;;  %1796 = vmatprep.subr.bf16.mxu1 %v3465_v51  ;;  %v887_v27 = vmul.f32 %v4508_v26, %v811_v0  ;;  %v3472_v55 = vld [vmem:[#allocation5 + $0x1c0] ss:$24 sps:$4 sm:$0xff]   ;;  %v3477_v19 = vld [vmem:[#allocation5 + $0x1bc] ss:$24 sps:$4 sm:$0xff]  }
 0x1c2   : > { %1652 = vmatmul.mubr.bf16.gmra.mrb[12].mxu0 %v4683_v13  ;;  %v684_v56 = vmul.f32 0.00390625, %v620_v47  ;;  %v784_v25 = vmul.f32 %v4640_v1, %v4350_v32  ;;  %v858_v31 = vmul.f32 %v4506_v53, %v782_v11  ;;  %v4699_v21 = vpack.c.bf16 %v964_v57, %v962_v58  ;;  %v3480_v58 = vld [vmem:[#allocation5 + $0x1f4] ss:$24 sps:$4 sm:$0xff]  }
 0x1c3   : > { %v4697_v39 = vpop.eup %3560  ;;  %3570 = vrsqrt.f32 %v715_v12  ;;  %v961_v22 = vadd.f32 %v4516_v50, %v885_v45  ;;  %v699_v35 = vmul.f32 0.00390625, %v665_v62  ;;  %1797 = vmatpush1.bf16.msra.mxu1 %v3463_v30  ;;  %1992 = vmatpush1.bf16.msra.mxu0 %v3466_v7  ;;  %v963_v51 = vadd.f32 %v4516_v50, %v887_v27  ;;  %v3478_v12 = vld [vmem:[#allocation5 + $0x1f0] ss:$24 sps:$4 sm:$0xff]  }
 0x1c4   : > { %v4702_v6 = vpop.eup %3562  ;;  %v716_v42 = vadd.f32 1e-05, %v684_v56  ;;  %v860_v32 = vmul.f32 %v4506_v53, %v784_v25  ;;  %v934_v24 = vadd.f32 %v4511_v16, %v858_v31  ;;  %v668_v23 = vpop.xlane.xlu1 %667  ;;  %1798 = vmatprep.subr.bf16.mxu1 %v3471_v63  ;;  %1993 = vmatprep.subr.bf16.mxu0 %v3474_v48  ;;  %v781_v30 = vmul.f32 %v4630_v10, %v4341_v36 }
 0x1c5   : > { %1731 = vmatprep.mubr.bf16.mxu1 %v4699_v21  ;;  %v731_v14 = vadd.f32 1e-05, %v699_v35  ;;  %v783_v18 = vmul.f32 %v4640_v1, %v4347_v5  ;;  %v700_v7 = vmul.f32 0.00390625, %v668_v23  ;;  %v4712_v0 = vpack.c.bf16 %v963_v51, %v961_v22  ;;  %v3475_v5 = vld [vmem:[#allocation5 + $0x1b8] ss:$24 sps:$4 sm:$0xff]  }
 0x1c6   : > { %3572 = vrsqrt.f32 %v716_v42  ;;  %v936_v47 = vadd.f32 %v4511_v16, %v860_v32  ;;  %v814_v11 = vmul.f32 %v4653_v17, %v4364_v37  ;;  %v857_v63 = vmul.f32 %v4508_v26, %v781_v30  ;;  %v3481_v51 = vld [vmem:[#allocation5 + $0x1e8] ss:$24 sps:$4 sm:$0xff]  }
 0x1c7   : > { %v4717_v62 = vpop.eup %3564  ;;  %3574 = vrsqrt.f32 %v731_v14  ;;  %v859_v36 = vmul.f32 %v4508_v26, %v783_v18  ;;  %1799 = vmatpush1.bf16.msra.mxu1 %v3469_v34  ;;  %1994 = vmatpush1.bf16.msra.mxu0 %v3472_v55  ;;  %v816_v48 = vmul.f32 %v4659_v3, %v4370_v38  ;;  %v813_v57 = vmul.f32 %v4653_v17, %v4361_v40  ;;  %v3483_v17 = vld [vmem:[#allocation5 + $0x1ec] ss:$24 sps:$4 sm:$0xff]   ;;  %v5218_v14 = vld [vmem:[#allocation30_spill] sm:$0xff] }
 0x1c8   : > { %v4721_v10 = vpop.eup %3566  ;;  %1732 = vmatmul.mubr.bf16.gmra.mrb[12].mxu1 %v4712_v0  ;;  %v4724_v1 = vpack.c.bf16 %v936_v47, %v934_v24  ;;  %v890_v37 = vmul.f32 %v4506_v53, %v814_v11  ;;  %v933_v45 = vadd.f32 %v4516_v50, %v857_v63  ;;  %v732_v56 = vadd.f32 1e-05, %v700_v7  ;;  %1800 = vmatprep.subr.bf16.mxu1 %v3477_v19  ;;  %v5217_v24 = vld [vmem:[#allocation28_spill] sm:$0xff]  ;;  %v3486_v18 = vld [vmem:[#allocation5 + $0x224] ss:$24 sps:$4 sm:$0xff]  }
 0x1c9   : > { %v935_v27 = vadd.f32 %v4516_v50, %v859_v36  ;;  %v815_v25 = vmul.f32 %v4659_v3, %v4367_v8  ;;  %1995 = vmatprep.subr.bf16.mxu0 %v3480_v58  ;;  %v892_v38 = vmul.f32 %v4506_v53, %v816_v48  ;;  %v889_v22 = vmul.f32 %v4508_v26, %v813_v57  ;;  %v5219_v47 = vld [vmem:[#allocation32_spill] sm:$0xff]  ;;  %v3484_v63 = vld [vmem:[#allocation5 + $0x220] ss:$24 sps:$4 sm:$0xff]   ;;  %v3489_v57 = vld [vmem:[#allocation5 + $0x21c] ss:$24 sps:$4 sm:$0xff]  }
 0x1ca   : > { %1661 = vmatprep.mubr.bf16.mxu0 %v4724_v1  ;;  %v966_v31 = vadd.f32 %v4511_v16, %v890_v37  ;;  %v786_v40 = vmul.f32 %v4669_v33, %v4384_v41  ;;  %v788_v3 = vmul.f32 %v4675_v54, %v4390_v43  ;;  %v785_v55 = vmul.f32 %v4669_v33, %v4381_v46 }
 0x1cb   : > { %v4741_v35 = vpop.eup %3568  ;;  %v4743_v34 = vpack.c.bf16 %v935_v27, %v933_v45  ;;  %v891_v8 = vmul.f32 %v4508_v26, %v815_v25  ;;  %1801 = vmatpush1.bf16.msra.mxu1 %v3475_v5  ;;  %v968_v42 = vadd.f32 %v4511_v16, %v892_v38  ;;  %v965_v32 = vadd.f32 %v4516_v50, %v889_v22  ;;  %v5220_v25 = vld [vmem:[#allocation29_spill] sm:$0xff] }
 0x1cc   : > { %v862_v41 = vmul.f32 %v4506_v53, %v786_v40  ;;  %v787_v23 = vmul.f32 %v4675_v54, %v5217_v24  ;;  %1996 = vmatpush1.bf16.msra.mxu0 %v3478_v12  ;;  %v864_v46 = vmul.f32 %v4506_v53, %v788_v3  ;;  %v861_v33 = vmul.f32 %v4508_v26, %v785_v55  ;;  %v3487_v40 = vld [vmem:[#allocation5 + $0x218] ss:$24 sps:$4 sm:$0xff]   ;;  %v5222_v55 = vld [vmem:[#allocation11_spill] sm:$0xff] }
 0x1cd   : > { %v4755_v19 = vpop.eup %3570  ;;  %1662 = vmatmul.mubr.bf16.gmra.mrb[16].mxu0 %v4743_v34  ;;  %v967_v43 = vadd.f32 %v4516_v50, %v891_v8  ;;  %v818_v30 = vmul.f32 %v4680_v9, %v5218_v14  ;;  %v4763_v7 = vpack.c.bf16 %v968_v42, %v966_v31  ;;  %v820_v11 = vmul.f32 %v4697_v39, %v5219_v47  ;;  %v5221_v31 = vld [vmem:[#allocation31_spill] sm:$0xff]  ;;  %v3492_v42 = vld [vmem:[#allocation5 + $0x254] ss:$24 sps:$4 sm:$0xff]  }
 0x1ce   : > { %v938_v58 = vadd.f32 %v4511_v16, %v862_v41  ;;  %v863_v54 = vmul.f32 %v4508_v26, %v787_v23  ;;  %1802 = vmatprep.subr.bf16.mxu1 %v3483_v17  ;;  %v940_v5 = vadd.f32 %v4511_v16, %v864_v46  ;;  %v937_v48 = vadd.f32 %v4516_v50, %v861_v33  ;;  %v5223_v24 = vld [vmem:[#allocation13_spill] sm:$0xff]  ;;  %v3495_v14 = vld [vmem:[#allocation5 + $0x24c] ss:$24 sps:$4 sm:$0xff]  }
 0x1cf   : > { %v4769_v36 = vpack.c.bf16 %v967_v43, %v965_v32  ;;  %v894_v37 = vmul.f32 %v4506_v53, %v818_v30  ;;  %1803 = vmatpush1.bf16.msra.mxu1 %v3481_v51  ;;  %1741 = vmatprep.mubr.bf16.mxu1 %v4763_v7  ;;  %v896_v27 = vmul.f32 %v4506_v53, %v820_v11  ;;  %3576 = vrsqrt.f32 %v732_v56  ;;  %v3490_v56 = vld [vmem:[#allocation5 + $0x250] ss:$24 sps:$4 sm:$0xff]  }
 0x1d0   : > { %v4774_v12 = vpop.eup %3572  ;;  %v939_v45 = vadd.f32 %v4516_v50, %v863_v54  ;;  %v817_v38 = vmul.f32 %v4680_v9, %v5220_v25  ;;  %v819_v22 = vmul.f32 %v4697_v39, %v5221_v31  ;;  %v4786_v8 = vpack.c.bf16 %v940_v5, %v938_v58  ;;  %1997 = vmatprep.subr.bf16.mxu0 %v3486_v18  ;;  %v5224_v46 = vld [vmem:[#allocation33_spill] sm:$0xff]  ;;  %v5225_v54 = vld [vmem:[#allocation12_spill] sm:$0xff]  ;;  %v5227_v31 = vld [vmem:[#allocation15_spill] sm:$0xff] }
 0x1d1   : > { %v4783_v17 = vpop.eup %3574  ;;  %1742 = vmatmul.mubr.bf16.gmra.mrb[16].mxu1 %v4769_v36  ;;  %v970_v3 = vadd.f32 %v4511_v16, %v894_v37  ;;  %v790_v51 = vmul.f32 %v4702_v6, %v5222_v55  ;;  %v972_v9 = vadd.f32 %v4511_v16, %v896_v27  ;;  %1998 = vmatpush1.bf16.msra.mxu0 %v3484_v63  ;;  %v3493_v11 = vld [vmem:[#allocation5 + $0x248] ss:$24 sps:$4 sm:$0xff]   ;;  %v3498_v63 = vld [vmem:[#allocation5 + $0x284] ss:$24 sps:$4 sm:$0xff]  }
 0x1d2   : > { %v4791_v32 = vpack.c.bf16 %v939_v45, %v937_v48  ;;  %v893_v39 = vmul.f32 %v4508_v26, %v817_v38  ;;  %v895_v41 = vmul.f32 %v4508_v26, %v819_v22  ;;  %1671 = vmatprep.mubr.bf16.mxu0 %v4786_v8  ;;  %v792_v23 = vmul.f32 %v4717_v62, %v5223_v24  ;;  %v3496_v27 = vld [vmem:[#allocation5 + $0x280] ss:$24 sps:$4 sm:$0xff]   ;;  %v3501_v55 = vld [vmem:[#allocation5 + $0x27c] ss:$24 sps:$4 sm:$0xff]  }
 0x1d3   : > { %v866_v43 = vmul.f32 %v4506_v53, %v790_v51  ;;  %1804 = vmatprep.subr.bf16.mxu1 %v3489_v57  ;;  %v789_v33 = vmul.f32 %v4702_v6, %v5224_v46  ;;  %v4802_v30 = vpack.c.bf16 %v972_v9, %v970_v3  ;;  %v791_v47 = vmul.f32 %v4717_v62, %v5225_v54  ;;  %v5226_v62 = vld [vmem:[#allocation14_spill] sm:$0xff]  ;;  %v5229_v9 = vld [vmem:[#allocation35_spill] sm:$0xff]  ;;  %v3504_v46 = vld [vmem:[#allocation5 + $0x2b4] ss:$24 sps:$4 sm:$0xff]  }
 0x1d4   : > { %v969_v18 = vadd.f32 %v4516_v50, %v893_v39  ;;  %v971_v58 = vadd.f32 %v4516_v50, %v895_v41  ;;  %1805 = vmatpush1.bf16.msra.mxu1 %v3487_v40  ;;  %v868_v5 = vmul.f32 %v4506_v53, %v792_v23  ;;  %1999 = vmatprep.subr.bf16.mxu0 %v3492_v42  ;;  %v5228_v40 = vld [vmem:[#allocation34_spill] sm:$0xff]  ;;  %v3502_v54 = vld [vmem:[#allocation5 + $0x2b0] ss:$24 sps:$4 sm:$0xff]  }
 0x1d5   : > { %1672 = vmatmul.mubr.bf16.gmra.mrb[20].mxu0 %v4791_v32  ;;  %v942_v48 = vadd.f32 %v4511_v16, %v866_v43  ;;  %v865_v6 = vmul.f32 %v4508_v26, %v789_v33  ;;  %1751 = vmatprep.mubr.bf16.mxu1 %v4802_v30  ;;  %v867_v57 = vmul.f32 %v4508_v26, %v791_v47  ;;  %v3499_v41 = vld [vmem:[#allocation5 + $0x278] ss:$24 sps:$4 sm:$0xff]  }
 0x1d6   : > { %v4813_v37 = vpack.c.bf16 %v971_v58, %v969_v18  ;;  %2000 = vmatpush1.bf16.msra.mxu0 %v3490_v56  ;;  %v822_v45 = vmul.f32 %v4721_v10, %v5226_v62  ;;  %v944_v25 = vadd.f32 %v4511_v16, %v868_v5  ;;  %v824_v22 = vmul.f32 %v4741_v35, %v5227_v31  ;;  %v5231_v18 = vld [vmem:[#allocation18_spill] sm:$0xff]  ;;  %v5232_v62 = vld [vmem:[#allocation36_spill] sm:$0xff] }
 0x1d7   : > { %v941_v38 = vadd.f32 %v4516_v50, %v865_v6  ;;  %1806 = vmatprep.subr.bf16.mxu1 %v3495_v14  ;;  %v821_v3 = vmul.f32 %v4721_v10, %v5228_v40  ;;  %v943_v51 = vadd.f32 %v4516_v50, %v867_v57  ;;  %v823_v39 = vmul.f32 %v4741_v35, %v5229_v9  ;;  %v5230_v10 = vld [vmem:[#allocation16_spill] sm:$0xff]  ;;  %v3508_v9 = vld [vmem:[#allocation5 + $0x2e0] ss:$24 sps:$4 sm:$0xff]  }
 0x1d8   : > { %v898_v42 = vmul.f32 %v4506_v53, %v822_v45  ;;  %1807 = vmatpush1.bf16.msra.mxu1 %v3493_v11  ;;  %2001 = vmatprep.subr.bf16.mxu0 %v3498_v63  ;;  %v4829_v56 = vpack.c.bf16 %v944_v25, %v942_v48  ;;  %v900_v24 = vmul.f32 %v4506_v53, %v824_v22  ;;  %v3507_v48 = vld [vmem:[#allocation5 + $0x2ac] ss:$24 sps:$4 sm:$0xff]  }
 0x1d9   : > { %1752 = vmatmul.mubr.bf16.gmra.mrb[20].mxu1 %v4813_v37  ;;  %v897_v23 = vmul.f32 %v4508_v26, %v821_v3  ;;  %v794_v43 = vmul.f32 %v4755_v19, %v5230_v10  ;;  %v4835_v33 = vpack.c.bf16 %v943_v51, %v941_v38  ;;  %v899_v35 = vmul.f32 %v4508_v26, %v823_v39  ;;  %v3577_v47 = vpop.eup %3576  ;;  %v3505_v38 = vld [vmem:[#allocation5 + $0x2a8] ss:$24 sps:$4 sm:$0xff]   ;;  %v5235_v39 = vld [vmem:[#allocation22_spill] sm:$0xff] }
 0x1da   : > { %v974_v14 = vadd.f32 %v4511_v16, %v898_v42  ;;  %2002 = vmatpush1.bf16.msra.mxu0 %v3496_v27  ;;  %v796_v58 = vmul.f32 %v4774_v12, %v5231_v18  ;;  %1681 = vmatprep.mubr.bf16.mxu0 %v4829_v56  ;;  %v976_v11 = vadd.f32 %v4511_v16, %v900_v24  ;;  %v5233_v27 = vld [vmem:[#allocation17_spill] sm:$0xff]  ;;  %v5234_v40 = vld [vmem:[#allocation20_spill] sm:$0xff] }
 0x1db   : > { %v973_v63 = vadd.f32 %v4516_v50, %v897_v23  ;;  %v870_v5 = vmul.f32 %v4506_v53, %v794_v43  ;;  %1808 = vmatprep.subr.bf16.mxu1 %v3501_v55  ;;  %v975_v6 = vadd.f32 %v4516_v50, %v899_v35  ;;  %v793_v45 = vmul.f32 %v4755_v19, %v5232_v62  ;;  %v3510_v55 = vld [vmem:[#allocation5 + $0x2e4] ss:$24 sps:$4 sm:$0xff]   ;;  %v5237_v18 = vld [vmem:[#allocation21_spill] sm:$0xff] }
 0x1dc   : > { %v872_v57 = vmul.f32 %v4506_v53, %v796_v58  ;;  %v795_v25 = vmul.f32 %v4774_v12, %v5233_v27  ;;  %1809 = vmatpush1.bf16.msra.mxu1 %v3499_v41  ;;  %v4852_v31 = vpack.c.bf16 %v976_v11, %v974_v14  ;;  %2003 = vmatprep.subr.bf16.mxu0 %v3504_v46  ;;  %v5236_v23 = vld [vmem:[#allocation19_spill] sm:$0xff]  ;;  %v3513_v43 = vld [vmem:[#allocation5 + $0x2dc] ss:$24 sps:$4 sm:$0xff]  }
 0x1dd   : > { %1682 = vmatmul.mubr.bf16.gmra.mrb[24].mxu0 %v4835_v33  ;;  %v946_v22 = vadd.f32 %v4511_v16, %v870_v5  ;;  %v826_v3 = vmul.f32 %v4783_v17, %v5234_v40  ;;  %v4857_v51 = vpack.c.bf16 %v975_v6, %v973_v63  ;;  %v869_v42 = vmul.f32 %v4508_v26, %v793_v45 }
 0x1de   : > { %v948_v19 = vadd.f32 %v4511_v16, %v872_v57  ;;  %v871_v12 = vmul.f32 %v4508_v26, %v795_v25  ;;  %2004 = vmatpush1.bf16.msra.mxu0 %v3502_v54  ;;  %1761 = vmatprep.mubr.bf16.mxu1 %v4852_v31  ;;  %v828_v41 = vmul.f32 %v3577_v47, %v5235_v39  ;;  %v3511_v54 = vld [vmem:[#allocation5 + $0x2d8] ss:$24 sps:$4 sm:$0xff]  }
 0x1df   : > { %v902_v24 = vmul.f32 %v4506_v53, %v826_v3  ;;  %1810 = vmatprep.subr.bf16.mxu1 %v3507_v48  ;;  %v825_v10 = vmul.f32 %v4783_v17, %v5236_v23  ;;  %v945_v14 = vadd.f32 %v4516_v50, %v869_v42  ;;  %v827_v58 = vmul.f32 %v3577_v47, %v5237_v18 }
 0x1e0   : > { %v996_v46 = vpack.c.bf16 %v948_v19, %v946_v22  ;;  %v947_v35 = vadd.f32 %v4516_v50, %v871_v12  ;;  %1811 = vmatpush1.bf16.msra.mxu1 %v3505_v38  ;;  %v904_v11 = vmul.f32 %v4506_v53, %v828_v41  ;;  %2005 = vmatprep.subr.bf16.mxu0 %v3510_v55 }
 0x1e1   : > { %1762 = vmatmul.mubr.bf16.gmra.mrb[24].mxu1 %v4857_v51  ;;  %v901_v63 = vmul.f32 %v4508_v26, %v825_v10  ;;  %v903_v17 = vmul.f32 %v4508_v26, %v827_v58  ;;  %v978_v48 = vadd.f32 %v4511_v16, %v902_v24  ;;  %1812 = vmatprep.subr.bf16.mxu1 %v3513_v43 }
 0x1e2   : > { %1691 = vmatprep.mubr.bf16.mxu0 %v996_v46  ;;  %v995_v5 = vpack.c.bf16 %v947_v35, %v945_v14  ;;  %2006 = vmatpush1.bf16.msra.mxu0 %v3508_v9  ;;  %v980_v6 = vadd.f32 %v4511_v16, %v904_v11 }
 0x1e3   : > { %v977_v47 = vadd.f32 %v4516_v50, %v901_v63  ;;  %v979_v57 = vadd.f32 %v4516_v50, %v903_v17  ;;  %v5238_v50 = vld [vmem:[#allocation24_spill] sm:$0xff] }
 0x1e4   : > { %1813 = vmatpush1.bf16.msra.mxu1 %v3511_v54  ;;  %v4878_v53 = vpack.c.bf16 %v980_v6, %v978_v48 }
 0x1e5   : > { %1692 = vmatmul.mubr.bf16.gmra.mrb[28].mxu0 %v995_v5  ;;  %v4881_v62 = vpack.c.bf16 %v979_v57, %v977_v47 }
 0x1e6   : > { %2007 = vmatprep.mubr.bf16.mxu0 %v4532_v44  ;;  %1771 = vmatprep.mubr.bf16.mxu1 %v4878_v53 }
 0x1e9   : > { %1772 = vmatmul.mubr.bf16.gmra.mrb[28].mxu1 %v4881_v62 }
 0x1ea   : > { %1814 = vmatprep.mubr.bf16.mxu1 %v4532_v44 }
 0x1ed   : > { %2008 = vmatmul.mubr.bf16.vlgmr.msra.gmra.mrb[32].mxu0 %v4534_v61 }
 0x1ee   : > { %2017 = vmatprep.mubr.bf16.mxu0 %v4565_v28 }
 0x1f1   : > { %1815 = vmatmul.mubr.bf16.vlgmr.msra.gmra.mrb[32].mxu1 %v4534_v61 }
 0x1f2   : > { %1824 = vmatprep.mubr.bf16.mxu1 %v4565_v28 }
 0x1f5   : > { %2018 = vmatmul.mubr.bf16.gmra.mrb[36].mxu0 %v4575_v59 }
 0x1f6   : > { %2027 = vmatprep.mubr.bf16.mxu0 %v4610_v60 }
 0x1f9   : > { %1825 = vmatmul.mubr.bf16.gmra.mrb[36].mxu1 %v4575_v59 }
 0x1fa   : > { %1834 = vmatprep.mubr.bf16.mxu1 %v4610_v60 }
 0x1fd   : > { %2028 = vmatmul.mubr.bf16.gmra.mrb[40].mxu0 %v4627_v29 }
 0x1fe   : > { %2037 = vmatprep.mubr.bf16.mxu0 %v4671_v2 }
 0x201   : > { %1835 = vmatmul.mubr.bf16.gmra.mrb[40].mxu1 %v4627_v29 }
 0x202   : > { %1844 = vmatprep.mubr.bf16.mxu1 %v4671_v2 }
 0x205   : > { %2038 = vmatmul.mubr.bf16.gmra.mrb[44].mxu0 %v4683_v13 }
 0x206   : > { %2047 = vmatprep.mubr.bf16.mxu0 %v4724_v1 }
 0x209   : > { %1845 = vmatmul.mubr.bf16.gmra.mrb[44].mxu1 %v4683_v13 }
 0x20a   : > { %1854 = vmatprep.mubr.bf16.mxu1 %v4724_v1 }
 0x20d   : > { %2048 = vmatmul.mubr.bf16.gmra.mrb[48].mxu0 %v4743_v34 }
 0x20e   : > { %2057 = vmatprep.mubr.bf16.mxu0 %v4786_v8 }
 0x211   : > { %1855 = vmatmul.mubr.bf16.gmra.mrb[48].mxu1 %v4743_v34 }
 0x212   : > { %1864 = vmatprep.mubr.bf16.mxu1 %v4786_v8 }
 0x215   : > { %2058 = vmatmul.mubr.bf16.gmra.mrb[52].mxu0 %v4791_v32 }
 0x216   : > { %2067 = vmatprep.mubr.bf16.mxu0 %v4829_v56 }
 0x219   : > { %1865 = vmatmul.mubr.bf16.gmra.mrb[52].mxu1 %v4791_v32 }
 0x21a   : > { %1874 = vmatprep.mubr.bf16.mxu1 %v4829_v56 }
 0x21d   : > { %2068 = vmatmul.mubr.bf16.gmra.mrb[56].mxu0 %v4835_v33 }
 0x21e   : > { %2077 = vmatprep.mubr.bf16.mxu0 %v996_v46 }
 0x221   : > { %1875 = vmatmul.mubr.bf16.gmra.mrb[56].mxu1 %v4835_v33 }
 0x222   : > { %1884 = vmatprep.mubr.bf16.mxu1 %v996_v46 }
 0x225   : > { %2078 = vmatmul.mubr.bf16.gmra.mrb[60].mxu0 %v995_v5 }
 0x226   : > { %2087 = vmatprep.mubr.bf16.mxu0 %v4545_v15 }
 0x229   : > { %1885 = vmatmul.mubr.bf16.gmra.mrb[60].mxu1 %v995_v5 }
 0x22a   : > { %1894 = vmatprep.mubr.bf16.mxu1 %v4545_v15 }
 0x22d   : > { %2088 = vmatmul.mubr.bf16.gmra.mrb[64].mxu0 %v5238_v50 }
 0x22e   : > { %2097 = vmatprep.mubr.bf16.mxu0 %v4586_v52 }
 0x231   : > { %1895 = vmatmul.mubr.bf16.gmra.mrb[64].mxu1 %v5238_v50 }
 0x232   : > { %1904 = vmatprep.mubr.bf16.mxu1 %v4586_v52 }
 0x235   : > { %2098 = vmatmul.mubr.bf16.gmra.mrb[68].mxu0 %v4598_v4 }
 0x236   : > { %2107 = vmatprep.mubr.bf16.mxu0 %v4642_v20 }
 0x239   : > { %1905 = vmatmul.mubr.bf16.gmra.mrb[68].mxu1 %v4598_v4 }
 0x23a   : > { %1914 = vmatprep.mubr.bf16.mxu1 %v4642_v20 }
 0x23d   : > { %2108 = vmatmul.mubr.bf16.gmra.mrb[72].mxu0 %v4655_v49 }
 0x23e   : > { %2117 = vmatprep.mubr.bf16.mxu0 %v4699_v21 }
 0x241   : > { %1915 = vmatmul.mubr.bf16.gmra.mrb[72].mxu1 %v4655_v49 }
 0x242   : > { %1924 = vmatprep.mubr.bf16.mxu1 %v4699_v21 }
 0x245   : > { %2118 = vmatmul.mubr.bf16.gmra.mrb[76].mxu0 %v4712_v0 }
 0x246   : > { %2127 = vmatprep.mubr.bf16.mxu0 %v4763_v7 }
 0x249   : > { %1925 = vmatmul.mubr.bf16.gmra.mrb[76].mxu1 %v4712_v0 }
 0x24a   : > { %1934 = vmatprep.mubr.bf16.mxu1 %v4763_v7 }
 0x24d   : > { %2128 = vmatmul.mubr.bf16.gmra.mrb[80].mxu0 %v4769_v36 }
 0x24e   : > { %2137 = vmatprep.mubr.bf16.mxu0 %v4802_v30 }
 0x251   : > { %1935 = vmatmul.mubr.bf16.gmra.mrb[80].mxu1 %v4769_v36 }
 0x252   : > { %1944 = vmatprep.mubr.bf16.mxu1 %v4802_v30 }
 0x255   : > { %2138 = vmatmul.mubr.bf16.gmra.mrb[84].mxu0 %v4813_v37 }
 0x256   : > { %2147 = vmatprep.mubr.bf16.mxu0 %v4852_v31 }
 0x259   : > { %1945 = vmatmul.mubr.bf16.gmra.mrb[84].mxu1 %v4813_v37 }
 0x25a   : > { %1954 = vmatprep.mubr.bf16.mxu1 %v4852_v31 }
 0x25d   : > { %2148 = vmatmul.mubr.bf16.gmra.mrb[88].mxu0 %v4857_v51 }
 0x25e   : > { %2157 = vmatprep.mubr.bf16.mxu0 %v4878_v53 }
 0x261   : > { %1955 = vmatmul.mubr.bf16.gmra.mrb[88].mxu1 %v4857_v51 }
 0x262   : > { %1964 = vmatprep.mubr.bf16.mxu1 %v4878_v53 }
 0x265   : > { %2158 = vmatmul.mubr.bf16.gmra.mrb[92].mxu0 %v4881_v62 }
 0x269   : > { %1965 = vmatmul.mubr.bf16.gmra.mrb[92].mxu1 %v4881_v62 }
 0x274   : > { %v1623_v26 = vpop.f32.mrb[0].mxu0 }
 0x275   : > { %v1625_v16 = vpop.f32.mrb[1].mxu0 }
 0x276   : > { %v3161_v44 = vpack.c.bf16 %v1625_v16, %v1623_v26  ;;  %v1627_v61 = vpop.f32.mrb[2].mxu0 }
 0x277   : > { %v1629_v15 = vpop.f32.mrb[3].mxu0 }
 0x278   : > { %2744 = vst [vmem:[%s4945_s22] sm:$0xff] %v3161_v44  ;;  %v3164_v28 = vpack.c.bf16 %v1629_v15, %v1627_v61 }
 0x279   : > { %v1703_v59 = vpop.f32.mrb[0].mxu1 }
 0x27a   : > { %2747 = vst [vmem:[%s4945_s22 + $0x18] sm:$0xff] %v3164_v28  ;;  %v1705_v52 = vpop.f32.mrb[1].mxu1 }
 0x27b   : > { %v3209_v4 = vpack.c.bf16 %v1705_v52, %v1703_v59  ;;  %v1707_v60 = vpop.f32.mrb[2].mxu1 }
 0x27c   : > { %v1709_v29 = vpop.f32.mrb[3].mxu1 }
 0x27d   : > { %2792 = vst [vmem:[%s4945_s22 + $0x180] sm:$0xff] %v3209_v4  ;;  %v3212_v20 = vpack.c.bf16 %v1709_v29, %v1707_v60 }
 0x27f   : > { %2795 = vst [vmem:[%s4945_s22 + $0x198] sm:$0xff] %v3212_v20  ;;  %v1633_v49 = vpop.f32.mrb[4].mxu0 }
 0x280   : > { %v1635_v2 = vpop.f32.mrb[5].mxu0 }
 0x281   : > { %v3167_v13 = vpack.c.bf16 %v1635_v2, %v1633_v49  ;;  %v1637_v21 = vpop.f32.mrb[6].mxu0 }
 0x282   : > { %v1639_v0 = vpop.f32.mrb[7].mxu0 }
 0x283   : > { %2750 = vst [vmem:[%s4945_s22 + $0x30] sm:$0xff] %v3167_v13  ;;  %v3170_v1 = vpack.c.bf16 %v1639_v0, %v1637_v21 }
 0x284   : > { %v1713_v34 = vpop.f32.mrb[4].mxu1 }
 0x285   : > { %2753 = vst [vmem:[%s4945_s22 + $0x48] sm:$0xff] %v3170_v1  ;;  %v1715_v7 = vpop.f32.mrb[5].mxu1 }
 0x286   : > { %v3215_v36 = vpack.c.bf16 %v1715_v7, %v1713_v34  ;;  %v1717_v8 = vpop.f32.mrb[6].mxu1 }
 0x287   : > { %v1719_v32 = vpop.f32.mrb[7].mxu1 }
 0x288   : > { %2798 = vst [vmem:[%s4945_s22 + $0x1b0] sm:$0xff] %v3215_v36  ;;  %v3218_v30 = vpack.c.bf16 %v1719_v32, %v1717_v8 }
 0x28a   : > { %2801 = vst [vmem:[%s4945_s22 + $0x1c8] sm:$0xff] %v3218_v30  ;;  %v1643_v37 = vpop.f32.mrb[8].mxu0 }
 0x28b   : > { %v1645_v56 = vpop.f32.mrb[9].mxu0 }
 0x28c   : > { %v3173_v33 = vpack.c.bf16 %v1645_v56, %v1643_v37  ;;  %v1647_v45 = vpop.f32.mrb[10].mxu0 }
 0x28d   : > { %v1649_v27 = vpop.f32.mrb[11].mxu0 }
 0x28e   : > { %2756 = vst [vmem:[%s4945_s22 + $0x60] sm:$0xff] %v3173_v33  ;;  %v3176_v25 = vpack.c.bf16 %v1649_v27, %v1647_v45 }
 0x28f   : > { %v1723_v38 = vpop.f32.mrb[8].mxu1 }
 0x290   : > { %2759 = vst [vmem:[%s4945_s22 + $0x78] sm:$0xff] %v3176_v25  ;;  %v1725_v31 = vpop.f32.mrb[9].mxu1 }
 0x291   : > { %v3221_v22 = vpack.c.bf16 %v1725_v31, %v1723_v38  ;;  %v1727_v40 = vpop.f32.mrb[10].mxu1 }
 0x292   : > { %v1729_v3 = vpop.f32.mrb[11].mxu1 }
 0x293   : > { %2804 = vst [vmem:[%s4945_s22 + $0x1e0] sm:$0xff] %v3221_v22  ;;  %v3224_v55 = vpack.c.bf16 %v1729_v3, %v1727_v40 }
 0x295   : > { %v1653_v51 = vpop.f32.mrb[12].mxu0  ;;  %2807 = vst [vmem:[%s4945_s22 + $0x1f8] sm:$0xff] %v3224_v55 }
 0x296   : > { %v1655_v19 = vpop.f32.mrb[13].mxu0 }
 0x297   : > { %v3179_v42 = vpack.c.bf16 %v1655_v19, %v1653_v51  ;;  %v1657_v12 = vpop.f32.mrb[14].mxu0 }
 0x298   : > { %v1659_v9 = vpop.f32.mrb[15].mxu0 }
 0x299   : > { %2762 = vst [vmem:[%s4945_s22 + $0x90] sm:$0xff] %v3179_v42  ;;  %v3182_v39 = vpack.c.bf16 %v1659_v9, %v1657_v12 }
 0x29b   : > { %2765 = vst [vmem:[%s4945_s22 + $0xa8] sm:$0xff] %v3182_v39  ;;  %v1733_v41 = vpop.f32.mrb[12].mxu1 }
 0x29c   : > { %v1735_v24 = vpop.f32.mrb[13].mxu1 }
 0x29d   : > { %v3227_v23 = vpack.c.bf16 %v1735_v24, %v1733_v41  ;;  %v1737_v10 = vpop.f32.mrb[14].mxu1 }
 0x29e   : > { %v1739_v43 = vpop.f32.mrb[15].mxu1 }
 0x29f   : > { %2810 = vst [vmem:[%s4945_s22 + $0x210] sm:$0xff] %v3227_v23  ;;  %v3230_v46 = vpack.c.bf16 %v1739_v43, %v1737_v10 }
 0x2a0   : > { %v1663_v14 = vpop.f32.mrb[16].mxu0 }
 0x2a1   : > { %2813 = vst [vmem:[%s4945_s22 + $0x228] sm:$0xff] %v3230_v46  ;;  %v1665_v35 = vpop.f32.mrb[17].mxu0 }
 0x2a2   : > { %v3185_v18 = vpack.c.bf16 %v1665_v35, %v1663_v14  ;;  %v1667_v58 = vpop.f32.mrb[18].mxu0 }
 0x2a3   : > { %v1669_v54 = vpop.f32.mrb[19].mxu0 }
 0x2a4   : > { %2768 = vst [vmem:[%s4945_s22 + $0xc0] sm:$0xff] %v3185_v18  ;;  %v3188_v11 = vpack.c.bf16 %v1669_v54, %v1667_v58  ;;  %v1743_v63 = vpop.f32.mrb[16].mxu1 }
 0x2a5   : > { %v1745_v5 = vpop.f32.mrb[17].mxu1 }
 0x2a6   : > { %2771 = vst [vmem:[%s4945_s22 + $0xd8] sm:$0xff] %v3188_v11  ;;  %v3233_v17 = vpack.c.bf16 %v1745_v5, %v1743_v63  ;;  %v1747_v48 = vpop.f32.mrb[18].mxu1 }
 0x2a7   : > { %v1749_v6 = vpop.f32.mrb[19].mxu1 }
 0x2a8   : > { %2816 = vst [vmem:[%s4945_s22 + $0x240] sm:$0xff] %v3233_v17  ;;  %v3236_v47 = vpack.c.bf16 %v1749_v6, %v1747_v48  ;;  %v1673_v57 = vpop.f32.mrb[20].mxu0 }
 0x2a9   : > { %v1675_v53 = vpop.f32.mrb[21].mxu0 }
 0x2aa   : > { %2819 = vst [vmem:[%s4945_s22 + $0x258] sm:$0xff] %v3236_v47  ;;  %v3191_v62 = vpack.c.bf16 %v1675_v53, %v1673_v57  ;;  %v1677_v50 = vpop.f32.mrb[22].mxu0 }
 0x2ab   : > { %v1679_v26 = vpop.f32.mrb[23].mxu0 }
 0x2ac   : > { %2774 = vst [vmem:[%s4945_s22 + $0xf0] sm:$0xff] %v3191_v62  ;;  %v3194_v16 = vpack.c.bf16 %v1679_v26, %v1677_v50  ;;  %v1753_v44 = vpop.f32.mrb[20].mxu1 }
 0x2ad   : > { %v1755_v61 = vpop.f32.mrb[21].mxu1 }
 0x2ae   : > { %2777 = vst [vmem:[%s4945_s22 + $0x108] sm:$0xff] %v3194_v16  ;;  %v3239_v15 = vpack.c.bf16 %v1755_v61, %v1753_v44  ;;  %v1757_v28 = vpop.f32.mrb[22].mxu1 }
 0x2af   : > { %v1759_v59 = vpop.f32.mrb[23].mxu1 }
 0x2b0   : > { %2822 = vst [vmem:[%s4945_s22 + $0x270] sm:$0xff] %v3239_v15  ;;  %v3242_v52 = vpack.c.bf16 %v1759_v59, %v1757_v28  ;;  %v1683_v4 = vpop.f32.mrb[24].mxu0 }
 0x2b1   : > { %v1685_v60 = vpop.f32.mrb[25].mxu0 }
 0x2b2   : > { %2825 = vst [vmem:[%s4945_s22 + $0x288] sm:$0xff] %v3242_v52  ;;  %v3197_v29 = vpack.c.bf16 %v1685_v60, %v1683_v4  ;;  %v1687_v20 = vpop.f32.mrb[26].mxu0 }
 0x2b3   : > { %v1689_v49 = vpop.f32.mrb[27].mxu0 }
 0x2b4   : > { %2780 = vst [vmem:[%s4945_s22 + $0x120] sm:$0xff] %v3197_v29  ;;  %v3200_v2 = vpack.c.bf16 %v1689_v49, %v1687_v20  ;;  %v1763_v13 = vpop.f32.mrb[24].mxu1 }
 0x2b5   : > { %v1765_v21 = vpop.f32.mrb[25].mxu1 }
 0x2b6   : > { %2783 = vst [vmem:[%s4945_s22 + $0x138] sm:$0xff] %v3200_v2  ;;  %v3245_v0 = vpack.c.bf16 %v1765_v21, %v1763_v13  ;;  %v1767_v1 = vpop.f32.mrb[26].mxu1 }
 0x2b7   : > { %v1769_v34 = vpop.f32.mrb[27].mxu1 }
 0x2b8   : > { %2828 = vst [vmem:[%s4945_s22 + $0x2a0] sm:$0xff] %v3245_v0  ;;  %v3248_v7 = vpack.c.bf16 %v1769_v34, %v1767_v1  ;;  %v1693_v36 = vpop.f32.mrb[28].mxu0 }
 0x2b9   : > { %v1695_v8 = vpop.f32.mrb[29].mxu0 }
 0x2ba   : > { %2831 = vst [vmem:[%s4945_s22 + $0x2b8] sm:$0xff] %v3248_v7  ;;  %v3203_v32 = vpack.c.bf16 %v1695_v8, %v1693_v36  ;;  %v1697_v30 = vpop.f32.mrb[30].mxu0 }
 0x2bb   : > { %v1699_v37 = vpop.f32.mrb[31].mxu0 }
 0x2bc   : > { %2786 = vst [vmem:[%s4945_s22 + $0x150] sm:$0xff] %v3203_v32  ;;  %v3206_v56 = vpack.c.bf16 %v1699_v37, %v1697_v30  ;;  %v1773_v33 = vpop.f32.mrb[28].mxu1 }
 0x2bd   : > { %v1775_v45 = vpop.f32.mrb[29].mxu1 }
 0x2be   : > { %2789 = vst [vmem:[%s4945_s22 + $0x168] sm:$0xff] %v3206_v56  ;;  %v3251_v27 = vpack.c.bf16 %v1775_v45, %v1773_v33  ;;  %v1777_v25 = vpop.f32.mrb[30].mxu1 }
 0x2bf   : > { %v1779_v38 = vpop.f32.mrb[31].mxu1 }
 0x2c0   : > { %2834 = vst [vmem:[%s4945_s22 + $0x2d0] sm:$0xff] %v3251_v27  ;;  %v3254_v31 = vpack.c.bf16 %v1779_v38, %v1777_v25  ;;  %v2009_v22 = vpop.f32.mrb[32].mxu0 }
 0x2c1   : > { %v2011_v40 = vpop.f32.mrb[33].mxu0 }
 0x2c2   : > { %2837 = vst [vmem:[%s4945_s22 + $0x2e8] sm:$0xff] %v3254_v31  ;;  %v3163_v3 = vpack.c.bf16 %v2011_v40, %v2009_v22  ;;  %v2013_v55 = vpop.f32.mrb[34].mxu0 }
 0x2c3   : > { %v2015_v51 = vpop.f32.mrb[35].mxu0 }
 0x2c4   : > { %2746 = vst [vmem:[%s4945_s22 + $0x10] sm:$0xff] %v3163_v3  ;;  %v3166_v19 = vpack.c.bf16 %v2015_v51, %v2013_v55  ;;  %v1816_v42 = vpop.f32.mrb[32].mxu1 }
 0x2c5   : > { %v1818_v12 = vpop.f32.mrb[33].mxu1 }
 0x2c6   : > { %2749 = vst [vmem:[%s4945_s22 + $0x28] sm:$0xff] %v3166_v19  ;;  %v3162_v9 = vpack.c.bf16 %v1818_v12, %v1816_v42  ;;  %v1820_v39 = vpop.f32.mrb[34].mxu1 }
 0x2c7   : > { %v1822_v41 = vpop.f32.mrb[35].mxu1 }
 0x2c8   : > { %2745 = vst [vmem:[%s4945_s22 + $0x8] sm:$0xff] %v3162_v9  ;;  %v3165_v24 = vpack.c.bf16 %v1822_v41, %v1820_v39  ;;  %v2019_v23 = vpop.f32.mrb[36].mxu0 }
 0x2c9   : > { %v2021_v10 = vpop.f32.mrb[37].mxu0 }
 0x2ca   : > { %2748 = vst [vmem:[%s4945_s22 + $0x20] sm:$0xff] %v3165_v24  ;;  %v3169_v43 = vpack.c.bf16 %v2021_v10, %v2019_v23  ;;  %v2023_v46 = vpop.f32.mrb[38].mxu0 }
 0x2cb   : > { %v2025_v14 = vpop.f32.mrb[39].mxu0 }
 0x2cc   : > { %2752 = vst [vmem:[%s4945_s22 + $0x40] sm:$0xff] %v3169_v43  ;;  %v3172_v35 = vpack.c.bf16 %v2025_v14, %v2023_v46  ;;  %v1826_v18 = vpop.f32.mrb[36].mxu1 }
 0x2cd   : > { %v1828_v58 = vpop.f32.mrb[37].mxu1 }
 0x2ce   : > { %2755 = vst [vmem:[%s4945_s22 + $0x58] sm:$0xff] %v3172_v35  ;;  %v3168_v54 = vpack.c.bf16 %v1828_v58, %v1826_v18  ;;  %v1830_v11 = vpop.f32.mrb[38].mxu1 }
 0x2cf   : > { %v1832_v63 = vpop.f32.mrb[39].mxu1 }
 0x2d0   : > { %2751 = vst [vmem:[%s4945_s22 + $0x38] sm:$0xff] %v3168_v54  ;;  %v3171_v5 = vpack.c.bf16 %v1832_v63, %v1830_v11  ;;  %v2029_v17 = vpop.f32.mrb[40].mxu0 }
 0x2d1   : > { %v2031_v48 = vpop.f32.mrb[41].mxu0 }
 0x2d2   : > { %2754 = vst [vmem:[%s4945_s22 + $0x50] sm:$0xff] %v3171_v5  ;;  %v3175_v6 = vpack.c.bf16 %v2031_v48, %v2029_v17  ;;  %v2033_v47 = vpop.f32.mrb[42].mxu0 }
 0x2d3   : > { %v2035_v57 = vpop.f32.mrb[43].mxu0 }
 0x2d4   : > { %2758 = vst [vmem:[%s4945_s22 + $0x70] sm:$0xff] %v3175_v6  ;;  %v3178_v53 = vpack.c.bf16 %v2035_v57, %v2033_v47  ;;  %v1836_v62 = vpop.f32.mrb[40].mxu1 }
 0x2d5   : > { %v1838_v50 = vpop.f32.mrb[41].mxu1 }
 0x2d6   : > { %2761 = vst [vmem:[%s4945_s22 + $0x88] sm:$0xff] %v3178_v53  ;;  %v3174_v26 = vpack.c.bf16 %v1838_v50, %v1836_v62  ;;  %v1840_v16 = vpop.f32.mrb[42].mxu1 }
 0x2d7   : > { %v1842_v44 = vpop.f32.mrb[43].mxu1 }
 0x2d8   : > { %2757 = vst [vmem:[%s4945_s22 + $0x68] sm:$0xff] %v3174_v26  ;;  %v3177_v61 = vpack.c.bf16 %v1842_v44, %v1840_v16  ;;  %v2039_v15 = vpop.f32.mrb[44].mxu0 }
 0x2d9   : > { %v2041_v28 = vpop.f32.mrb[45].mxu0 }
 0x2da   : > { %2760 = vst [vmem:[%s4945_s22 + $0x80] sm:$0xff] %v3177_v61  ;;  %v3181_v59 = vpack.c.bf16 %v2041_v28, %v2039_v15  ;;  %v2043_v52 = vpop.f32.mrb[46].mxu0 }
 0x2db   : > { %v2045_v4 = vpop.f32.mrb[47].mxu0 }
 0x2dc   : > { %2764 = vst [vmem:[%s4945_s22 + $0xa0] sm:$0xff] %v3181_v59  ;;  %v3184_v60 = vpack.c.bf16 %v2045_v4, %v2043_v52  ;;  %v1846_v29 = vpop.f32.mrb[44].mxu1 }
 0x2dd   : > { %v1848_v20 = vpop.f32.mrb[45].mxu1 }
 0x2de   : > { %2767 = vst [vmem:[%s4945_s22 + $0xb8] sm:$0xff] %v3184_v60  ;;  %v3180_v49 = vpack.c.bf16 %v1848_v20, %v1846_v29  ;;  %v1850_v2 = vpop.f32.mrb[46].mxu1 }
 0x2df   : > { %v1852_v13 = vpop.f32.mrb[47].mxu1 }
 0x2e0   : > { %2763 = vst [vmem:[%s4945_s22 + $0x98] sm:$0xff] %v3180_v49  ;;  %v3183_v21 = vpack.c.bf16 %v1852_v13, %v1850_v2  ;;  %v2049_v0 = vpop.f32.mrb[48].mxu0 }
 0x2e1   : > { %v2051_v1 = vpop.f32.mrb[49].mxu0 }
 0x2e2   : > { %2766 = vst [vmem:[%s4945_s22 + $0xb0] sm:$0xff] %v3183_v21  ;;  %v3187_v34 = vpack.c.bf16 %v2051_v1, %v2049_v0  ;;  %v2053_v7 = vpop.f32.mrb[50].mxu0 }
 0x2e3   : > { %v2055_v36 = vpop.f32.mrb[51].mxu0 }
 0x2e4   : > { %2770 = vst [vmem:[%s4945_s22 + $0xd0] sm:$0xff] %v3187_v34  ;;  %v3190_v8 = vpack.c.bf16 %v2055_v36, %v2053_v7  ;;  %v1856_v32 = vpop.f32.mrb[48].mxu1 }
 0x2e5   : > { %v1858_v30 = vpop.f32.mrb[49].mxu1 }
 0x2e6   : > { %2773 = vst [vmem:[%s4945_s22 + $0xe8] sm:$0xff] %v3190_v8  ;;  %v3186_v37 = vpack.c.bf16 %v1858_v30, %v1856_v32  ;;  %v1860_v56 = vpop.f32.mrb[50].mxu1 }
 0x2e7   : > { %v1862_v33 = vpop.f32.mrb[51].mxu1 }
 0x2e8   : > { %2769 = vst [vmem:[%s4945_s22 + $0xc8] sm:$0xff] %v3186_v37  ;;  %v3189_v45 = vpack.c.bf16 %v1862_v33, %v1860_v56  ;;  %v2059_v27 = vpop.f32.mrb[52].mxu0 }
 0x2e9   : > { %v2061_v25 = vpop.f32.mrb[53].mxu0 }
 0x2ea   : > { %2772 = vst [vmem:[%s4945_s22 + $0xe0] sm:$0xff] %v3189_v45  ;;  %v3193_v38 = vpack.c.bf16 %v2061_v25, %v2059_v27  ;;  %v2063_v31 = vpop.f32.mrb[54].mxu0 }
 0x2eb   : > { %v2065_v22 = vpop.f32.mrb[55].mxu0 }
 0x2ec   : > { %2776 = vst [vmem:[%s4945_s22 + $0x100] sm:$0xff] %v3193_v38  ;;  %v3196_v40 = vpack.c.bf16 %v2065_v22, %v2063_v31  ;;  %v1866_v3 = vpop.f32.mrb[52].mxu1 }
 0x2ed   : > { %v1868_v55 = vpop.f32.mrb[53].mxu1 }
 0x2ee   : > { %2779 = vst [vmem:[%s4945_s22 + $0x118] sm:$0xff] %v3196_v40  ;;  %v3192_v51 = vpack.c.bf16 %v1868_v55, %v1866_v3  ;;  %v1870_v19 = vpop.f32.mrb[54].mxu1 }
 0x2ef   : > { %v1872_v42 = vpop.f32.mrb[55].mxu1 }
 0x2f0   : > { %2775 = vst [vmem:[%s4945_s22 + $0xf8] sm:$0xff] %v3192_v51  ;;  %v3195_v12 = vpack.c.bf16 %v1872_v42, %v1870_v19  ;;  %v2069_v9 = vpop.f32.mrb[56].mxu0 }
 0x2f1   : > { %v2071_v39 = vpop.f32.mrb[57].mxu0 }
 0x2f2   : > { %2778 = vst [vmem:[%s4945_s22 + $0x110] sm:$0xff] %v3195_v12  ;;  %v3199_v41 = vpack.c.bf16 %v2071_v39, %v2069_v9  ;;  %v2073_v24 = vpop.f32.mrb[58].mxu0 }
 0x2f3   : > { %v2075_v23 = vpop.f32.mrb[59].mxu0 }
 0x2f4   : > { %2782 = vst [vmem:[%s4945_s22 + $0x130] sm:$0xff] %v3199_v41  ;;  %v3202_v10 = vpack.c.bf16 %v2075_v23, %v2073_v24  ;;  %v1876_v43 = vpop.f32.mrb[56].mxu1 }
 0x2f5   : > { %v1878_v46 = vpop.f32.mrb[57].mxu1 }
 0x2f6   : > { %2785 = vst [vmem:[%s4945_s22 + $0x148] sm:$0xff] %v3202_v10  ;;  %v3198_v14 = vpack.c.bf16 %v1878_v46, %v1876_v43  ;;  %v1880_v35 = vpop.f32.mrb[58].mxu1 }
 0x2f7   : > { %v1882_v18 = vpop.f32.mrb[59].mxu1 }
 0x2f8   : > { %2781 = vst [vmem:[%s4945_s22 + $0x128] sm:$0xff] %v3198_v14  ;;  %v3201_v58 = vpack.c.bf16 %v1882_v18, %v1880_v35  ;;  %v2079_v54 = vpop.f32.mrb[60].mxu0 }
 0x2f9   : > { %v2081_v11 = vpop.f32.mrb[61].mxu0 }
 0x2fa   : > { %2784 = vst [vmem:[%s4945_s22 + $0x140] sm:$0xff] %v3201_v58  ;;  %v3205_v63 = vpack.c.bf16 %v2081_v11, %v2079_v54  ;;  %v2083_v5 = vpop.f32.mrb[62].mxu0 }
 0x2fb   : > { %v2085_v17 = vpop.f32.mrb[63].mxu0 }
 0x2fc   : > { %2788 = vst [vmem:[%s4945_s22 + $0x160] sm:$0xff] %v3205_v63  ;;  %v3208_v48 = vpack.c.bf16 %v2085_v17, %v2083_v5  ;;  %v1886_v6 = vpop.f32.mrb[60].mxu1 }
 0x2fd   : > { %v1888_v47 = vpop.f32.mrb[61].mxu1 }
 0x2fe   : > { %2791 = vst [vmem:[%s4945_s22 + $0x178] sm:$0xff] %v3208_v48  ;;  %v3204_v57 = vpack.c.bf16 %v1888_v47, %v1886_v6  ;;  %v1890_v53 = vpop.f32.mrb[62].mxu1 }
 0x2ff   : > { %v1892_v62 = vpop.f32.mrb[63].mxu1 }
 0x300   : > { %2787 = vst [vmem:[%s4945_s22 + $0x158] sm:$0xff] %v3204_v57  ;;  %v3207_v50 = vpack.c.bf16 %v1892_v62, %v1890_v53  ;;  %v2089_v26 = vpop.f32.mrb[64].mxu0 }
 0x301   : > { %v2091_v16 = vpop.f32.mrb[65].mxu0 }
 0x302   : > { %2790 = vst [vmem:[%s4945_s22 + $0x170] sm:$0xff] %v3207_v50  ;;  %v3211_v44 = vpack.c.bf16 %v2091_v16, %v2089_v26  ;;  %v2093_v61 = vpop.f32.mrb[66].mxu0 }
 0x303   : > { %v2095_v15 = vpop.f32.mrb[67].mxu0 }
 0x304   : > { %2794 = vst [vmem:[%s4945_s22 + $0x190] sm:$0xff] %v3211_v44  ;;  %v3214_v28 = vpack.c.bf16 %v2095_v15, %v2093_v61  ;;  %v1896_v59 = vpop.f32.mrb[64].mxu1 }
 0x305   : > { %v1898_v52 = vpop.f32.mrb[65].mxu1 }
 0x306   : > { %2797 = vst [vmem:[%s4945_s22 + $0x1a8] sm:$0xff] %v3214_v28  ;;  %v3210_v4 = vpack.c.bf16 %v1898_v52, %v1896_v59  ;;  %v1900_v60 = vpop.f32.mrb[66].mxu1 }
 0x307   : > { %v1902_v29 = vpop.f32.mrb[67].mxu1 }
 0x308   : > { %2793 = vst [vmem:[%s4945_s22 + $0x188] sm:$0xff] %v3210_v4  ;;  %v3213_v20 = vpack.c.bf16 %v1902_v29, %v1900_v60  ;;  %v2099_v49 = vpop.f32.mrb[68].mxu0 }
 0x309   : > { %v2101_v2 = vpop.f32.mrb[69].mxu0 }
 0x30a   : > { %2796 = vst [vmem:[%s4945_s22 + $0x1a0] sm:$0xff] %v3213_v20  ;;  %v3217_v13 = vpack.c.bf16 %v2101_v2, %v2099_v49  ;;  %v2103_v21 = vpop.f32.mrb[70].mxu0 }
 0x30b   : > { %v2105_v0 = vpop.f32.mrb[71].mxu0 }
 0x30c   : > { %2800 = vst [vmem:[%s4945_s22 + $0x1c0] sm:$0xff] %v3217_v13  ;;  %v3220_v1 = vpack.c.bf16 %v2105_v0, %v2103_v21  ;;  %v1906_v34 = vpop.f32.mrb[68].mxu1 }
 0x30d   : > { %v1908_v7 = vpop.f32.mrb[69].mxu1 }
 0x30e   : > { %2803 = vst [vmem:[%s4945_s22 + $0x1d8] sm:$0xff] %v3220_v1  ;;  %v3216_v36 = vpack.c.bf16 %v1908_v7, %v1906_v34  ;;  %v1910_v8 = vpop.f32.mrb[70].mxu1 }
 0x30f   : > { %v1912_v32 = vpop.f32.mrb[71].mxu1 }
 0x310   : > { %2799 = vst [vmem:[%s4945_s22 + $0x1b8] sm:$0xff] %v3216_v36  ;;  %v3219_v30 = vpack.c.bf16 %v1912_v32, %v1910_v8  ;;  %v2109_v37 = vpop.f32.mrb[72].mxu0 }
 0x311   : > { %v2111_v56 = vpop.f32.mrb[73].mxu0 }
 0x312   : > { %2802 = vst [vmem:[%s4945_s22 + $0x1d0] sm:$0xff] %v3219_v30  ;;  %v3223_v33 = vpack.c.bf16 %v2111_v56, %v2109_v37  ;;  %v2113_v45 = vpop.f32.mrb[74].mxu0 }
 0x313   : > { %v2115_v27 = vpop.f32.mrb[75].mxu0 }
 0x314   : > { %2806 = vst [vmem:[%s4945_s22 + $0x1f0] sm:$0xff] %v3223_v33  ;;  %v3226_v25 = vpack.c.bf16 %v2115_v27, %v2113_v45  ;;  %v1916_v38 = vpop.f32.mrb[72].mxu1 }
 0x315   : > { %v1918_v31 = vpop.f32.mrb[73].mxu1 }
 0x316   : > { %2809 = vst [vmem:[%s4945_s22 + $0x208] sm:$0xff] %v3226_v25  ;;  %v3222_v22 = vpack.c.bf16 %v1918_v31, %v1916_v38  ;;  %v1920_v40 = vpop.f32.mrb[74].mxu1 }
 0x317   : > { %v1922_v3 = vpop.f32.mrb[75].mxu1 }
 0x318   : > { %2805 = vst [vmem:[%s4945_s22 + $0x1e8] sm:$0xff] %v3222_v22  ;;  %v3225_v55 = vpack.c.bf16 %v1922_v3, %v1920_v40  ;;  %v2119_v51 = vpop.f32.mrb[76].mxu0 }
 0x319   : > { %v2121_v19 = vpop.f32.mrb[77].mxu0 }
 0x31a   : > { %2808 = vst [vmem:[%s4945_s22 + $0x200] sm:$0xff] %v3225_v55  ;;  %v3229_v42 = vpack.c.bf16 %v2121_v19, %v2119_v51  ;;  %v2123_v12 = vpop.f32.mrb[78].mxu0 }
 0x31b   : > { %v2125_v9 = vpop.f32.mrb[79].mxu0 }
 0x31c   : > { %2812 = vst [vmem:[%s4945_s22 + $0x220] sm:$0xff] %v3229_v42  ;;  %v3232_v39 = vpack.c.bf16 %v2125_v9, %v2123_v12  ;;  %v1926_v41 = vpop.f32.mrb[76].mxu1 }
 0x31d   : > { %v1928_v24 = vpop.f32.mrb[77].mxu1 }
 0x31e   : > { %2815 = vst [vmem:[%s4945_s22 + $0x238] sm:$0xff] %v3232_v39  ;;  %v3228_v23 = vpack.c.bf16 %v1928_v24, %v1926_v41  ;;  %v1930_v10 = vpop.f32.mrb[78].mxu1 }
 0x31f   : > { %v1932_v43 = vpop.f32.mrb[79].mxu1 }
 0x320   : > { %2811 = vst [vmem:[%s4945_s22 + $0x218] sm:$0xff] %v3228_v23  ;;  %v3231_v46 = vpack.c.bf16 %v1932_v43, %v1930_v10  ;;  %v2129_v14 = vpop.f32.mrb[80].mxu0 }
 0x321   : > { %v2131_v35 = vpop.f32.mrb[81].mxu0 }
 0x322   : > { %2814 = vst [vmem:[%s4945_s22 + $0x230] sm:$0xff] %v3231_v46  ;;  %v3235_v18 = vpack.c.bf16 %v2131_v35, %v2129_v14  ;;  %v2133_v58 = vpop.f32.mrb[82].mxu0 }
 0x323   : > { %v2135_v54 = vpop.f32.mrb[83].mxu0 }
 0x324   : > { %2818 = vst [vmem:[%s4945_s22 + $0x250] sm:$0xff] %v3235_v18  ;;  %v3238_v11 = vpack.c.bf16 %v2135_v54, %v2133_v58  ;;  %v1936_v63 = vpop.f32.mrb[80].mxu1 }
 0x325   : > { %v1938_v5 = vpop.f32.mrb[81].mxu1 }
 0x326   : > { %2821 = vst [vmem:[%s4945_s22 + $0x268] sm:$0xff] %v3238_v11  ;;  %v3234_v17 = vpack.c.bf16 %v1938_v5, %v1936_v63  ;;  %v1940_v48 = vpop.f32.mrb[82].mxu1 }
 0x327   : > { %v1942_v6 = vpop.f32.mrb[83].mxu1 }
 0x328   : > { %2817 = vst [vmem:[%s4945_s22 + $0x248] sm:$0xff] %v3234_v17  ;;  %v3237_v47 = vpack.c.bf16 %v1942_v6, %v1940_v48  ;;  %v2139_v57 = vpop.f32.mrb[84].mxu0 }
 0x329   : > { %v2141_v53 = vpop.f32.mrb[85].mxu0 }
 0x32a   : > { %2820 = vst [vmem:[%s4945_s22 + $0x260] sm:$0xff] %v3237_v47  ;;  %v3241_v62 = vpack.c.bf16 %v2141_v53, %v2139_v57  ;;  %v2143_v50 = vpop.f32.mrb[86].mxu0 }
 0x32b   : > { %v2145_v26 = vpop.f32.mrb[87].mxu0 }
 0x32c   : > { %2824 = vst [vmem:[%s4945_s22 + $0x280] sm:$0xff] %v3241_v62  ;;  %v3244_v16 = vpack.c.bf16 %v2145_v26, %v2143_v50  ;;  %v1946_v44 = vpop.f32.mrb[84].mxu1 }
 0x32d   : > { %v1948_v61 = vpop.f32.mrb[85].mxu1 }
 0x32e   : > { %2827 = vst [vmem:[%s4945_s22 + $0x298] sm:$0xff] %v3244_v16  ;;  %v3240_v15 = vpack.c.bf16 %v1948_v61, %v1946_v44  ;;  %v1950_v28 = vpop.f32.mrb[86].mxu1 }
 0x32f   : > { %v1952_v59 = vpop.f32.mrb[87].mxu1 }
 0x330   : > { %2823 = vst [vmem:[%s4945_s22 + $0x278] sm:$0xff] %v3240_v15  ;;  %v3243_v52 = vpack.c.bf16 %v1952_v59, %v1950_v28  ;;  %v2149_v4 = vpop.f32.mrb[88].mxu0 }
 0x331   : > { %v2151_v60 = vpop.f32.mrb[89].mxu0 }
 0x332   : > { %2826 = vst [vmem:[%s4945_s22 + $0x290] sm:$0xff] %v3243_v52  ;;  %v3247_v29 = vpack.c.bf16 %v2151_v60, %v2149_v4  ;;  %v2153_v20 = vpop.f32.mrb[90].mxu0 }
 0x333   : > { %v2155_v49 = vpop.f32.mrb[91].mxu0 }
 0x334   : > { %2830 = vst [vmem:[%s4945_s22 + $0x2b0] sm:$0xff] %v3247_v29  ;;  %v3250_v2 = vpack.c.bf16 %v2155_v49, %v2153_v20  ;;  %v1956_v13 = vpop.f32.mrb[88].mxu1 }
 0x335   : > { %v1958_v21 = vpop.f32.mrb[89].mxu1 }
 0x336   : > { %2833 = vst [vmem:[%s4945_s22 + $0x2c8] sm:$0xff] %v3250_v2  ;;  %v3246_v0 = vpack.c.bf16 %v1958_v21, %v1956_v13  ;;  %v1960_v1 = vpop.f32.mrb[90].mxu1 }
 0x337   : > { %v1962_v34 = vpop.f32.mrb[91].mxu1 }
 0x338   : > { %2829 = vst [vmem:[%s4945_s22 + $0x2a8] sm:$0xff] %v3246_v0  ;;  %v3249_v7 = vpack.c.bf16 %v1962_v34, %v1960_v1  ;;  %v2159_v36 = vpop.f32.mrb[92].mxu0 }
 0x339   : > { %v2161_v8 = vpop.f32.mrb[93].mxu0 }
 0x33a   : > { %2832 = vst [vmem:[%s4945_s22 + $0x2c0] sm:$0xff] %v3249_v7  ;;  %v3253_v32 = vpack.c.bf16 %v2161_v8, %v2159_v36  ;;  %v2163_v30 = vpop.f32.mrb[94].mxu0 }
 0x33b   : > { %v2165_v37 = vpop.f32.mrb[95].mxu0 }
 0x33c   : > { %2836 = vst [vmem:[%s4945_s22 + $0x2e0] sm:$0xff] %v3253_v32  ;;  %v3256_v56 = vpack.c.bf16 %v2165_v37, %v2163_v30  ;;  %v1966_v33 = vpop.f32.mrb[92].mxu1 }
 0x33d   : > { %v1968_v45 = vpop.f32.mrb[93].mxu1 }
 0x33e   : > { %2839 = vst [vmem:[%s4945_s22 + $0x2f8] sm:$0xff] %v3256_v56  ;;  %v3252_v27 = vpack.c.bf16 %v1968_v45, %v1966_v33  ;;  %v1970_v25 = vpop.f32.mrb[94].mxu1 }
 0x33f   : > { %v1972_v38 = vpop.f32.mrb[95].mxu1 }
 0x340   : > { %2835 = vst [vmem:[%s4945_s22 + $0x2d8] sm:$0xff] %v3252_v27  ;;  %v3255_v31 = vpack.c.bf16 %v1972_v38, %v1970_v25 }
 0x342   : > { %2838 = vst [vmem:[%s4945_s22 + $0x2f0] sm:$0xff] %v3255_v31 }
 0x343   : > { %3649 = shalt.err (!%p3646_p5)
}
 0x344   : > { %s3650_s23 = scalar_lea.hbm %s5046_s6, 12288  ;;  %s3654_s14 = scalar_lea.hbm %s5103_s4, 24576 }
 0x345   : > { %p3651_p9 = scmp.ne.s32.totalorder %s5046_s6, %s3650_s23  ;;  %p3655_p3 = scmp.lt.u32.totalorder %s5046_s6, %s5103_s4 }
 0x346   : > { %p3656_p7 = scmp.lt.u32.totalorder %s3654_s14, %s3650_s23  ;;  %p3658_p4 = scmp.lt.u32.totalorder %s3650_s23, %s5046_s6 }
 0x347   : > { %p3652_p1 = pnand %p3651_p9, %p3854_p10 }
 0x348   : > { %p3657_p13 = por %p3656_p7, %p3655_p3 }
 0x349   : > { %p3653_p2 = pneg %p3652_p1 }
 0x34a   : > { %p3659_p6 = por %p3658_p4, %p3657_p13 }
 0x34c   : > { %p3660_p8 = pnand %p3659_p6, %p3653_p2 }
 0x34e   : > { %3663 = shalt.err (!%p3660_p8)
}
 0x34f   : > { %s3731_s28 = smov 384   ;;  %s3732_s24 = smov 24  }
 0x350   : > { %3297 = dma.vmem_to_hbm [thread:$0]  (%p3854_p10), %s5049_s13, 12288, %s5046_s6, %s2841_s18, %s3731_s28, %s3731_s28, %s3732_s24  }
 0x351 PF: > { %s2872_s30 = sand.u32 1, %s3702_s15   ;;  %p5239_p12 = scmp.ne.s32.totalorder %s5151_s26, 0 }
 0x352   : > { %p5240_p11 = scmp.ge.s32.totalorder %s3722_s20, 2  ;;  %s2873_s9 = scalar_lea.sflag [#allocation4], %s2872_s30 }
 0x354   : > { %p3308_p0 = pnand %p5240_p11, %p5239_p12 }
 0x356   : > { %3697 = dma.done.wait (!%p3308_p0), %s2873_s9, 12288  }
 0x357   : > { %3699 = vsyncadd (!%p3308_p0), %s2873_s9, 4294955008  ;;  %s21_s20 = sadd.s32 1, %s3722_s20   ;;  %s5241_s15 = smov %s3706_s16 }
 0x358   : > { %p18_p5 = scmp.ge.s32.totalorder %s21_s20, 4   ;;  %s5242_s16 = smov %s3710_s17 }
 0x359   : > { %s5243_s17 = smov %s3863_s10  ;;  %s5244_s18 = smov %s3718_s19 }
 0x35a   : > { %s5245_s19 = smov %s5247_s5  ;;  %20 = sbr.rel (!%p18_p5) target bundleno = 7 (0x7), region = 85 }
 0x361   :  { %2878 = vsyncpa [#allocation3], 1 }
 0x362   :  { %2880 = vsyncpa [#allocation3 + $0x1], 1 }
 0x363   :  { %2881 = vsyncpa [#allocation6], 1 }
 0x364   :  { %2882 = vsyncpa [#allocation4], 1 }
 0x365   :  { %2884 = vsyncpa [#allocation4 + $0x1], 1 }

// kernel: tpu_custom_call.1
= control target key start
LH: loop header
LB: loop body
LE: loop exit
PB: predicated region body
PF: predicated region fallthrough
CT: control target
= control target key end

     0   :  { %9 = vsyncpa [#allocation3], 0  ;;  %s5099_s0 = inlined_call_operand.hbm [shape: f32[2,256,256], index: 0, kind: input, shape index: {}]   ;;  %s5100_s1 = inlined_call_operand.vmem [shape: f32[1,256], index: 1, kind: input, shape index: {}]   ;;  %s5101_s2 = inlined_call_operand.vmem [shape: f32[1,256], index: 2, kind: input, shape index: {}]   ;;  %s5102_s3 = inlined_call_operand.hbm [shape: bf16[256,768], index: 3, kind: input, shape index: {}]   ;;  %s5103_s4 = inlined_call_operand.hbm [shape: bf16[2,256,768], index: 4, kind: output, shape index: {}]  }
   0x1   :  { %11 = vsyncpa [#allocation3 + $0x1], 0 }
   0x2   :  { %12 = vsyncpa [#allocation6], 0 }
   0x3   :  { %13 = vsyncpa [#allocation4], 0 }
   0x4   :  { %15 = vsyncpa [#allocation4 + $0x1], 0  ;;  %s3758_s15 = smov 0   ;;  %s3760_s16 = smov 0  }
   0x5   :  { %s3762_s17 = smov 0   ;;  %s3764_s18 = smov 0  }
   0x6   :  { %s3766_s19 = smov 0   ;;  %s3768_s20 = smov 0  }
   0x7 LB: > { %s2954_s21 = sadd.s32 4294967295, %s3722_s20   ;;  %s2955_s22 = sadd.s32 4294967294, %s3722_s20   ;;  %s3722_s20 = sphi %s3768_s20, %s21_s20   ;;  %s3718_s19 = sphi %s3766_s19, %s5245_s19   ;;  %s3714_s18 = sphi %s3764_s18, %s5244_s18   ;;  %s3710_s17 = sphi %s3762_s17, %s5243_s17   ;;  %s3706_s16 = sphi %s3760_s16, %s5242_s16   ;;  %s3702_s15 = sphi %s3758_s15, %s5241_s15  }
   0x8   : > { %p55_p0 = scmp.ne.s32.totalorder %s3706_s16, %s3702_s15  ;;  %p3792_p1 = scmp.eq.s32.totalorder %s2954_s21, 0 }
   0x9   : > { %p3796_p2 = scmp.eq.s32.totalorder %s2954_s21, 1  ;;  %p150_p3 = scmp.eq.s32.totalorder %s2955_s22, 1 }
   0xa   : > { %s5148_s23 = scalar_select %p3792_p1, 1, 0 }
   0xb   : > { %s5149_s24 = scalar_select %p3796_p2, 1, 0 }
   0xc   : > { %p3802_p4 = por %p3792_p1, %p55_p0  ;;  %p2956_p5 = scmp.ge.s32.totalorder %s3722_s20, 1 }
   0xd   : > { %p3807_p6 = por %p150_p3, %p55_p0  ;;  %p157_p7 = scmp.lt.s32.totalorder %s3722_s20, 3 }
   0xe   : > { %s5150_s25 = scalar_select %p3802_p4, 1, 0 }
   0xf   : > { %s5151_s26 = scalar_select %p3807_p6, 1, 0 }
  0x10   : > { %p3812_p8 = pnand %p2956_p5, %p157_p7  ;;  %s3724_s28 = smov [#allocation5]  }
  0x11   : > { %s175_s29 = sshll.u32 %s3724_s28, 4  ;;  %s33_s5 = sadd.s32 1, %s3718_s19  ;;  %s176_s29 = int_to_ptr.vmem [resolvable:$true] %s175_s29 }
  0x12   : > { %s5152_s27 = scalar_select %p3812_p8, 1, 0 }
  0x13   : > { %p3299_p9 = pneg %p3812_p8  ;;  %s3578_s8 = scalar_lea.hbm %s5102_s3, 12288 }
  0x14   : > { %p3579_p12 = scmp.ne.s32.totalorder %s5102_s3, %s3578_s8  ;;  %p3585_p5 = scmp.lt.u32.totalorder %s3578_s8, %s5102_s3 }
  0x15   : > { %p3821_p11 = pnand %p3299_p9, %p3792_p1 }
  0x17   : > { %p3580_p13 = pneg %p3821_p11 }
  0x19   : > { %p3581_p0 = pnand %p3580_p13, %p3579_p12 }
  0x1b   : > { %p3582_p3 = pneg %p3581_p0 }
  0x1d   : > { %p3587_p7 = pnand %p3585_p5, %p3582_p3 }
  0x1f   : > { %3590 = shalt.err (!%p3587_p7)
}
  0x20   : > { %s3591_s13 = scalar_lea.vmem %s176_s29, 12288  ;;  %p3599_p1 = scmp.lt.s32.totalorder %s176_s29, %s176_s29 }
  0x21   : > { %p3592_p9 = scmp.ne.s32.totalorder %s176_s29, %s3591_s13  ;;  %p3600_p4 = scmp.lt.s32.totalorder %s3591_s13, %s3591_s13 }
  0x23   : > { %p3594_p10 = pnand %p3592_p9, %p3580_p13  ;;  %p3601_p8 = por %p3600_p4, %p3599_p1 }
  0x25   : > { %p3595_p6 = pneg %p3594_p10 }
  0x27   : > { %p3602_p2 = pnand %p3601_p8, %p3595_p6 }
  0x29   : > { %3605 = shalt.err (!%p3602_p2)
}
  0x2a   : > { %s3725_s14 = smov 384   ;;  %s3726_s21 = smov 24  }
  0x2b   : > { %3302 = dma.hbm_to_vmem [thread:$0]  (!%p3821_p11), %s5102_s3, 12288, %s176_s29, [#allocation6], %s3725_s14, %s3725_s14, %s3726_s21  }
  0x2c   : > { %p35_p1 = scmp.ge.s32.totalorder %s33_s5, 2  ;;  %s42_s6 = sadd.s32 1, %s3710_s17 }
  0x2d   : > { %p49_p2 = scmp.ne.s32.totalorder %s3710_s17, %s3706_s16  ;;  %p50_p4 = scmp.eq.s32.totalorder %s3722_s20, 0 }
  0x2e   : > { %s5247_s5 = smov (%p35_p1, %s33_s5), 0  ;;  %p5155_p8 = scmp.ne.s32.totalorder %s5149_s24, 0 }
  0x2f   : > { %p3848_p6 = por %p50_p4, %p49_p2  ;;  %s37_s30 = ssub.s32 %s3718_s19, %s5247_s5 }
  0x30   : > { %p3854_p10 = por %p5155_p8, %p49_p2  ;;  %p3312_p12 = scmp.lt.s32.totalorder %s3722_s20, 2 }
  0x31   : > { %p40_p11 = scmp.eq.s32.totalorder %s37_s30, 0  ;;  %s189_s29 = sand.u32 1, %s3710_s17  }
  0x32   : > { %s2959_s9 = sshll.u32 %s189_s29, 9  ;;  %s3160_s11 = sshll.u32 %s3718_s19, 13 }
  0x33   : > { %s3863_s10 = scalar_select %p40_p11, %s3710_s17, %s42_s6  }
  0x34   : > { %s3869_s14 = scalar_lea.hbm %s5099_s0, %s3160_s11  ;;  %s193_s24 = scalar_lea.vmem [#allocation2], %s2959_s9 }
  0x35   : > { %s203_s21 = sshll.u32 %s193_s24, 4  ;;  %p3875_p13 = pnand %p3312_p12, %p3848_p6  ;;  %s3871_s21 = int_to_ptr.vmem [resolvable:$true] %s203_s21 }
  0x36   : > { %s3879_s28 = scalar_lea.sflag [#allocation3], %s189_s29  ;;  %s3606_s6 = scalar_lea.hbm %s3869_s14, 8192 }
  0x37   : > { %p3607_p0 = scmp.ne.s32.totalorder %s3869_s14, %s3606_s6  ;;  %p3608_p3 = pneg %p3875_p13 }
  0x38   : > { %s3611_s7 = scalar_lea.hbm %s5099_s0, 16384  ;;  %p3612_p9 = scmp.lt.u32.totalorder %s3869_s14, %s5099_s0 }
  0x39   : > { %p3609_p5 = pnand %p3608_p3, %p3607_p0  ;;  %p3613_p1 = scmp.lt.u32.totalorder %s3611_s7, %s3606_s6 }
  0x3a   : > { %p3615_p4 = scmp.lt.u32.totalorder %s3606_s6, %s3869_s14 }
  0x3b   : > { %p3610_p7 = pneg %p3609_p5  ;;  %p3614_p2 = por %p3613_p1, %p3612_p9 }
  0x3d   : > { %p3616_p6 = por %p3615_p4, %p3614_p2 }
  0x3f   : > { %p3617_p8 = pnand %p3616_p6, %p3610_p7 }
  0x41   : > { %3620 = shalt.err (!%p3617_p8)
}
  0x42   : > { %s3621_s29 = scalar_lea.vmem %s3871_s21, 8192  ;;  %s3727_s13 = smov [#allocation2]  }
  0x43   : > { %p3622_p12 = scmp.ne.s32.totalorder %s3871_s21, %s3621_s29  ;;  %s3626_s24 = sshll.u32 %s3727_s13, 4  ;;  %s3627_s24 = int_to_ptr.vmem [resolvable:$false] %s3626_s24 }
  0x44   : > { %s3628_s30 = scalar_lea.vmem %s3627_s24, 16384  ;;  %p3629_p5 = scmp.lt.s32.totalorder %s3871_s21, %s3627_s24 }
  0x45   : > { %p3624_p11 = pnand %p3622_p12, %p3608_p3  ;;  %p3630_p9 = scmp.lt.s32.totalorder %s3628_s30, %s3621_s29 }
  0x47   : > { %p3625_p0 = pneg %p3624_p11  ;;  %p3631_p1 = por %p3630_p9, %p3629_p5 }
  0x49   : > { %p3632_p2 = pnand %p3631_p1, %p3625_p0 }
  0x4b   : > { %3635 = shalt.err (!%p3632_p2)
}
  0x4c   : > { %s3728_s6 = smov 256   ;;  %s3729_s9 = smov 16  }
  0x4d   : > { %3306 = dma.hbm_to_vmem [thread:$0]  (!%p3875_p13), %s3869_s14, 8192, %s3871_s21, %s3879_s28, %s3728_s6, %s3728_s6, %s3729_s9  }
  0x4e   : > { %p5158_p3 = scmp.ne.s32.totalorder %s5152_s27, 0 }
  0x50   : > { %215 = sbr.rel (%p5158_p3) target bundleno = 849 (0x351), region = 36 }
  0x57   : > { %s3910_s7 = sand.u32 1, %s3706_s16   ;;  %p5159_p7 = scmp.ne.s32.totalorder %s5150_s25, 0 }
  0x58   : > { %s2963_s11 = sshll.u32 %s3910_s7, 9  ;;  %s218_s12 = scalar_lea.sflag [#allocation3], %s3910_s7 }
  0x59   : > { %s3914_s29 = scalar_lea.vmem [#allocation2], %s2963_s11 }
  0x5a   : > { %3689 = dma.done.wait (%p5159_p7), %s218_s12, 8192  }
  0x5b   : > { %3691 = vsyncadd (%p5159_p7), %s218_s12, 4294959104  ;;  %p5160_p13 = scmp.ne.s32.totalorder %s5148_s23, 0 }
  0x5d   : > { %3693 = dma.done.wait (%p5160_p13), [#allocation6], 12288  }
  0x5e   : > { %3695 = vsyncadd (%p5160_p13), [#allocation6], 4294955008  ;;  %v3925_v0 = vld [vmem:[%s3914_s29] sm:$0xff]  ;;  %v3928_v1 = vld [vmem:[%s3914_s29 + $0x8] sm:$0xff]  ;;  %s3289_s21 = smul.u32 768, %s3910_s7  ;;  %s3730_s11 = smov [#allocation7]  }
  0x5f   : > { %v3931_v2 = vld [vmem:[%s3914_s29 + $0x100] sm:$0xff]  ;;  %v316_v3 = vadd.f32 %v3928_v1, %v3925_v0  ;;  %v3936_v4 = vld [vmem:[%s3914_s29 + $0x108] sm:$0xff]  ;;  %v3939_v5 = vld [vmem:[%s3914_s29 + $0x10] sm:$0xff]  ;;  %s3290_s28 = smul.u32 12288, %s3714_s18  ;;  %s2841_s18 = scalar_lea.sflag [#allocation4], %s3910_s7 }
  0x60   : > { %v3942_v6 = vld [vmem:[%s3914_s29 + $0x18] sm:$0xff]  ;;  %v364_v7 = vadd.f32 %v3936_v4, %v3931_v2  ;;  %v3947_v8 = vld [vmem:[%s3914_s29 + $0x110] sm:$0xff]  ;;  %v3957_v12 = vld [vmem:[%s3914_s29 + $0x20] sm:$0xff]  ;;  %s4945_s22 = scalar_lea.vmem [#allocation7], %s3289_s21  ;;  %s3640_s12 = sshll.u32 %s3730_s11, 4  ;;  %s3641_s12 = int_to_ptr.vmem [resolvable:$false] %s3640_s12 }
  0x61   : > { %v3950_v9 = vld [vmem:[%s3914_s29 + $0x118] sm:$0xff]  ;;  %317 = vadd.xlane.f32.xlu0 %v316_v3  ;;  %v319_v10 = vadd.f32 %v3942_v6, %v3939_v5  ;;  %v3960_v13 = vld [vmem:[%s3914_s29 + $0x28] sm:$0xff]  ;;  %v3963_v14 = vld [vmem:[%s3914_s29 + $0x30] sm:$0xff]  ;;  %s2857_s13 = sshll.u32 %s4945_s22, 4  ;;  %s5046_s6 = scalar_lea.hbm %s5103_s4, %s3290_s28  ;;  %s5049_s13 = int_to_ptr.vmem [resolvable:$true] %s2857_s13 }
  0x62   : > { %365 = vadd.xlane.f32.xlu1 %v364_v7  ;;  %v367_v11 = vadd.f32 %v3950_v9, %v3947_v8  ;;  %v3966_v15 = vld [vmem:[%s3914_s29 + $0x38] sm:$0xff]  ;;  %v322_v16 = vadd.f32 %v3960_v13, %v3957_v12  ;;  %v3973_v18 = vld [vmem:[%s3914_s29 + $0x120] sm:$0xff]  ;;  %v3976_v19 = vld [vmem:[%s3914_s29 + $0x128] sm:$0xff]  ;;  %s3636_s9 = scalar_lea.vmem %s5049_s13, 12288  ;;  %p3643_p12 = scmp.lt.s32.totalorder %s5049_s13, %s3641_s12 }
  0x63   : > { %v325_v17 = vadd.f32 %v3966_v15, %v3963_v14  ;;  %v3979_v20 = vld [vmem:[%s3914_s29 + $0x130] sm:$0xff]  ;;  %v3982_v21 = vld [vmem:[%s3914_s29 + $0x138] sm:$0xff]  ;;  %v370_v22 = vadd.f32 %v3976_v19, %v3973_v18  ;;  %v3989_v24 = vld [vmem:[%s3914_s29 + $0x40] sm:$0xff]  ;;  %p3637_p4 = scmp.ne.s32.totalorder %s5049_s13, %s3636_s9 }
  0x64   : > { %v373_v23 = vadd.f32 %v3982_v21, %v3979_v20  ;;  %v3992_v25 = vld [vmem:[%s3914_s29 + $0x48] sm:$0xff]  ;;  %v3995_v26 = vld [vmem:[%s3914_s29 + $0x50] sm:$0xff]  ;;  %v3998_v27 = vld [vmem:[%s3914_s29 + $0x58] sm:$0xff] }
  0x65   : > { %320 = vadd.xlane.f32.xlu0 %v319_v10  ;;  %v328_v28 = vadd.f32 %v3992_v25, %v3989_v24  ;;  %v331_v29 = vadd.f32 %v3998_v27, %v3995_v26  ;;  %v4005_v30 = vld [vmem:[%s3914_s29 + $0x140] sm:$0xff]  ;;  %v4008_v31 = vld [vmem:[%s3914_s29 + $0x148] sm:$0xff]  ;;  %v4011_v32 = vld [vmem:[%s3914_s29 + $0x150] sm:$0xff]  ;;  %p3638_p6 = pnand %p3637_p4, %p3854_p10 }
  0x66   : > { %368 = vadd.xlane.f32.xlu1 %v367_v11  ;;  %v4014_v33 = vld [vmem:[%s3914_s29 + $0x158] sm:$0xff]  ;;  %v376_v34 = vadd.f32 %v4008_v31, %v4005_v30  ;;  %v4021_v36 = vld [vmem:[%s3914_s29 + $0x60] sm:$0xff]  ;;  %v4024_v37 = vld [vmem:[%s3914_s29 + $0x68] sm:$0xff] }
  0x67   : > { %v379_v35 = vadd.f32 %v4014_v33, %v4011_v32  ;;  %v4027_v38 = vld [vmem:[%s3914_s29 + $0x70] sm:$0xff]  ;;  %v4030_v39 = vld [vmem:[%s3914_s29 + $0x78] sm:$0xff]  ;;  %v4033_v40 = vld [vmem:[%s3914_s29 + $0x160] sm:$0xff]  ;;  %v334_v42 = vadd.f32 %v4024_v37, %v4021_v36  ;;  %p3639_p8 = pneg %p3638_p6 }
  0x68   : > { %v4036_v41 = vld [vmem:[%s3914_s29 + $0x168] sm:$0xff]  ;;  %v4041_v43 = vld [vmem:[%s3914_s29 + $0x170] sm:$0xff]  ;;  %v4044_v44 = vld [vmem:[%s3914_s29 + $0x178] sm:$0xff]  ;;  %v337_v45 = vadd.f32 %v4030_v39, %v4027_v38 }
  0x69   : > { %323 = vadd.xlane.f32.xlu0 %v322_v16  ;;  %v4049_v46 = vld [vmem:[%s3914_s29 + $0x80] sm:$0xff]  ;;  %v4052_v47 = vld [vmem:[%s3914_s29 + $0x88] sm:$0xff]  ;;  %v382_v48 = vadd.f32 %v4036_v41, %v4033_v40  ;;  %v4057_v49 = vld [vmem:[%s3914_s29 + $0x90] sm:$0xff]  ;;  %v385_v51 = vadd.f32 %v4044_v44, %v4041_v43 }
  0x6a   : > { %326 = vadd.xlane.f32.xlu1 %v325_v17  ;;  %v4060_v50 = vld [vmem:[%s3914_s29 + $0x98] sm:$0xff]  ;;  %v4065_v52 = vld [vmem:[%s3914_s29 + $0x180] sm:$0xff]  ;;  %v4068_v53 = vld [vmem:[%s3914_s29 + $0x188] sm:$0xff]  ;;  %v340_v54 = vadd.f32 %v4052_v47, %v4049_v46 }
  0x6b   : > { %v4073_v55 = vld [vmem:[%s3914_s29 + $0x190] sm:$0xff]  ;;  %v4076_v56 = vld [vmem:[%s3914_s29 + $0x198] sm:$0xff]  ;;  %v343_v57 = vadd.f32 %v4060_v50, %v4057_v49  ;;  %v4081_v58 = vld [vmem:[%s3914_s29 + $0xa0] sm:$0xff]  ;;  %v388_v60 = vadd.f32 %v4068_v53, %v4065_v52 }
  0x6c   : > { %v4084_v59 = vld [vmem:[%s3914_s29 + $0xa8] sm:$0xff]  ;;  %v4089_v61 = vld [vmem:[%s3914_s29 + $0xb0] sm:$0xff]  ;;  %v4092_v62 = vld [vmem:[%s3914_s29 + $0xb8] sm:$0xff]  ;;  %v391_v63 = vadd.f32 %v4076_v56, %v4073_v55 }
  0x6d   : > { %371 = vadd.xlane.f32.xlu0 %v370_v22  ;;  %v4097_v3 = vld [vmem:[%s3914_s29 + $0x1a0] sm:$0xff]  ;;  %v4100_v7 = vld [vmem:[%s3914_s29 + $0x1a8] sm:$0xff]  ;;  %v346_v10 = vadd.f32 %v4084_v59, %v4081_v58  ;;  %v4105_v11 = vld [vmem:[%s3914_s29 + $0x1b0] sm:$0xff]  ;;  %v349_v17 = vadd.f32 %v4092_v62, %v4089_v61 }
  0x6e   : > { %374 = vadd.xlane.f32.xlu1 %v373_v23  ;;  %v4108_v16 = vld [vmem:[%s3914_s29 + $0x1b8] sm:$0xff]  ;;  %v4113_v22 = vld [vmem:[%s3914_s29 + $0xc0] sm:$0xff]  ;;  %v4116_v23 = vld [vmem:[%s3914_s29 + $0xc8] sm:$0xff] }
  0x6f   : > { %5161 = vst [vmem:[#allocation11_spill] sm:$0xff] %v4116_v23 }
  0x71   : > { %329 = vadd.xlane.f32.xlu0 %v328_v28  ;;  %v394_v28 = vadd.f32 %v4100_v7, %v4097_v3 }
  0x72   : > { %332 = vadd.xlane.f32.xlu1 %v331_v29  ;;  %v4121_v29 = vld [vmem:[%s3914_s29 + $0xd0] sm:$0xff] }
  0x73   : > { %5162 = vst [vmem:[#allocation12_spill] sm:$0xff] %v4121_v29 }
  0x75   : > { %377 = vadd.xlane.f32.xlu0 %v376_v34  ;;  %v4124_v34 = vld [vmem:[%s3914_s29 + $0xd8] sm:$0xff] }
  0x76   : > { %380 = vadd.xlane.f32.xlu1 %v379_v35  ;;  %5163 = vst [vmem:[#allocation13_spill] sm:$0xff] %v4124_v34  ;;  %v397_v35 = vadd.f32 %v4108_v16, %v4105_v11 }
  0x79   : > { %335 = vadd.xlane.f32.xlu0 %v334_v42  ;;  %v4129_v42 = vld [vmem:[%s3914_s29 + $0x1c0] sm:$0xff] }
  0x7a   : > { %338 = vadd.xlane.f32.xlu1 %v337_v45  ;;  %v4132_v45 = vld [vmem:[%s3914_s29 + $0x1c8] sm:$0xff] }
  0x7b   : > { %5164 = vst [vmem:[#allocation14_spill] sm:$0xff] %v4132_v45 }
  0x7d   : > { %383 = vadd.xlane.f32.xlu0 %v382_v48  ;;  %v352_v48 = vadd.f32 %v4116_v23, %v4113_v22  ;;  %v4168_v23 = vld [vmem:[%s3914_s29 + $0x1e8] sm:$0xff] }
  0x7e   : > { %386 = vadd.xlane.f32.xlu1 %v385_v51  ;;  %v4137_v51 = vld [vmem:[%s3914_s29 + $0x1d0] sm:$0xff]  ;;  %5170 = vst [vmem:[#allocation20_spill] sm:$0xff] %v4168_v23 }
  0x81   : > { %341 = vadd.xlane.f32.xlu0 %v340_v54  ;;  %v4140_v54 = vld [vmem:[%s3914_s29 + $0x1d8] sm:$0xff] }
  0x82   : > { %344 = vadd.xlane.f32.xlu1 %v343_v57  ;;  %5165 = vst [vmem:[#allocation15_spill] sm:$0xff] %v4140_v54  ;;  %v355_v57 = vadd.f32 %v4124_v34, %v4121_v29 }
  0x85   : > { %389 = vadd.xlane.f32.xlu0 %v388_v60  ;;  %v4145_v60 = vld [vmem:[%s3914_s29 + $0xe0] sm:$0xff] }
  0x86   : > { %392 = vadd.xlane.f32.xlu1 %v391_v63  ;;  %v4148_v63 = vld [vmem:[%s3914_s29 + $0xe8] sm:$0xff] }
  0x87   : > { %5166 = vst [vmem:[#allocation16_spill] sm:$0xff] %v4148_v63  ;;  %v358_v34 = vadd.f32 %v4148_v63, %v4145_v60  ;;  %v3375_v63 = vld [vmem:[#allocation5 + $0x30] ss:$24 sps:$4 sm:$0xff]  }
  0x89   : > { %347 = vadd.xlane.f32.xlu0 %v346_v10  ;;  %v400_v10 = vadd.f32 %v4132_v45, %v4129_v42  ;;  %v4174_v45 = vld [vmem:[%s3914_s29 + $0x1f8] sm:$0xff] }
  0x8a   : > { %350 = vadd.xlane.f32.xlu1 %v349_v17  ;;  %v403_v17 = vadd.f32 %v4140_v54, %v4137_v51  ;;  %5172 = vst [vmem:[#allocation22_spill] sm:$0xff] %v4174_v45 }
  0x8d   : > { %395 = vadd.xlane.f32.xlu0 %v394_v28  ;;  %v4155_v28 = vld [vmem:[%s3914_s29 + $0xf0] sm:$0xff] }
  0x8e   : > { %398 = vadd.xlane.f32.xlu1 %v397_v35  ;;  %5167 = vst [vmem:[#allocation17_spill] sm:$0xff] %v4155_v28  ;;  %v4158_v35 = vld [vmem:[%s3914_s29 + $0xf8] sm:$0xff] }
  0x8f   : > { %5168 = vst [vmem:[#allocation18_spill] sm:$0xff] %v4158_v35  ;;  %v361_v29 = vadd.f32 %v4158_v35, %v4155_v28  ;;  %v3372_v35 = vld [vmem:[#allocation5] ss:$24 sps:$4 sm:$0xff]   ;;  %v3373_v28 = vld [vmem:[#allocation5 + $0x34] ss:$24 sps:$4 sm:$0xff]  }
  0x91   : > { %353 = vadd.xlane.f32.xlu0 %v352_v48  ;;  %v4165_v48 = vld [vmem:[%s3914_s29 + $0x1e0] sm:$0xff] }
  0x92   : > { %356 = vadd.xlane.f32.xlu1 %v355_v57  ;;  %5169 = vst [vmem:[#allocation19_spill] sm:$0xff] %v4165_v48  ;;  %v4171_v57 = vld [vmem:[%s3914_s29 + $0x1f0] sm:$0xff]  ;;  %v406_v54 = vadd.f32 %v4168_v23, %v4165_v48  ;;  %v3378_v23 = vld [vmem:[#allocation5 + $0x60] ss:$24 sps:$4 sm:$0xff]   ;;  %s3642_s29 = scalar_lea.vmem %s3641_s12, 24576 }
  0x93   : > { %5171 = vst [vmem:[#allocation21_spill] sm:$0xff] %v4171_v57  ;;  %p3644_p11 = scmp.lt.s32.totalorder %s3642_s29, %s3636_s9 }
  0x95   : > { %401 = vadd.xlane.f32.xlu0 %v400_v10  ;;  %v409_v10 = vadd.f32 %v4174_v45, %v4171_v57  ;;  %p3645_p0 = por %p3644_p11, %p3643_p12 }
  0x96   : > { %404 = vadd.xlane.f32.xlu1 %v403_v17  ;;  %v3370_v17 = vld [vmem:[#allocation5 + $0x4] ss:$24 sps:$4 sm:$0xff]  }
  0x97   : > { %1589 = vmatprep.subr.bf16.mxu0 %v3370_v17  ;;  %3257 = vmatprep.subr.bf16.mxu1 %v3370_v17  ;;  %v3384_v17 = vld [vmem:[#allocation5 + $0xc0] ss:$24 sps:$4 sm:$0xff]   ;;  %p3646_p5 = pnand %p3645_p0, %p3639_p8 }
  0x98   : > { %1590 = vmatpush1.bf16.msra.mxu0 %v3372_v35  ;;  %3273 = vmatpush1.bf16.msra.mxu1 %v3372_v35  ;;  %v3385_v35 = vld [vmem:[#allocation5 + $0xf4] ss:$24 sps:$4 sm:$0xff]  }
  0x99   : > { %359 = vadd.xlane.f32.xlu0 %v358_v34  ;;  %1591 = vmatprep.subr.bf16.mxu0 %v3373_v28  ;;  %v3376_v34 = vld [vmem:[#allocation5 + $0x64] ss:$24 sps:$4 sm:$0xff]  }
  0x9a   : > { %362 = vadd.xlane.f32.xlu1 %v361_v29  ;;  %3258 = vmatprep.subr.bf16.mxu1 %v3373_v28  ;;  %v3379_v29 = vld [vmem:[#allocation5 + $0x94] ss:$24 sps:$4 sm:$0xff]   ;;  %v3387_v28 = vld [vmem:[#allocation5 + $0xf0] ss:$24 sps:$4 sm:$0xff]  }
  0x9c   : > { %1592 = vmatpush1.bf16.msra.mxu0 %v3375_v63  ;;  %3274 = vmatpush1.bf16.msra.mxu1 %v3375_v63  ;;  %v3388_v63 = vld [vmem:[#allocation5 + $0x124] ss:$24 sps:$4 sm:$0xff]  }
  0x9d   : > { %407 = vadd.xlane.f32.xlu0 %v406_v54  ;;  %1593 = vmatprep.subr.bf16.mxu0 %v3376_v34  ;;  %v3381_v54 = vld [vmem:[#allocation5 + $0x90] ss:$24 sps:$4 sm:$0xff]  }
  0x9e   : > { %410 = vadd.xlane.f32.xlu1 %v409_v10  ;;  %3259 = vmatprep.subr.bf16.mxu1 %v3376_v34  ;;  %v3382_v10 = vld [vmem:[#allocation5 + $0xc4] ss:$24 sps:$4 sm:$0xff]   ;;  %v3390_v34 = vld [vmem:[#allocation5 + $0x120] ss:$24 sps:$4 sm:$0xff]  }
  0xa0   : > { %1594 = vmatpush1.bf16.msra.mxu0 %v3378_v23  ;;  %3275 = vmatpush1.bf16.msra.mxu1 %v3378_v23  ;;  %v3391_v23 = vld [vmem:[#allocation5 + $0x154] ss:$24 sps:$4 sm:$0xff]  }
  0xa1   : > { %1595 = vmatprep.subr.bf16.mxu0 %v3379_v29  ;;  %3260 = vmatprep.subr.bf16.mxu1 %v3379_v29  ;;  %v3393_v29 = vld [vmem:[#allocation5 + $0x150] ss:$24 sps:$4 sm:$0xff]  }
  0xa4   : > { %1596 = vmatpush1.bf16.msra.mxu0 %v3381_v54  ;;  %3276 = vmatpush1.bf16.msra.mxu1 %v3381_v54  ;;  %v3394_v54 = vld [vmem:[#allocation5 + $0x184] ss:$24 sps:$4 sm:$0xff]  }
  0xa5   : > { %1597 = vmatprep.subr.bf16.mxu0 %v3382_v10  ;;  %3261 = vmatprep.subr.bf16.mxu1 %v3382_v10  ;;  %v3396_v10 = vld [vmem:[#allocation5 + $0x180] ss:$24 sps:$4 sm:$0xff]  }
  0xa8   : > { %1598 = vmatpush1.bf16.msra.mxu0 %v3384_v17  ;;  %3277 = vmatpush1.bf16.msra.mxu1 %v3384_v17 }
  0xa9   : > { %1599 = vmatprep.subr.bf16.mxu0 %v3385_v35  ;;  %3262 = vmatprep.subr.bf16.mxu1 %v3385_v35 }
  0xac   : > { %1600 = vmatpush1.bf16.msra.mxu0 %v3387_v28  ;;  %3278 = vmatpush1.bf16.msra.mxu1 %v3387_v28 }
  0xad   : > { %1601 = vmatprep.subr.bf16.mxu0 %v3388_v63  ;;  %3263 = vmatprep.subr.bf16.mxu1 %v3388_v63 }
  0xb0   : > { %1602 = vmatpush1.bf16.msra.mxu0 %v3390_v34  ;;  %3279 = vmatpush1.bf16.msra.mxu1 %v3390_v34 }
  0xb1   : > { %1603 = vmatprep.subr.bf16.mxu0 %v3391_v23  ;;  %3264 = vmatprep.subr.bf16.mxu1 %v3391_v23 }
  0xb4   : > { %1604 = vmatpush1.bf16.msra.mxu0 %v3393_v29  ;;  %3280 = vmatpush1.bf16.msra.mxu1 %v3393_v29 }
  0xb5   : > { %1605 = vmatprep.subr.bf16.mxu0 %v3394_v54  ;;  %3265 = vmatprep.subr.bf16.mxu1 %v3394_v54 }
  0xb8   : > { %1606 = vmatpush1.bf16.msra.mxu0 %v3396_v10  ;;  %3281 = vmatpush1.bf16.msra.mxu1 %v3396_v10 }
  0xee   : > { %v318_v17 = vpop.xlane.xlu0 %317 }
  0xef   : > { %v413_v35 = vmul.f32 0.00390625, %v318_v17  ;;  %v366_v28 = vpop.xlane.xlu1 %365 }
  0xf0   : > { %v429_v45 = vmul.f32 0.00390625, %v366_v28 }
  0xf1   : > { %v4181_v63 = vsub.f32 %v3925_v0, %v413_v35  ;;  %v4184_v34 = vsub.f32 %v3928_v1, %v413_v35 }
  0xf2   : > { %v4187_v23 = vsub.f32 %v3931_v2, %v429_v45  ;;  %v4190_v29 = vsub.f32 %v3936_v4, %v429_v45  ;;  %v321_v57 = vpop.xlane.xlu0 %320 }
  0xf3   : > { %5173 = vst [vmem:[#allocation23_spill] sm:$0xff] %v4181_v63  ;;  %5174 = vst [vmem:[#allocation24_spill] sm:$0xff] %v4184_v34  ;;  %v414_v54 = vmul.f32 0.00390625, %v321_v57  ;;  %v369_v48 = vpop.xlane.xlu1 %368  ;;  %v509_v10 = vmul.f32 %v4181_v63, %v4181_v63  ;;  %v510_v17 = vmul.f32 %v4184_v34, %v4184_v34 }
  0xf4   : > { %5175 = vst [vmem:[#allocation25_spill] sm:$0xff] %v4187_v23  ;;  %5176 = vst [vmem:[#allocation26_spill] sm:$0xff] %v4190_v29  ;;  %v430_v0 = vmul.f32 0.00390625, %v369_v48  ;;  %v541_v1 = vmul.f32 %v4187_v23, %v4187_v23  ;;  %v542_v2 = vmul.f32 %v4190_v29, %v4190_v29 }
  0xf5   : > { %v4201_v35 = vsub.f32 %v3939_v5, %v414_v54  ;;  %v4204_v4 = vsub.f32 %v3942_v6, %v414_v54  ;;  %v573_v45 = vadd.f32 %v510_v17, %v509_v10 }
  0xf6   : > { %v4207_v57 = vsub.f32 %v3947_v8, %v430_v0  ;;  %v4210_v28 = vsub.f32 %v3950_v9, %v430_v0  ;;  %v324_v48 = vpop.xlane.xlu0 %323  ;;  %v621_v34 = vadd.f32 %v542_v2, %v541_v1 }
  0xf7   : > { %v415_v63 = vmul.f32 0.00390625, %v324_v48  ;;  %574 = vadd.xlane.f32.xlu0 %v573_v45  ;;  %v327_v23 = vpop.xlane.xlu1 %326  ;;  %v511_v29 = vmul.f32 %v4201_v35, %v4201_v35  ;;  %v512_v5 = vmul.f32 %v4204_v4, %v4204_v4 }
  0xf8   : > { %v416_v6 = vmul.f32 0.00390625, %v327_v23  ;;  %v543_v54 = vmul.f32 %v4207_v57, %v4207_v57  ;;  %v544_v8 = vmul.f32 %v4210_v28, %v4210_v28 }
  0xf9   : > { %v4221_v9 = vsub.f32 %v3957_v12, %v415_v63  ;;  %v4224_v10 = vsub.f32 %v3960_v13, %v415_v63  ;;  %v576_v17 = vadd.f32 %v512_v5, %v511_v29 }
  0xfa   : > { %v4227_v0 = vsub.f32 %v3963_v14, %v416_v6  ;;  %v4230_v1 = vsub.f32 %v3966_v15, %v416_v6  ;;  %v372_v23 = vpop.xlane.xlu0 %371  ;;  %v624_v48 = vadd.f32 %v544_v8, %v543_v54 }
  0xfb   : > { %v431_v2 = vmul.f32 0.00390625, %v372_v23  ;;  %622 = vadd.xlane.f32.xlu0 %v621_v34  ;;  %577 = vadd.xlane.f32.xlu1 %v576_v17  ;;  %v375_v45 = vpop.xlane.xlu1 %374  ;;  %v513_v12 = vmul.f32 %v4221_v9, %v4221_v9  ;;  %v514_v13 = vmul.f32 %v4224_v10, %v4224_v10 }
  0xfc   : > { %v432_v63 = vmul.f32 0.00390625, %v375_v45  ;;  %v515_v14 = vmul.f32 %v4227_v0, %v4227_v0  ;;  %v516_v15 = vmul.f32 %v4230_v1, %v4230_v1 }
  0xfd   : > { %v4241_v29 = vsub.f32 %v3973_v18, %v431_v2  ;;  %v4244_v34 = vsub.f32 %v3976_v19, %v431_v2  ;;  %v579_v5 = vadd.f32 %v514_v13, %v513_v12 }
  0xfe   : > { %v4247_v6 = vsub.f32 %v3979_v20, %v432_v63  ;;  %v4250_v54 = vsub.f32 %v3982_v21, %v432_v63  ;;  %v330_v8 = vpop.xlane.xlu0 %329  ;;  %v582_v45 = vadd.f32 %v516_v15, %v515_v14 }
  0xff   : > { %v417_v17 = vmul.f32 0.00390625, %v330_v8  ;;  %625 = vadd.xlane.f32.xlu1 %v624_v48  ;;  %580 = vadd.xlane.f32.xlu0 %v579_v5  ;;  %v333_v23 = vpop.xlane.xlu1 %332  ;;  %v545_v18 = vmul.f32 %v4241_v29, %v4241_v29  ;;  %v546_v19 = vmul.f32 %v4244_v34, %v4244_v34 }
 0x100   : > { %v418_v2 = vmul.f32 0.00390625, %v333_v23  ;;  %v547_v20 = vmul.f32 %v4247_v6, %v4247_v6  ;;  %v548_v21 = vmul.f32 %v4250_v54, %v4250_v54 }
 0x101   : > { %v4261_v12 = vsub.f32 %v3989_v24, %v417_v17  ;;  %v4264_v48 = vsub.f32 %v3992_v25, %v417_v17  ;;  %v627_v13 = vadd.f32 %v546_v19, %v545_v18  ;;  %v3397_v17 = vld [vmem:[#allocation5 + $0x1b4] ss:$24 sps:$4 sm:$0xff]   ;;  %v3399_v19 = vld [vmem:[#allocation5 + $0x1b0] ss:$24 sps:$4 sm:$0xff]  }
 0x102   : > { %v4267_v63 = vsub.f32 %v3995_v26, %v418_v2  ;;  %v4270_v14 = vsub.f32 %v3998_v27, %v418_v2  ;;  %v378_v15 = vpop.xlane.xlu0 %377  ;;  %v630_v23 = vadd.f32 %v548_v21, %v547_v20  ;;  %1607 = vmatprep.subr.bf16.mxu0 %v3397_v17  ;;  %3266 = vmatprep.subr.bf16.mxu1 %v3397_v17 }
 0x103   : > { %v433_v5 = vmul.f32 0.00390625, %v378_v15  ;;  %583 = vadd.xlane.f32.xlu1 %v582_v45  ;;  %628 = vadd.xlane.f32.xlu0 %v627_v13  ;;  %v381_v8 = vpop.xlane.xlu1 %380  ;;  %v517_v24 = vmul.f32 %v4261_v12, %v4261_v12  ;;  %v518_v25 = vmul.f32 %v4264_v48, %v4264_v48 }
 0x104   : > { %5177 = vst [vmem:[#allocation27_spill] sm:$0xff] %v4267_v63  ;;  %v434_v18 = vmul.f32 0.00390625, %v381_v8  ;;  %v519_v26 = vmul.f32 %v4267_v63, %v4267_v63  ;;  %v520_v27 = vmul.f32 %v4270_v14, %v4270_v14  ;;  %1608 = vmatpush1.bf16.msra.mxu0 %v3399_v19  ;;  %3282 = vmatpush1.bf16.msra.mxu1 %v3399_v19 }
 0x105   : > { %v4281_v45 = vsub.f32 %v4005_v30, %v433_v5  ;;  %v4284_v2 = vsub.f32 %v4008_v31, %v433_v5  ;;  %v585_v20 = vadd.f32 %v518_v25, %v517_v24  ;;  %v3400_v25 = vld [vmem:[#allocation5 + $0x1e4] ss:$24 sps:$4 sm:$0xff]  }
 0x106   : > { %v4287_v21 = vsub.f32 %v4011_v32, %v434_v18  ;;  %v4290_v13 = vsub.f32 %v4014_v33, %v434_v18  ;;  %v336_v15 = vpop.xlane.xlu0 %335  ;;  %v588_v63 = vadd.f32 %v520_v27, %v519_v26  ;;  %v3402_v26 = vld [vmem:[#allocation5 + $0x1e0] ss:$24 sps:$4 sm:$0xff]   ;;  %1609 = vmatprep.subr.bf16.mxu0 %v3400_v25  ;;  %3267 = vmatprep.subr.bf16.mxu1 %v3400_v25 }
 0x107   : > { %v419_v8 = vmul.f32 0.00390625, %v336_v15  ;;  %631 = vadd.xlane.f32.xlu1 %v630_v23  ;;  %586 = vadd.xlane.f32.xlu0 %v585_v20  ;;  %v339_v30 = vpop.xlane.xlu1 %338  ;;  %v549_v31 = vmul.f32 %v4281_v45, %v4281_v45  ;;  %v550_v5 = vmul.f32 %v4284_v2, %v4284_v2 }
 0x108   : > { %v420_v24 = vmul.f32 0.00390625, %v339_v30  ;;  %v551_v32 = vmul.f32 %v4287_v21, %v4287_v21  ;;  %v552_v33 = vmul.f32 %v4290_v13, %v4290_v13  ;;  %1610 = vmatpush1.bf16.msra.mxu0 %v3402_v26  ;;  %3283 = vmatpush1.bf16.msra.mxu1 %v3402_v26 }
 0x109   : > { %v4301_v17 = vsub.f32 %v4021_v36, %v419_v8  ;;  %v4304_v23 = vsub.f32 %v4024_v37, %v419_v8  ;;  %v633_v18 = vadd.f32 %v550_v5, %v549_v31  ;;  %v3403_v5 = vld [vmem:[#allocation5 + $0x214] ss:$24 sps:$4 sm:$0xff]  }
 0x10a   : > { %v4307_v27 = vsub.f32 %v4027_v38, %v420_v24  ;;  %v4310_v19 = vsub.f32 %v4030_v39, %v420_v24  ;;  %v384_v20 = vpop.xlane.xlu0 %383  ;;  %v636_v36 = vadd.f32 %v552_v33, %v551_v32  ;;  %v3405_v33 = vld [vmem:[#allocation5 + $0x210] ss:$24 sps:$4 sm:$0xff]   ;;  %1611 = vmatprep.subr.bf16.mxu0 %v3403_v5  ;;  %3268 = vmatprep.subr.bf16.mxu1 %v3403_v5 }
 0x10b   : > { %v435_v15 = vmul.f32 0.00390625, %v384_v20  ;;  %589 = vadd.xlane.f32.xlu1 %v588_v63  ;;  %634 = vadd.xlane.f32.xlu0 %v633_v18  ;;  %v387_v30 = vpop.xlane.xlu1 %386  ;;  %v521_v37 = vmul.f32 %v4301_v17, %v4301_v17  ;;  %v522_v8 = vmul.f32 %v4304_v23, %v4304_v23 }
 0x10c   : > { %v436_v31 = vmul.f32 0.00390625, %v387_v30  ;;  %v523_v38 = vmul.f32 %v4307_v27, %v4307_v27  ;;  %v524_v39 = vmul.f32 %v4310_v19, %v4310_v19  ;;  %1612 = vmatpush1.bf16.msra.mxu0 %v3405_v33  ;;  %3284 = vmatpush1.bf16.msra.mxu1 %v3405_v33 }
 0x10d   : > { %v4321_v63 = vsub.f32 %v4033_v40, %v435_v15  ;;  %v4324_v24 = vsub.f32 %v4036_v41, %v435_v15  ;;  %v591_v32 = vadd.f32 %v522_v8, %v521_v37  ;;  %v3406_v8 = vld [vmem:[#allocation5 + $0x244] ss:$24 sps:$4 sm:$0xff]  }
 0x10e   : > { %v4327_v25 = vsub.f32 %v4041_v43, %v436_v31  ;;  %v4330_v18 = vsub.f32 %v4044_v44, %v436_v31  ;;  %v342_v20 = vpop.xlane.xlu0 %341  ;;  %v594_v40 = vadd.f32 %v524_v39, %v523_v38  ;;  %v3408_v39 = vld [vmem:[#allocation5 + $0x240] ss:$24 sps:$4 sm:$0xff]   ;;  %1613 = vmatprep.subr.bf16.mxu0 %v3406_v8  ;;  %3269 = vmatprep.subr.bf16.mxu1 %v3406_v8 }
 0x10f   : > { %v421_v30 = vmul.f32 0.00390625, %v342_v20  ;;  %637 = vadd.xlane.f32.xlu1 %v636_v36  ;;  %592 = vadd.xlane.f32.xlu0 %v591_v32  ;;  %v345_v26 = vpop.xlane.xlu1 %344  ;;  %v553_v41 = vmul.f32 %v4321_v63, %v4321_v63  ;;  %v554_v15 = vmul.f32 %v4324_v24, %v4324_v24 }
 0x110   : > { %v422_v37 = vmul.f32 0.00390625, %v345_v26  ;;  %v555_v43 = vmul.f32 %v4327_v25, %v4327_v25  ;;  %v556_v44 = vmul.f32 %v4330_v18, %v4330_v18  ;;  %1614 = vmatpush1.bf16.msra.mxu0 %v3408_v39  ;;  %3285 = vmatpush1.bf16.msra.mxu1 %v3408_v39 }
 0x111   : > { %v4341_v36 = vsub.f32 %v4049_v46, %v421_v30  ;;  %v4344_v31 = vsub.f32 %v4052_v47, %v421_v30  ;;  %v639_v38 = vadd.f32 %v554_v15, %v553_v41  ;;  %v3409_v15 = vld [vmem:[#allocation5 + $0x274] ss:$24 sps:$4 sm:$0xff]  }
 0x112   : > { %v4347_v5 = vsub.f32 %v4057_v49, %v422_v37  ;;  %v4350_v32 = vsub.f32 %v4060_v50, %v422_v37  ;;  %v390_v20 = vpop.xlane.xlu0 %389  ;;  %v642_v46 = vadd.f32 %v556_v44, %v555_v43  ;;  %v3411_v44 = vld [vmem:[#allocation5 + $0x270] ss:$24 sps:$4 sm:$0xff]   ;;  %1615 = vmatprep.subr.bf16.mxu0 %v3409_v15  ;;  %3270 = vmatprep.subr.bf16.mxu1 %v3409_v15 }
 0x113   : > { %v437_v26 = vmul.f32 0.00390625, %v390_v20  ;;  %595 = vadd.xlane.f32.xlu1 %v594_v40  ;;  %640 = vadd.xlane.f32.xlu0 %v639_v38  ;;  %v393_v33 = vpop.xlane.xlu1 %392  ;;  %v525_v47 = vmul.f32 %v4341_v36, %v4341_v36  ;;  %v526_v30 = vmul.f32 %v4344_v31, %v4344_v31 }
 0x114   : > { %v438_v41 = vmul.f32 0.00390625, %v393_v33  ;;  %v527_v49 = vmul.f32 %v4347_v5, %v4347_v5  ;;  %v528_v50 = vmul.f32 %v4350_v32, %v4350_v32  ;;  %1616 = vmatpush1.bf16.msra.mxu0 %v3411_v44  ;;  %3286 = vmatpush1.bf16.msra.mxu1 %v3411_v44 }
 0x115   : > { %v4361_v40 = vsub.f32 %v4065_v52, %v437_v26  ;;  %v4364_v37 = vsub.f32 %v4068_v53, %v437_v26  ;;  %v597_v43 = vadd.f32 %v526_v30, %v525_v47  ;;  %v3412_v30 = vld [vmem:[#allocation5 + $0x2a4] ss:$24 sps:$4 sm:$0xff]  }
 0x116   : > { %v4367_v8 = vsub.f32 %v4073_v55, %v438_v41  ;;  %v4370_v38 = vsub.f32 %v4076_v56, %v438_v41  ;;  %v348_v20 = vpop.xlane.xlu0 %347  ;;  %v600_v52 = vadd.f32 %v528_v50, %v527_v49  ;;  %v3414_v50 = vld [vmem:[#allocation5 + $0x2a0] ss:$24 sps:$4 sm:$0xff]   ;;  %1617 = vmatprep.subr.bf16.mxu0 %v3412_v30  ;;  %3271 = vmatprep.subr.bf16.mxu1 %v3412_v30 }
 0x117   : > { %v423_v33 = vmul.f32 0.00390625, %v348_v20  ;;  %643 = vadd.xlane.f32.xlu1 %v642_v46  ;;  %598 = vadd.xlane.f32.xlu0 %v597_v43  ;;  %v351_v39 = vpop.xlane.xlu1 %350  ;;  %v557_v53 = vmul.f32 %v4361_v40, %v4361_v40  ;;  %v558_v26 = vmul.f32 %v4364_v37, %v4364_v37 }
 0x118   : > { %v424_v47 = vmul.f32 0.00390625, %v351_v39  ;;  %v559_v55 = vmul.f32 %v4367_v8, %v4367_v8  ;;  %v560_v56 = vmul.f32 %v4370_v38, %v4370_v38  ;;  %1618 = vmatpush1.bf16.msra.mxu0 %v3414_v50  ;;  %3287 = vmatpush1.bf16.msra.mxu1 %v3414_v50 }
 0x119   : > { %v4381_v46 = vsub.f32 %v4081_v58, %v423_v33  ;;  %v4384_v41 = vsub.f32 %v4084_v59, %v423_v33  ;;  %v645_v49 = vadd.f32 %v558_v26, %v557_v53  ;;  %v3415_v26 = vld [vmem:[#allocation5 + $0x2d4] ss:$24 sps:$4 sm:$0xff]  }
 0x11a   : > { %v4387_v15 = vsub.f32 %v4089_v61, %v424_v47  ;;  %v4390_v43 = vsub.f32 %v4092_v62, %v424_v47  ;;  %v396_v20 = vpop.xlane.xlu0 %395  ;;  %v648_v58 = vadd.f32 %v560_v56, %v559_v55  ;;  %v3417_v56 = vld [vmem:[#allocation5 + $0x2d0] ss:$24 sps:$4 sm:$0xff]   ;;  %1619 = vmatprep.subr.bf16.mxu0 %v3415_v26  ;;  %3272 = vmatprep.subr.bf16.mxu1 %v3415_v26 }
 0x11b   : > { %v439_v39 = vmul.f32 0.00390625, %v396_v20  ;;  %601 = vadd.xlane.f32.xlu1 %v600_v52  ;;  %646 = vadd.xlane.f32.xlu0 %v645_v49  ;;  %v399_v44 = vpop.xlane.xlu1 %398  ;;  %v529_v59 = vmul.f32 %v4381_v46, %v4381_v46  ;;  %v530_v33 = vmul.f32 %v4384_v41, %v4384_v41  ;;  %v5186_v26 = vld [vmem:[#allocation12_spill] sm:$0xff] }
 0x11c   : > { %5178 = vst [vmem:[#allocation28_spill] sm:$0xff] %v4387_v15  ;;  %v440_v53 = vmul.f32 0.00390625, %v399_v44  ;;  %v531_v61 = vmul.f32 %v4387_v15, %v4387_v15  ;;  %v532_v62 = vmul.f32 %v4390_v43, %v4390_v43  ;;  %1620 = vmatpush1.bf16.msra.mxu0 %v3417_v56  ;;  %3288 = vmatpush1.bf16.msra.mxu1 %v3417_v56 }
 0x11d   : > { %v4401_v52 = vsub.f32 %v4097_v3, %v439_v39  ;;  %v4404_v47 = vsub.f32 %v4100_v7, %v439_v39  ;;  %v603_v55 = vadd.f32 %v530_v33, %v529_v59  ;;  %v3420_v33 = vld [vmem:[#allocation5 + $0x14] ss:$24 sps:$4 sm:$0xff]  }
 0x11e   : > { %v4407_v30 = vsub.f32 %v4105_v11, %v440_v53  ;;  %v4410_v49 = vsub.f32 %v4108_v16, %v440_v53  ;;  %v354_v20 = vpop.xlane.xlu0 %353  ;;  %v606_v3 = vadd.f32 %v532_v62, %v531_v61  ;;  %v5184_v53 = vld [vmem:[#allocation11_spill] sm:$0xff]  ;;  %1975 = vmatprep.subr.bf16.mxu0 %v3420_v33 }
 0x11f   : > { %5179 = vst [vmem:[#allocation29_spill] sm:$0xff] %v4401_v52  ;;  %5180 = vst [vmem:[#allocation30_spill] sm:$0xff] %v4404_v47  ;;  %v425_v44 = vmul.f32 0.00390625, %v354_v20  ;;  %649 = vadd.xlane.f32.xlu1 %v648_v58  ;;  %604 = vadd.xlane.f32.xlu0 %v603_v55  ;;  %v357_v50 = vpop.xlane.xlu1 %356  ;;  %v561_v7 = vmul.f32 %v4401_v52, %v4401_v52  ;;  %v562_v39 = vmul.f32 %v4404_v47, %v4404_v47  ;;  %v5188_v20 = vld [vmem:[#allocation13_spill] sm:$0xff] }
 0x120   : > { %5181 = vst [vmem:[#allocation31_spill] sm:$0xff] %v4407_v30  ;;  %5182 = vst [vmem:[#allocation32_spill] sm:$0xff] %v4410_v49  ;;  %v426_v59 = vmul.f32 0.00390625, %v357_v50  ;;  %v563_v11 = vmul.f32 %v4407_v30, %v4407_v30  ;;  %v564_v16 = vmul.f32 %v4410_v49, %v4410_v49 }
 0x121   : > { %v4421_v58 = vsub.f32 %v4113_v22, %v425_v44  ;;  %v4424_v61 = vsub.f32 %v5184_v53, %v425_v44  ;;  %v651_v62 = vadd.f32 %v562_v39, %v561_v7  ;;  %v3423_v53 = vld [vmem:[#allocation5 + $0xc] ss:$24 sps:$4 sm:$0xff]  }
 0x122   : > { %v4427_v55 = vsub.f32 %v5186_v26, %v426_v59  ;;  %v4430_v50 = vsub.f32 %v5188_v20, %v426_v59  ;;  %v402_v30 = vpop.xlane.xlu0 %401  ;;  %v654_v49 = vadd.f32 %v564_v16, %v563_v11  ;;  %1782 = vmatprep.subr.bf16.mxu1 %v3423_v53 }
 0x123   : > { %5183 = vst [vmem:[#allocation33_spill] sm:$0xff] %v4421_v58  ;;  %5185 = vst [vmem:[#allocation11_spill] sm:$0xff] %v4424_v61  ;;  %v441_v52 = vmul.f32 0.00390625, %v402_v30  ;;  %607 = vadd.xlane.f32.xlu1 %v606_v3  ;;  %652 = vadd.xlane.f32.xlu0 %v651_v62  ;;  %v405_v56 = vpop.xlane.xlu1 %404  ;;  %v533_v22 = vmul.f32 %v4421_v58, %v4421_v58  ;;  %v534_v44 = vmul.f32 %v4424_v61, %v4424_v61  ;;  %v5191_v3 = vld [vmem:[#allocation14_spill] sm:$0xff]  ;;  %v5194_v62 = vld [vmem:[#allocation15_spill] sm:$0xff] }
 0x124   : > { %5187 = vst [vmem:[#allocation12_spill] sm:$0xff] %v4427_v55  ;;  %5189 = vst [vmem:[#allocation13_spill] sm:$0xff] %v4430_v50  ;;  %v442_v7 = vmul.f32 0.00390625, %v405_v56  ;;  %v535_v39 = vmul.f32 %v4427_v55, %v4427_v55  ;;  %v536_v59 = vmul.f32 %v4430_v50, %v4430_v50 }
 0x125   : > { %v4441_v30 = vsub.f32 %v4129_v42, %v441_v52  ;;  %v4444_v33 = vsub.f32 %v5191_v3, %v441_v52  ;;  %v609_v11 = vadd.f32 %v534_v44, %v533_v22 }
 0x126   : > { %v4447_v16 = vsub.f32 %v4137_v51, %v442_v7  ;;  %v4450_v26 = vsub.f32 %v5194_v62, %v442_v7  ;;  %v360_v20 = vpop.xlane.xlu0 %359  ;;  %v612_v58 = vadd.f32 %v536_v59, %v535_v39  ;;  %v5199_v59 = vld [vmem:[#allocation17_spill] sm:$0xff] }
 0x127   : > { %5190 = vst [vmem:[#allocation34_spill] sm:$0xff] %v4441_v30  ;;  %5192 = vst [vmem:[#allocation14_spill] sm:$0xff] %v4444_v33  ;;  %v427_v56 = vmul.f32 0.00390625, %v360_v20  ;;  %655 = vadd.xlane.f32.xlu1 %v654_v49  ;;  %610 = vadd.xlane.f32.xlu0 %v609_v11  ;;  %v363_v55 = vpop.xlane.xlu1 %362  ;;  %v565_v42 = vmul.f32 %v4441_v30, %v4441_v30  ;;  %v566_v52 = vmul.f32 %v4444_v33, %v4444_v33  ;;  %v5197_v49 = vld [vmem:[#allocation16_spill] sm:$0xff]  ;;  %v5201_v11 = vld [vmem:[#allocation18_spill] sm:$0xff] }
 0x128   : > { %5193 = vst [vmem:[#allocation35_spill] sm:$0xff] %v4447_v16  ;;  %5195 = vst [vmem:[#allocation15_spill] sm:$0xff] %v4450_v26  ;;  %v428_v22 = vmul.f32 0.00390625, %v363_v55  ;;  %v567_v51 = vmul.f32 %v4447_v16, %v4447_v16  ;;  %v568_v44 = vmul.f32 %v4450_v26, %v4450_v26 }
 0x129   : > { %v4461_v7 = vsub.f32 %v4145_v60, %v427_v56  ;;  %v4464_v53 = vsub.f32 %v5197_v49, %v427_v56  ;;  %v657_v39 = vadd.f32 %v566_v52, %v565_v42 }
 0x12a   : > { %v4467_v3 = vsub.f32 %v5199_v59, %v428_v22  ;;  %v4470_v62 = vsub.f32 %v5201_v11, %v428_v22  ;;  %v408_v55 = vpop.xlane.xlu0 %407  ;;  %v660_v30 = vadd.f32 %v568_v44, %v567_v51  ;;  %v5203_v22 = vld [vmem:[#allocation19_spill] sm:$0xff]  ;;  %v5207_v44 = vld [vmem:[#allocation21_spill] sm:$0xff] }
 0x12b   : > { %5196 = vst [vmem:[#allocation36_spill] sm:$0xff] %v4461_v7  ;;  %5198 = vst [vmem:[#allocation16_spill] sm:$0xff] %v4464_v53  ;;  %v443_v20 = vmul.f32 0.00390625, %v408_v55  ;;  %613 = vadd.xlane.f32.xlu1 %v612_v58  ;;  %658 = vadd.xlane.f32.xlu0 %v657_v39  ;;  %v411_v16 = vpop.xlane.xlu1 %410  ;;  %v537_v60 = vmul.f32 %v4461_v7, %v4461_v7  ;;  %v538_v56 = vmul.f32 %v4464_v53, %v4464_v53  ;;  %v5205_v58 = vld [vmem:[#allocation20_spill] sm:$0xff]  ;;  %v5209_v55 = vld [vmem:[#allocation22_spill] sm:$0xff] }
 0x12c   : > { %5200 = vst [vmem:[#allocation17_spill] sm:$0xff] %v4467_v3  ;;  %5202 = vst [vmem:[#allocation18_spill] sm:$0xff] %v4470_v62  ;;  %v444_v49 = vmul.f32 0.00390625, %v411_v16  ;;  %v539_v42 = vmul.f32 %v4467_v3, %v4467_v3  ;;  %v540_v52 = vmul.f32 %v4470_v62, %v4470_v62 }
 0x12d   : > { %v4481_v59 = vsub.f32 %v5203_v22, %v443_v20  ;;  %v4484_v39 = vsub.f32 %v5205_v58, %v443_v20  ;;  %v615_v51 = vadd.f32 %v538_v56, %v537_v60 }
 0x12e   : > { %v4487_v11 = vsub.f32 %v5207_v44, %v444_v49  ;;  %v4490_v7 = vsub.f32 %v5209_v55, %v444_v49  ;;  %v618_v16 = vadd.f32 %v540_v52, %v539_v42  ;;  %v831_v42 = vlaneseq }
 0x12f   : > { %5204 = vst [vmem:[#allocation19_spill] sm:$0xff] %v4481_v59  ;;  %5206 = vst [vmem:[#allocation20_spill] sm:$0xff] %v4484_v39  ;;  %661 = vadd.xlane.f32.xlu1 %v660_v30  ;;  %616 = vadd.xlane.f32.xlu0 %v615_v51  ;;  %v569_v3 = vmul.f32 %v4481_v59, %v4481_v59  ;;  %v570_v22 = vmul.f32 %v4484_v39, %v4484_v39 }
 0x130   : > { %5208 = vst [vmem:[#allocation21_spill] sm:$0xff] %v4487_v11  ;;  %5210 = vst [vmem:[#allocation22_spill] sm:$0xff] %v4490_v7  ;;  %v571_v20 = vmul.f32 %v4487_v11, %v4487_v11  ;;  %v572_v60 = vmul.f32 %v4490_v7, %v4490_v7  ;;  %v832_v39 = vshrl.u32 %v831_v42, 7 }
 0x131   : > { %v663_v56 = vadd.f32 %v570_v22, %v569_v3 }
 0x132   : > { %v666_v49 = vadd.f32 %v572_v60, %v571_v20  ;;  %v837_v22 = vsub.s32 1, %v832_v39  ;;  %v833_v20 = vsub.s32 0, %v832_v39 }
 0x133   : > { %619 = vadd.xlane.f32.xlu1 %v618_v16  ;;  %664 = vadd.xlane.f32.xlu0 %v663_v56 }
 0x137   : > { %667 = vadd.xlane.f32.xlu1 %v666_v49  ;;  %v829_v49 = vld [vmem:[%s5100_s1] sm:$0x3] }
 0x184   : > { %v575_v30 = vpop.xlane.xlu0 %574 }
 0x185   : > { %v669_v58 = vmul.f32 0.00390625, %v575_v30 }
 0x187   : > { %v701_v52 = vadd.f32 1e-05, %v669_v58 }
 0x188   : > { %v578_v51 = vpop.xlane.xlu1 %577  ;;  %v623_v44 = vpop.xlane.xlu0 %622 }
 0x189   : > { %3514 = vrsqrt.f32 %v701_v52  ;;  %v670_v55 = vmul.f32 0.00390625, %v578_v51  ;;  %v685_v59 = vmul.f32 0.00390625, %v623_v44 }
 0x18b   : > { %v702_v62 = vadd.f32 1e-05, %v670_v55  ;;  %v717_v11 = vadd.f32 1e-05, %v685_v59  ;;  %v5211_v55 = vld [vmem:[#allocation24_spill] sm:$0xff] }
 0x18c   : > { %v626_v53 = vpop.xlane.xlu1 %625  ;;  %v581_v26 = vpop.xlane.xlu0 %580 }
 0x18d   : > { %3516 = vrsqrt.f32 %v702_v62  ;;  %v686_v3 = vmul.f32 0.00390625, %v626_v53  ;;  %v671_v16 = vmul.f32 0.00390625, %v581_v26  ;;  %v905_v62 = vld [vmem:[%s5101_s2] sm:$0x3]  ;;  %v4506_v53 = vrot.slane %v829_v49, %v837_v22 }
 0x18e   : > { %3518 = vrsqrt.f32 %v717_v11  ;;  %v4508_v26 = vrot.slane %v829_v49, %v833_v20  ;;  %v4516_v50 = vrot.slane %v905_v62, %v833_v20 }
 0x18f   : > { %v718_v60 = vadd.f32 1e-05, %v686_v3  ;;  %v703_v56 = vadd.f32 1e-05, %v671_v16  ;;  %v4511_v16 = vrot.slane %v905_v62, %v837_v22 }
 0x190   : > { %v584_v30 = vpop.xlane.xlu1 %583  ;;  %v629_v58 = vpop.xlane.xlu0 %628 }
 0x191   : > { %3520 = vrsqrt.f32 %v718_v60  ;;  %v672_v42 = vmul.f32 0.00390625, %v584_v30  ;;  %v687_v52 = vmul.f32 0.00390625, %v629_v58  ;;  %v5212_v60 = vld [vmem:[#allocation23_spill] sm:$0xff] }
 0x192   : > { %3522 = vrsqrt.f32 %v703_v56 }
 0x193   : > { %v3515_v59 = vpop.eup %3514  ;;  %v704_v39 = vadd.f32 1e-05, %v672_v42  ;;  %v719_v11 = vadd.f32 1e-05, %v687_v52 }
 0x194   : > { %v632_v51 = vpop.xlane.xlu1 %631  ;;  %v587_v44 = vpop.xlane.xlu0 %586  ;;  %v766_v3 = vmul.f32 %v3515_v59, %v5211_v55  ;;  %v765_v30 = vmul.f32 %v3515_v59, %v5212_v60 }
 0x195   : > { %3524 = vrsqrt.f32 %v704_v39  ;;  %v688_v58 = vmul.f32 0.00390625, %v632_v51  ;;  %v673_v7 = vmul.f32 0.00390625, %v587_v44 }
 0x196   : > { %v842_v33 = vmul.f32 %v4506_v53, %v766_v3  ;;  %v841_v49 = vmul.f32 %v4508_v26, %v765_v30  ;;  %3526 = vrsqrt.f32 %v719_v11  ;;  %v5213_v3 = vld [vmem:[#allocation26_spill] sm:$0xff] }
 0x197   : > { %v3517_v56 = vpop.eup %3516  ;;  %v720_v42 = vadd.f32 1e-05, %v688_v58  ;;  %v705_v52 = vadd.f32 1e-05, %v673_v7 }
 0x198   : > { %v3519_v61 = vpop.eup %3518  ;;  %v590_v47 = vpop.xlane.xlu1 %589  ;;  %v768_v22 = vmul.f32 %v3517_v56, %v4204_v4  ;;  %v918_v59 = vadd.f32 %v4511_v16, %v842_v33  ;;  %v767_v39 = vmul.f32 %v3517_v56, %v4201_v35  ;;  %v917_v7 = vadd.f32 %v4516_v50, %v841_v49  ;;  %v5214_v33 = vld [vmem:[#allocation25_spill] sm:$0xff] }
 0x199   : > { %v635_v55 = vpop.xlane.xlu0 %634  ;;  %3528 = vrsqrt.f32 %v720_v42  ;;  %v674_v51 = vmul.f32 0.00390625, %v590_v47  ;;  %v798_v60 = vmul.f32 %v3519_v61, %v5213_v3  ;;  %v797_v15 = vmul.f32 %v3519_v61, %v5214_v33  ;;  %v3418_v3 = vld [vmem:[#allocation5 + $0x10] ss:$24 sps:$4 sm:$0xff]  }
 0x19a   : > { %v689_v44 = vmul.f32 0.00390625, %v635_v55  ;;  %3530 = vrsqrt.f32 %v705_v52  ;;  %v844_v20 = vmul.f32 %v4506_v53, %v768_v22  ;;  %v843_v62 = vmul.f32 %v4508_v26, %v767_v39 }
 0x19b   : > { %v3521_v11 = vpop.eup %3520  ;;  %v706_v30 = vadd.f32 1e-05, %v674_v51  ;;  %v874_v4 = vmul.f32 %v4506_v53, %v798_v60 }
 0x19c   : > { %v721_v58 = vadd.f32 1e-05, %v689_v44  ;;  %v638_v35 = vpop.xlane.xlu1 %637  ;;  %v920_v47 = vadd.f32 %v4511_v16, %v844_v20  ;;  %v919_v42 = vadd.f32 %v4516_v50, %v843_v62  ;;  %v800_v52 = vmul.f32 %v3521_v11, %v4210_v28  ;;  %v3523_v22 = vpop.eup %3522 }
 0x19d   : > { %v593_v56 = vpop.xlane.xlu0 %592  ;;  %v799_v55 = vmul.f32 %v3521_v11, %v4207_v57  ;;  %3532 = vrsqrt.f32 %v706_v30  ;;  %v690_v49 = vmul.f32 0.00390625, %v638_v35  ;;  %v950_v51 = vadd.f32 %v4511_v16, %v874_v4  ;;  %v3426_v11 = vld [vmem:[#allocation5 + $0x44] ss:$24 sps:$4 sm:$0xff]  }
 0x19e   : > { %v675_v39 = vmul.f32 0.00390625, %v593_v56  ;;  %3534 = vrsqrt.f32 %v721_v58  ;;  %v4532_v44 = vpack.c.bf16 %v920_v47, %v918_v59  ;;  %v4534_v61 = vpack.c.bf16 %v919_v42, %v917_v7 }
 0x19f   : > { %v876_v60 = vmul.f32 %v4506_v53, %v800_v52  ;;  %v3525_v20 = vpop.eup %3524  ;;  %v722_v62 = vadd.f32 1e-05, %v690_v49  ;;  %v873_v28 = vmul.f32 %v4508_v26, %v797_v15  ;;  %v875_v57 = vmul.f32 %v4508_v26, %v799_v55  ;;  %v3424_v49 = vld [vmem:[#allocation5 + $0x40] ss:$24 sps:$4 sm:$0xff]  }
 0x1a0   : > { %v707_v33 = vadd.f32 1e-05, %v675_v39  ;;  %v596_v30 = vpop.xlane.xlu1 %595  ;;  %1621 = vmatprep.mubr.bf16.mxu0 %v4532_v44  ;;  %v770_v7 = vmul.f32 %v3523_v22, %v4224_v10  ;;  %v772_v58 = vmul.f32 %v3525_v20, %v4230_v1  ;;  %v769_v35 = vmul.f32 %v3523_v22, %v4221_v9  ;;  %v3527_v56 = vpop.eup %3526  ;;  %v3421_v9 = vld [vmem:[#allocation5 + $0x8] ss:$24 sps:$4 sm:$0xff]  }
 0x1a1   : > { %v641_v4 = vpop.xlane.xlu0 %640  ;;  %v952_v59 = vadd.f32 %v4511_v16, %v876_v60  ;;  %3536 = vrsqrt.f32 %v722_v62  ;;  %v676_v47 = vmul.f32 0.00390625, %v596_v30  ;;  %1622 = vmatmul.mubr.bf16.vlgmr.msra.gmra.mrb[0].mxu0 %v4534_v61  ;;  %v949_v52 = vadd.f32 %v4516_v50, %v873_v28  ;;  %v3432_v62 = vld [vmem:[#allocation5 + $0x74] ss:$24 sps:$4 sm:$0xff]  }
 0x1a2   : > { %v691_v42 = vmul.f32 0.00390625, %v641_v4  ;;  %1976 = vmatpush1.bf16.msra.mxu0 %v3418_v3  ;;  %v951_v55 = vadd.f32 %v4516_v50, %v875_v57  ;;  %v846_v10 = vmul.f32 %v4506_v53, %v770_v7  ;;  %3538 = vrsqrt.f32 %v707_v33  ;;  %v3429_v4 = vld [vmem:[#allocation5 + $0x3c] ss:$24 sps:$4 sm:$0xff]  }
 0x1a3   : > { %v4545_v15 = vpack.c.bf16 %v952_v59, %v950_v51  ;;  %v3529_v39 = vpop.eup %3528  ;;  %v708_v1 = vadd.f32 1e-05, %v676_v47  ;;  %1977 = vmatprep.subr.bf16.mxu0 %v3426_v11  ;;  %v848_v22 = vmul.f32 %v4506_v53, %v772_v58  ;;  %v771_v60 = vmul.f32 %v3525_v20, %v4227_v0  ;;  %v3427_v20 = vld [vmem:[#allocation5 + $0x38] ss:$24 sps:$4 sm:$0xff]  }
 0x1a4   : > { %v4552_v3 = vpop.eup %3530  ;;  %v723_v51 = vadd.f32 1e-05, %v691_v42  ;;  %v644_v30 = vpop.xlane.xlu1 %643  ;;  %v4555_v57 = vpack.c.bf16 %v951_v55, %v949_v52  ;;  %v845_v33 = vmul.f32 %v4508_v26, %v769_v35  ;;  %v802_v59 = vmul.f32 %v3527_v56, %v4244_v34  ;;  %v3430_v52 = vld [vmem:[#allocation5 + $0x70] ss:$24 sps:$4 sm:$0xff]  }
 0x1a5   : > { %1701 = vmatprep.mubr.bf16.mxu1 %v4545_v15  ;;  %v599_v28 = vpop.xlane.xlu0 %598  ;;  %v692_v11 = vmul.f32 0.00390625, %v644_v30  ;;  %v922_v58 = vadd.f32 %v4511_v16, %v846_v10  ;;  %v924_v0 = vadd.f32 %v4511_v16, %v848_v22  ;;  %3540 = vrsqrt.f32 %v708_v1  ;;  %v3438_v1 = vld [vmem:[#allocation5 + $0xa4] ss:$24 sps:$4 sm:$0xff]  }
 0x1a6   : > { %5215 = vst [vmem:[#allocation24_spill] sm:$0xff] %v4555_v57  ;;  %v677_v7 = vmul.f32 0.00390625, %v599_v28  ;;  %1702 = vmatmul.mubr.bf16.vlgmr.msra.gmra.mrb[0].mxu1 %v4555_v57  ;;  %1978 = vmatpush1.bf16.msra.mxu0 %v3424_v49  ;;  %v847_v47 = vmul.f32 %v4508_v26, %v771_v60  ;;  %v921_v42 = vadd.f32 %v4516_v50, %v845_v33  ;;  %3542 = vrsqrt.f32 %v723_v51  ;;  %v3444_v51 = vld [vmem:[#allocation5 + $0xd4] ss:$24 sps:$4 sm:$0xff]  }
 0x1a7   : > { %v804_v35 = vmul.f32 %v3529_v39, %v4250_v54  ;;  %v3533_v55 = vpop.eup %3532  ;;  %v724_v34 = vadd.f32 1e-05, %v692_v11  ;;  %1783 = vmatpush1.bf16.msra.mxu1 %v3421_v9  ;;  %v4565_v28 = vpack.c.bf16 %v924_v0, %v922_v58  ;;  %1979 = vmatprep.subr.bf16.mxu0 %v3432_v62  ;;  %v878_v10 = vmul.f32 %v4506_v53, %v802_v59  ;;  %v3435_v54 = vld [vmem:[#allocation5 + $0x6c] ss:$24 sps:$4 sm:$0xff]  }
 0x1a8   : > { %v709_v30 = vadd.f32 1e-05, %v677_v7  ;;  %v4568_v22 = vpop.eup %3534  ;;  %v602_v49 = vpop.xlane.xlu1 %601  ;;  %1784 = vmatprep.subr.bf16.mxu1 %v3429_v4  ;;  %v923_v33 = vadd.f32 %v4516_v50, %v847_v47  ;;  %v801_v11 = vmul.f32 %v3527_v56, %v4241_v29  ;;  %v803_v9 = vmul.f32 %v3529_v39, %v4247_v6  ;;  %v3436_v47 = vld [vmem:[#allocation5 + $0xa0] ss:$24 sps:$4 sm:$0xff]  }
 0x1a9   : > { %v647_v60 = vpop.xlane.xlu0 %646  ;;  %v880_v57 = vmul.f32 %v4506_v53, %v804_v35  ;;  %v678_v7 = vmul.f32 0.00390625, %v602_v49  ;;  %1631 = vmatprep.mubr.bf16.mxu0 %v4565_v28  ;;  %v954_v4 = vadd.f32 %v4511_v16, %v878_v10  ;;  %3544 = vrsqrt.f32 %v724_v34  ;;  %v3433_v6 = vld [vmem:[#allocation5 + $0x68] ss:$24 sps:$4 sm:$0xff]  }
 0x1aa   : > { %v693_v62 = vmul.f32 0.00390625, %v647_v60  ;;  %v4575_v59 = vpack.c.bf16 %v923_v33, %v921_v42  ;;  %1980 = vmatpush1.bf16.msra.mxu0 %v3430_v52  ;;  %v877_v0 = vmul.f32 %v4508_v26, %v801_v11  ;;  %v879_v56 = vmul.f32 %v4508_v26, %v803_v9  ;;  %v3439_v11 = vld [vmem:[#allocation5 + $0x98] ss:$24 sps:$4 sm:$0xff]  }
 0x1ab   : > { %v956_v58 = vadd.f32 %v4511_v16, %v880_v57  ;;  %v4580_v35 = vpop.eup %3536  ;;  %v710_v29 = vadd.f32 1e-05, %v678_v7  ;;  %1785 = vmatpush1.bf16.msra.mxu1 %v3427_v20  ;;  %1981 = vmatprep.subr.bf16.mxu0 %v3438_v1  ;;  %v774_v39 = vmul.f32 %v4552_v3, %v4264_v48  ;;  %3546 = vrsqrt.f32 %v709_v30  ;;  %v3441_v20 = vld [vmem:[#allocation5 + $0x9c] ss:$24 sps:$4 sm:$0xff]   ;;  %v3442_v9 = vld [vmem:[#allocation5 + $0xd0] ss:$24 sps:$4 sm:$0xff]  }
 0x1ac   : > { %v725_v42 = vadd.f32 1e-05, %v693_v62  ;;  %1632 = vmatmul.mubr.bf16.gmra.mrb[4].mxu0 %v4575_v59  ;;  %v650_v57 = vpop.xlane.xlu1 %649  ;;  %1786 = vmatprep.subr.bf16.mxu1 %v3435_v54  ;;  %v776_v34 = vmul.f32 %v3533_v55, %v4270_v14  ;;  %v4589_v49 = vpop.eup %3538  ;;  %v953_v33 = vadd.f32 %v4516_v50, %v877_v0  ;;  %v955_v48 = vadd.f32 %v4516_v50, %v879_v56 }
 0x1ad   : > { %v4586_v52 = vpack.c.bf16 %v956_v58, %v954_v4  ;;  %v605_v10 = vpop.xlane.xlu0 %604  ;;  %v694_v60 = vmul.f32 0.00390625, %v650_v57  ;;  %3548 = vrsqrt.f32 %v710_v29  ;;  %v850_v30 = vmul.f32 %v4506_v53, %v774_v39  ;;  %v5216_v58 = vld [vmem:[#allocation27_spill] sm:$0xff] }
 0x1ae   : > { %v679_v1 = vmul.f32 0.00390625, %v605_v10  ;;  %1982 = vmatpush1.bf16.msra.mxu0 %v3436_v47  ;;  %v852_v54 = vmul.f32 %v4506_v53, %v776_v34  ;;  %v773_v14 = vmul.f32 %v4552_v3, %v4261_v12  ;;  %v4598_v4 = vpack.c.bf16 %v955_v48, %v953_v33  ;;  %v3450_v29 = vld [vmem:[#allocation5 + $0x104] ss:$24 sps:$4 sm:$0xff]   ;;  %v3448_v33 = vld [vmem:[#allocation5 + $0x100] ss:$24 sps:$4 sm:$0xff]  }
 0x1af   : > { %1711 = vmatprep.mubr.bf16.mxu1 %v4586_v52  ;;  %v726_v7 = vadd.f32 1e-05, %v694_v60  ;;  %1787 = vmatpush1.bf16.msra.mxu1 %v3433_v6  ;;  %v775_v0 = vmul.f32 %v3533_v55, %v5216_v58  ;;  %v4601_v56 = vpop.eup %3540  ;;  %v926_v39 = vadd.f32 %v4511_v16, %v850_v30  ;;  %v806_v3 = vmul.f32 %v4568_v22, %v4284_v2  ;;  %v3447_v34 = vld [vmem:[#allocation5 + $0xcc] ss:$24 sps:$4 sm:$0xff]  }
 0x1b0   : > { %v711_v62 = vadd.f32 1e-05, %v679_v1  ;;  %1983 = vmatprep.subr.bf16.mxu0 %v3444_v51  ;;  %v608_v47 = vpop.xlane.xlu1 %607  ;;  %v928_v57 = vadd.f32 %v4511_v16, %v852_v54  ;;  %1788 = vmatprep.subr.bf16.mxu1 %v3441_v20  ;;  %v849_v12 = vmul.f32 %v4508_v26, %v773_v14  ;;  %3550 = vrsqrt.f32 %v725_v42  ;;  %v4615_v48 = vpop.eup %3542  ;;  %v3445_v14 = vld [vmem:[#allocation5 + $0xc8] ss:$24 sps:$4 sm:$0xff]  }
 0x1b1   : > { %v653_v10 = vpop.xlane.xlu0 %652  ;;  %1712 = vmatmul.mubr.bf16.gmra.mrb[4].mxu1 %v4598_v4  ;;  %v680_v55 = vmul.f32 0.00390625, %v608_v47  ;;  %v851_v51 = vmul.f32 %v4508_v26, %v775_v0  ;;  %3552 = vrsqrt.f32 %v726_v7  ;;  %v808_v20 = vmul.f32 %v4580_v35, %v4290_v13  ;;  %v3453_v47 = vld [vmem:[#allocation5 + $0xfc] ss:$24 sps:$4 sm:$0xff]  }
 0x1b2   : > { %v695_v6 = vmul.f32 0.00390625, %v653_v10  ;;  %v4610_v60 = vpack.c.bf16 %v928_v57, %v926_v39  ;;  %v925_v1 = vadd.f32 %v4516_v50, %v849_v12  ;;  %1984 = vmatpush1.bf16.msra.mxu0 %v3442_v9  ;;  %v882_v54 = vmul.f32 %v4506_v53, %v806_v3 }
 0x1b3   : > { %v712_v2 = vadd.f32 1e-05, %v680_v55  ;;  %v927_v30 = vadd.f32 %v4516_v50, %v851_v51  ;;  %1789 = vmatpush1.bf16.msra.mxu1 %v3439_v11  ;;  %1985 = vmatprep.subr.bf16.mxu0 %v3450_v29  ;;  %3554 = vrsqrt.f32 %v711_v62  ;;  %v884_v9 = vmul.f32 %v4506_v53, %v808_v20  ;;  %v3456_v11 = vld [vmem:[#allocation5 + $0x134] ss:$24 sps:$4 sm:$0xff]   ;;  %v4625_v39 = vpop.eup %3544  ;;  %v3462_v51 = vld [vmem:[#allocation5 + $0x164] ss:$24 sps:$4 sm:$0xff]  }
 0x1b4   : > { %v727_v42 = vadd.f32 1e-05, %v695_v6  ;;  %1641 = vmatprep.mubr.bf16.mxu0 %v4610_v60  ;;  %v656_v7 = vpop.xlane.xlu1 %655  ;;  %1790 = vmatprep.subr.bf16.mxu1 %v3447_v34  ;;  %v805_v58 = vmul.f32 %v4568_v22, %v4281_v45  ;;  %v807_v0 = vmul.f32 %v4580_v35, %v4287_v21  ;;  %v958_v57 = vadd.f32 %v4511_v16, %v882_v54  ;;  %v3454_v21 = vld [vmem:[#allocation5 + $0x130] ss:$24 sps:$4 sm:$0xff]  }
 0x1b5   : > { %v611_v13 = vpop.xlane.xlu0 %610  ;;  %3556 = vrsqrt.f32 %v712_v2  ;;  %v4627_v29 = vpack.c.bf16 %v927_v30, %v925_v1  ;;  %v696_v62 = vmul.f32 0.00390625, %v656_v7  ;;  %v4630_v10 = vpop.eup %3546  ;;  %v960_v12 = vadd.f32 %v4511_v16, %v884_v9  ;;  %v3451_v6 = vld [vmem:[#allocation5 + $0xf8] ss:$24 sps:$4 sm:$0xff]  }
 0x1b6   : > { %3558 = vrsqrt.f32 %v727_v42  ;;  %v681_v3 = vmul.f32 0.00390625, %v611_v13  ;;  %v881_v45 = vmul.f32 %v4508_v26, %v805_v58  ;;  %1986 = vmatpush1.bf16.msra.mxu0 %v3448_v33  ;;  %v883_v35 = vmul.f32 %v4508_v26, %v807_v0  ;;  %v3460_v0 = vld [vmem:[#allocation5 + $0x160] ss:$24 sps:$4 sm:$0xff]  }
 0x1b7   : > { %1642 = vmatmul.mubr.bf16.gmra.mrb[8].mxu0 %v4627_v29  ;;  %v728_v22 = vadd.f32 1e-05, %v696_v62  ;;  %1791 = vmatpush1.bf16.msra.mxu1 %v3445_v14  ;;  %v778_v34 = vmul.f32 %v4589_v49, %v4304_v23  ;;  %v780_v55 = vmul.f32 %v4601_v56, %v4310_v19  ;;  %v4640_v1 = vpop.eup %3548  ;;  %v4642_v20 = vpack.c.bf16 %v960_v12, %v958_v57  ;;  %v3459_v23 = vld [vmem:[#allocation5 + $0x12c] ss:$24 sps:$4 sm:$0xff]   ;;  %v3457_v57 = vld [vmem:[#allocation5 + $0x128] ss:$24 sps:$4 sm:$0xff]  }
 0x1b8   : > { %v713_v33 = vadd.f32 1e-05, %v681_v3  ;;  %v957_v2 = vadd.f32 %v4516_v50, %v881_v45  ;;  %v614_v42 = vpop.xlane.xlu1 %613  ;;  %1792 = vmatprep.subr.bf16.mxu1 %v3453_v47  ;;  %v777_v54 = vmul.f32 %v4589_v49, %v4301_v17  ;;  %1987 = vmatprep.subr.bf16.mxu0 %v3456_v11  ;;  %v959_v19 = vadd.f32 %v4516_v50, %v883_v35  ;;  %v3468_v12 = vld [vmem:[#allocation5 + $0x194] ss:$24 sps:$4 sm:$0xff]  }
 0x1b9   : > { %v659_v30 = vpop.xlane.xlu0 %658  ;;  %3560 = vrsqrt.f32 %v728_v22  ;;  %v682_v14 = vmul.f32 0.00390625, %v614_v42  ;;  %v854_v7 = vmul.f32 %v4506_v53, %v778_v34  ;;  %1721 = vmatprep.mubr.bf16.mxu1 %v4642_v20  ;;  %v856_v9 = vmul.f32 %v4506_v53, %v780_v55 }
 0x1ba   : > { %3562 = vrsqrt.f32 %v713_v33  ;;  %v697_v13 = vmul.f32 0.00390625, %v659_v30  ;;  %v779_v58 = vmul.f32 %v4601_v56, %v4307_v27  ;;  %1988 = vmatpush1.bf16.msra.mxu0 %v3454_v21  ;;  %v4653_v17 = vpop.eup %3550  ;;  %v4655_v49 = vpack.c.bf16 %v959_v19, %v957_v2  ;;  %v3463_v30 = vld [vmem:[#allocation5 + $0x158] ss:$24 sps:$4 sm:$0xff]  }
 0x1bb   : > { %v714_v47 = vadd.f32 1e-05, %v682_v14  ;;  %v930_v11 = vadd.f32 %v4511_v16, %v854_v7  ;;  %v853_v62 = vmul.f32 %v4508_v26, %v777_v54  ;;  %1793 = vmatpush1.bf16.msra.mxu1 %v3451_v6  ;;  %1989 = vmatprep.subr.bf16.mxu0 %v3462_v51  ;;  %v4659_v3 = vpop.eup %3552  ;;  %v932_v45 = vadd.f32 %v4511_v16, %v856_v9  ;;  %v3465_v51 = vld [vmem:[#allocation5 + $0x15c] ss:$24 sps:$4 sm:$0xff]   ;;  %v3466_v7 = vld [vmem:[#allocation5 + $0x190] ss:$24 sps:$4 sm:$0xff]  }
 0x1bc   : > { %v729_v27 = vadd.f32 1e-05, %v697_v13  ;;  %v855_v56 = vmul.f32 %v4508_v26, %v779_v58  ;;  %v662_v21 = vpop.xlane.xlu1 %661  ;;  %v810_v22 = vmul.f32 %v4615_v48, %v4324_v24  ;;  %1794 = vmatprep.subr.bf16.mxu1 %v3459_v23  ;;  %1722 = vmatmul.mubr.bf16.gmra.mrb[8].mxu1 %v4655_v49  ;;  %v812_v6 = vmul.f32 %v4625_v39, %v4330_v18 }
 0x1bd   : > { %v617_v35 = vpop.xlane.xlu0 %616  ;;  %3564 = vrsqrt.f32 %v714_v47  ;;  %v929_v34 = vadd.f32 %v4516_v50, %v853_v62  ;;  %v698_v55 = vmul.f32 0.00390625, %v662_v21  ;;  %v4669_v33 = vpop.eup %3554  ;;  %v4671_v2 = vpack.c.bf16 %v932_v45, %v930_v11 }
 0x1be   : > { %3566 = vrsqrt.f32 %v729_v27  ;;  %v931_v42 = vadd.f32 %v4516_v50, %v855_v56  ;;  %v886_v24 = vmul.f32 %v4506_v53, %v810_v22  ;;  %1990 = vmatpush1.bf16.msra.mxu0 %v3460_v0  ;;  %v888_v19 = vmul.f32 %v4506_v53, %v812_v6 }
 0x1bf   : > { %v4675_v54 = vpop.eup %3556  ;;  %v730_v23 = vadd.f32 1e-05, %v698_v55  ;;  %v683_v14 = vmul.f32 0.00390625, %v617_v35  ;;  %v809_v18 = vmul.f32 %v4615_v48, %v4321_v63  ;;  %1795 = vmatpush1.bf16.msra.mxu1 %v3457_v57  ;;  %1991 = vmatprep.subr.bf16.mxu0 %v3468_v12  ;;  %v811_v0 = vmul.f32 %v4625_v39, %v4327_v25  ;;  %v3471_v63 = vld [vmem:[#allocation5 + $0x18c] ss:$24 sps:$4 sm:$0xff]  }
 0x1c0   : > { %v4680_v9 = vpop.eup %3558  ;;  %1651 = vmatprep.mubr.bf16.mxu0 %v4671_v2  ;;  %v4683_v13 = vpack.c.bf16 %v931_v42, %v929_v34  ;;  %v962_v58 = vadd.f32 %v4511_v16, %v886_v24  ;;  %v620_v47 = vpop.xlane.xlu1 %619  ;;  %v782_v11 = vmul.f32 %v4630_v10, %v4344_v31  ;;  %v3474_v48 = vld [vmem:[#allocation5 + $0x1c4] ss:$24 sps:$4 sm:$0xff]   ;;  %v964_v57 = vadd.f32 %v4511_v16, %v888_v19  ;;  %v3469_v34 = vld [vmem:[#allocation5 + $0x188] ss:$24 sps:$4 sm:$0xff]  }
 0x1c1   : > { %v665_v62 = vpop.xlane.xlu0 %664  ;;  %3568 = vrsqrt.f32 %v730_v23  ;;  %v715_v12 = vadd.f32 1e-05, %v683_v14  ;;  %v885_v45 = vmul.f32 %v4508_v26, %v809_v18  ;;  %1796 = vmatprep.subr.bf16.mxu1 %v3465_v51  ;;  %v887_v27 = vmul.f32 %v4508_v26, %v811_v0  ;;  %v3472_v55 = vld [vmem:[#allocation5 + $0x1c0] ss:$24 sps:$4 sm:$0xff]   ;;  %v3477_v19 = vld [vmem:[#allocation5 + $0x1bc] ss:$24 sps:$4 sm:$0xff]  }
 0x1c2   : > { %1652 = vmatmul.mubr.bf16.gmra.mrb[12].mxu0 %v4683_v13  ;;  %v684_v56 = vmul.f32 0.00390625, %v620_v47  ;;  %v784_v25 = vmul.f32 %v4640_v1, %v4350_v32  ;;  %v858_v31 = vmul.f32 %v4506_v53, %v782_v11  ;;  %v4699_v21 = vpack.c.bf16 %v964_v57, %v962_v58  ;;  %v3480_v58 = vld [vmem:[#allocation5 + $0x1f4] ss:$24 sps:$4 sm:$0xff]  }
 0x1c3   : > { %v4697_v39 = vpop.eup %3560  ;;  %3570 = vrsqrt.f32 %v715_v12  ;;  %v961_v22 = vadd.f32 %v4516_v50, %v885_v45  ;;  %v699_v35 = vmul.f32 0.00390625, %v665_v62  ;;  %1797 = vmatpush1.bf16.msra.mxu1 %v3463_v30  ;;  %1992 = vmatpush1.bf16.msra.mxu0 %v3466_v7  ;;  %v963_v51 = vadd.f32 %v4516_v50, %v887_v27  ;;  %v3478_v12 = vld [vmem:[#allocation5 + $0x1f0] ss:$24 sps:$4 sm:$0xff]  }
 0x1c4   : > { %v4702_v6 = vpop.eup %3562  ;;  %v716_v42 = vadd.f32 1e-05, %v684_v56  ;;  %v860_v32 = vmul.f32 %v4506_v53, %v784_v25  ;;  %v934_v24 = vadd.f32 %v4511_v16, %v858_v31  ;;  %v668_v23 = vpop.xlane.xlu1 %667  ;;  %1798 = vmatprep.subr.bf16.mxu1 %v3471_v63  ;;  %1993 = vmatprep.subr.bf16.mxu0 %v3474_v48  ;;  %v781_v30 = vmul.f32 %v4630_v10, %v4341_v36 }
 0x1c5   : > { %1731 = vmatprep.mubr.bf16.mxu1 %v4699_v21  ;;  %v731_v14 = vadd.f32 1e-05, %v699_v35  ;;  %v783_v18 = vmul.f32 %v4640_v1, %v4347_v5  ;;  %v700_v7 = vmul.f32 0.00390625, %v668_v23  ;;  %v4712_v0 = vpack.c.bf16 %v963_v51, %v961_v22  ;;  %v3475_v5 = vld [vmem:[#allocation5 + $0x1b8] ss:$24 sps:$4 sm:$0xff]  }
 0x1c6   : > { %3572 = vrsqrt.f32 %v716_v42  ;;  %v936_v47 = vadd.f32 %v4511_v16, %v860_v32  ;;  %v814_v11 = vmul.f32 %v4653_v17, %v4364_v37  ;;  %v857_v63 = vmul.f32 %v4508_v26, %v781_v30  ;;  %v3481_v51 = vld [vmem:[#allocation5 + $0x1e8] ss:$24 sps:$4 sm:$0xff]  }
 0x1c7   : > { %v4717_v62 = vpop.eup %3564  ;;  %3574 = vrsqrt.f32 %v731_v14  ;;  %v859_v36 = vmul.f32 %v4508_v26, %v783_v18  ;;  %1799 = vmatpush1.bf16.msra.mxu1 %v3469_v34  ;;  %1994 = vmatpush1.bf16.msra.mxu0 %v3472_v55  ;;  %v816_v48 = vmul.f32 %v4659_v3, %v4370_v38  ;;  %v813_v57 = vmul.f32 %v4653_v17, %v4361_v40  ;;  %v3483_v17 = vld [vmem:[#allocation5 + $0x1ec] ss:$24 sps:$4 sm:$0xff]   ;;  %v5218_v14 = vld [vmem:[#allocation30_spill] sm:$0xff] }
 0x1c8   : > { %v4721_v10 = vpop.eup %3566  ;;  %1732 = vmatmul.mubr.bf16.gmra.mrb[12].mxu1 %v4712_v0  ;;  %v4724_v1 = vpack.c.bf16 %v936_v47, %v934_v24  ;;  %v890_v37 = vmul.f32 %v4506_v53, %v814_v11  ;;  %v933_v45 = vadd.f32 %v4516_v50, %v857_v63  ;;  %v732_v56 = vadd.f32 1e-05, %v700_v7  ;;  %1800 = vmatprep.subr.bf16.mxu1 %v3477_v19  ;;  %v5217_v24 = vld [vmem:[#allocation28_spill] sm:$0xff]  ;;  %v3486_v18 = vld [vmem:[#allocation5 + $0x224] ss:$24 sps:$4 sm:$0xff]  }
 0x1c9   : > { %v935_v27 = vadd.f32 %v4516_v50, %v859_v36  ;;  %v815_v25 = vmul.f32 %v4659_v3, %v4367_v8  ;;  %1995 = vmatprep.subr.bf16.mxu0 %v3480_v58  ;;  %v892_v38 = vmul.f32 %v4506_v53, %v816_v48  ;;  %v889_v22 = vmul.f32 %v4508_v26, %v813_v57  ;;  %v5219_v47 = vld [vmem:[#allocation32_spill] sm:$0xff]  ;;  %v3484_v63 = vld [vmem:[#allocation5 + $0x220] ss:$24 sps:$4 sm:$0xff]   ;;  %v3489_v57 = vld [vmem:[#allocation5 + $0x21c] ss:$24 sps:$4 sm:$0xff]  }
 0x1ca   : > { %1661 = vmatprep.mubr.bf16.mxu0 %v4724_v1  ;;  %v966_v31 = vadd.f32 %v4511_v16, %v890_v37  ;;  %v786_v40 = vmul.f32 %v4669_v33, %v4384_v41  ;;  %v788_v3 = vmul.f32 %v4675_v54, %v4390_v43  ;;  %v785_v55 = vmul.f32 %v4669_v33, %v4381_v46 }
 0x1cb   : > { %v4741_v35 = vpop.eup %3568  ;;  %v4743_v34 = vpack.c.bf16 %v935_v27, %v933_v45  ;;  %v891_v8 = vmul.f32 %v4508_v26, %v815_v25  ;;  %1801 = vmatpush1.bf16.msra.mxu1 %v3475_v5  ;;  %v968_v42 = vadd.f32 %v4511_v16, %v892_v38  ;;  %v965_v32 = vadd.f32 %v4516_v50, %v889_v22  ;;  %v5220_v25 = vld [vmem:[#allocation29_spill] sm:$0xff] }
 0x1cc   : > { %v862_v41 = vmul.f32 %v4506_v53, %v786_v40  ;;  %v787_v23 = vmul.f32 %v4675_v54, %v5217_v24  ;;  %1996 = vmatpush1.bf16.msra.mxu0 %v3478_v12  ;;  %v864_v46 = vmul.f32 %v4506_v53, %v788_v3  ;;  %v861_v33 = vmul.f32 %v4508_v26, %v785_v55  ;;  %v3487_v40 = vld [vmem:[#allocation5 + $0x218] ss:$24 sps:$4 sm:$0xff]   ;;  %v5222_v55 = vld [vmem:[#allocation11_spill] sm:$0xff] }
 0x1cd   : > { %v4755_v19 = vpop.eup %3570  ;;  %1662 = vmatmul.mubr.bf16.gmra.mrb[16].mxu0 %v4743_v34  ;;  %v967_v43 = vadd.f32 %v4516_v50, %v891_v8  ;;  %v818_v30 = vmul.f32 %v4680_v9, %v5218_v14  ;;  %v4763_v7 = vpack.c.bf16 %v968_v42, %v966_v31  ;;  %v820_v11 = vmul.f32 %v4697_v39, %v5219_v47  ;;  %v5221_v31 = vld [vmem:[#allocation31_spill] sm:$0xff]  ;;  %v3492_v42 = vld [vmem:[#allocation5 + $0x254] ss:$24 sps:$4 sm:$0xff]  }
 0x1ce   : > { %v938_v58 = vadd.f32 %v4511_v16, %v862_v41  ;;  %v863_v54 = vmul.f32 %v4508_v26, %v787_v23  ;;  %1802 = vmatprep.subr.bf16.mxu1 %v3483_v17  ;;  %v940_v5 = vadd.f32 %v4511_v16, %v864_v46  ;;  %v937_v48 = vadd.f32 %v4516_v50, %v861_v33  ;;  %v5223_v24 = vld [vmem:[#allocation13_spill] sm:$0xff]  ;;  %v3495_v14 = vld [vmem:[#allocation5 + $0x24c] ss:$24 sps:$4 sm:$0xff]  }
 0x1cf   : > { %v4769_v36 = vpack.c.bf16 %v967_v43, %v965_v32  ;;  %v894_v37 = vmul.f32 %v4506_v53, %v818_v30  ;;  %1803 = vmatpush1.bf16.msra.mxu1 %v3481_v51  ;;  %1741 = vmatprep.mubr.bf16.mxu1 %v4763_v7  ;;  %v896_v27 = vmul.f32 %v4506_v53, %v820_v11  ;;  %3576 = vrsqrt.f32 %v732_v56  ;;  %v3490_v56 = vld [vmem:[#allocation5 + $0x250] ss:$24 sps:$4 sm:$0xff]  }
 0x1d0   : > { %v4774_v12 = vpop.eup %3572  ;;  %v939_v45 = vadd.f32 %v4516_v50, %v863_v54  ;;  %v817_v38 = vmul.f32 %v4680_v9, %v5220_v25  ;;  %v819_v22 = vmul.f32 %v4697_v39, %v5221_v31  ;;  %v4786_v8 = vpack.c.bf16 %v940_v5, %v938_v58  ;;  %1997 = vmatprep.subr.bf16.mxu0 %v3486_v18  ;;  %v5224_v46 = vld [vmem:[#allocation33_spill] sm:$0xff]  ;;  %v5225_v54 = vld [vmem:[#allocation12_spill] sm:$0xff]  ;;  %v5227_v31 = vld [vmem:[#allocation15_spill] sm:$0xff] }
 0x1d1   : > { %v4783_v17 = vpop.eup %3574  ;;  %1742 = vmatmul.mubr.bf16.gmra.mrb[16].mxu1 %v4769_v36  ;;  %v970_v3 = vadd.f32 %v4511_v16, %v894_v37  ;;  %v790_v51 = vmul.f32 %v4702_v6, %v5222_v55  ;;  %v972_v9 = vadd.f32 %v4511_v16, %v896_v27  ;;  %1998 = vmatpush1.bf16.msra.mxu0 %v3484_v63  ;;  %v3493_v11 = vld [vmem:[#allocation5 + $0x248] ss:$24 sps:$4 sm:$0xff]   ;;  %v3498_v63 = vld [vmem:[#allocation5 + $0x284] ss:$24 sps:$4 sm:$0xff]  }
 0x1d2   : > { %v4791_v32 = vpack.c.bf16 %v939_v45, %v937_v48  ;;  %v893_v39 = vmul.f32 %v4508_v26, %v817_v38  ;;  %v895_v41 = vmul.f32 %v4508_v26, %v819_v22  ;;  %1671 = vmatprep.mubr.bf16.mxu0 %v4786_v8  ;;  %v792_v23 = vmul.f32 %v4717_v62, %v5223_v24  ;;  %v3496_v27 = vld [vmem:[#allocation5 + $0x280] ss:$24 sps:$4 sm:$0xff]   ;;  %v3501_v55 = vld [vmem:[#allocation5 + $0x27c] ss:$24 sps:$4 sm:$0xff]  }
 0x1d3   : > { %v866_v43 = vmul.f32 %v4506_v53, %v790_v51  ;;  %1804 = vmatprep.subr.bf16.mxu1 %v3489_v57  ;;  %v789_v33 = vmul.f32 %v4702_v6, %v5224_v46  ;;  %v4802_v30 = vpack.c.bf16 %v972_v9, %v970_v3  ;;  %v791_v47 = vmul.f32 %v4717_v62, %v5225_v54  ;;  %v5226_v62 = vld [vmem:[#allocation14_spill] sm:$0xff]  ;;  %v5229_v9 = vld [vmem:[#allocation35_spill] sm:$0xff]  ;;  %v3504_v46 = vld [vmem:[#allocation5 + $0x2b4] ss:$24 sps:$4 sm:$0xff]  }
 0x1d4   : > { %v969_v18 = vadd.f32 %v4516_v50, %v893_v39  ;;  %v971_v58 = vadd.f32 %v4516_v50, %v895_v41  ;;  %1805 = vmatpush1.bf16.msra.mxu1 %v3487_v40  ;;  %v868_v5 = vmul.f32 %v4506_v53, %v792_v23  ;;  %1999 = vmatprep.subr.bf16.mxu0 %v3492_v42  ;;  %v5228_v40 = vld [vmem:[#allocation34_spill] sm:$0xff]  ;;  %v3502_v54 = vld [vmem:[#allocation5 + $0x2b0] ss:$24 sps:$4 sm:$0xff]  }
 0x1d5   : > { %1672 = vmatmul.mubr.bf16.gmra.mrb[20].mxu0 %v4791_v32  ;;  %v942_v48 = vadd.f32 %v4511_v16, %v866_v43  ;;  %v865_v6 = vmul.f32 %v4508_v26, %v789_v33  ;;  %1751 = vmatprep.mubr.bf16.mxu1 %v4802_v30  ;;  %v867_v57 = vmul.f32 %v4508_v26, %v791_v47  ;;  %v3499_v41 = vld [vmem:[#allocation5 + $0x278] ss:$24 sps:$4 sm:$0xff]  }
 0x1d6   : > { %v4813_v37 = vpack.c.bf16 %v971_v58, %v969_v18  ;;  %2000 = vmatpush1.bf16.msra.mxu0 %v3490_v56  ;;  %v822_v45 = vmul.f32 %v4721_v10, %v5226_v62  ;;  %v944_v25 = vadd.f32 %v4511_v16, %v868_v5  ;;  %v824_v22 = vmul.f32 %v4741_v35, %v5227_v31  ;;  %v5231_v18 = vld [vmem:[#allocation18_spill] sm:$0xff]  ;;  %v5232_v62 = vld [vmem:[#allocation36_spill] sm:$0xff] }
 0x1d7   : > { %v941_v38 = vadd.f32 %v4516_v50, %v865_v6  ;;  %1806 = vmatprep.subr.bf16.mxu1 %v3495_v14  ;;  %v821_v3 = vmul.f32 %v4721_v10, %v5228_v40  ;;  %v943_v51 = vadd.f32 %v4516_v50, %v867_v57  ;;  %v823_v39 = vmul.f32 %v4741_v35, %v5229_v9  ;;  %v5230_v10 = vld [vmem:[#allocation16_spill] sm:$0xff]  ;;  %v3508_v9 = vld [vmem:[#allocation5 + $0x2e0] ss:$24 sps:$4 sm:$0xff]  }
 0x1d8   : > { %v898_v42 = vmul.f32 %v4506_v53, %v822_v45  ;;  %1807 = vmatpush1.bf16.msra.mxu1 %v3493_v11  ;;  %2001 = vmatprep.subr.bf16.mxu0 %v3498_v63  ;;  %v4829_v56 = vpack.c.bf16 %v944_v25, %v942_v48  ;;  %v900_v24 = vmul.f32 %v4506_v53, %v824_v22  ;;  %v3507_v48 = vld [vmem:[#allocation5 + $0x2ac] ss:$24 sps:$4 sm:$0xff]  }
 0x1d9   : > { %1752 = vmatmul.mubr.bf16.gmra.mrb[20].mxu1 %v4813_v37  ;;  %v897_v23 = vmul.f32 %v4508_v26, %v821_v3  ;;  %v794_v43 = vmul.f32 %v4755_v19, %v5230_v10  ;;  %v4835_v33 = vpack.c.bf16 %v943_v51, %v941_v38  ;;  %v899_v35 = vmul.f32 %v4508_v26, %v823_v39  ;;  %v3577_v47 = vpop.eup %3576  ;;  %v3505_v38 = vld [vmem:[#allocation5 + $0x2a8] ss:$24 sps:$4 sm:$0xff]   ;;  %v5235_v39 = vld [vmem:[#allocation22_spill] sm:$0xff] }
 0x1da   : > { %v974_v14 = vadd.f32 %v4511_v16, %v898_v42  ;;  %2002 = vmatpush1.bf16.msra.mxu0 %v3496_v27  ;;  %v796_v58 = vmul.f32 %v4774_v12, %v5231_v18  ;;  %1681 = vmatprep.mubr.bf16.mxu0 %v4829_v56  ;;  %v976_v11 = vadd.f32 %v4511_v16, %v900_v24  ;;  %v5233_v27 = vld [vmem:[#allocation17_spill] sm:$0xff]  ;;  %v5234_v40 = vld [vmem:[#allocation20_spill] sm:$0xff] }
 0x1db   : > { %v973_v63 = vadd.f32 %v4516_v50, %v897_v23  ;;  %v870_v5 = vmul.f32 %v4506_v53, %v794_v43  ;;  %1808 = vmatprep.subr.bf16.mxu1 %v3501_v55  ;;  %v975_v6 = vadd.f32 %v4516_v50, %v899_v35  ;;  %v793_v45 = vmul.f32 %v4755_v19, %v5232_v62  ;;  %v3510_v55 = vld [vmem:[#allocation5 + $0x2e4] ss:$24 sps:$4 sm:$0xff]   ;;  %v5237_v18 = vld [vmem:[#allocation21_spill] sm:$0xff] }
 0x1dc   : > { %v872_v57 = vmul.f32 %v4506_v53, %v796_v58  ;;  %v795_v25 = vmul.f32 %v4774_v12, %v5233_v27  ;;  %1809 = vmatpush1.bf16.msra.mxu1 %v3499_v41  ;;  %v4852_v31 = vpack.c.bf16 %v976_v11, %v974_v14  ;;  %2003 = vmatprep.subr.bf16.mxu0 %v3504_v46  ;;  %v5236_v23 = vld [vmem:[#allocation19_spill] sm:$0xff]  ;;  %v3513_v43 = vld [vmem:[#allocation5 + $0x2dc] ss:$24 sps:$4 sm:$0xff]  }
 0x1dd   : > { %1682 = vmatmul.mubr.bf16.gmra.mrb[24].mxu0 %v4835_v33  ;;  %v946_v22 = vadd.f32 %v4511_v16, %v870_v5  ;;  %v826_v3 = vmul.f32 %v4783_v17, %v5234_v40  ;;  %v4857_v51 = vpack.c.bf16 %v975_v6, %v973_v63  ;;  %v869_v42 = vmul.f32 %v4508_v26, %v793_v45 }
 0x1de   : > { %v948_v19 = vadd.f32 %v4511_v16, %v872_v57  ;;  %v871_v12 = vmul.f32 %v4508_v26, %v795_v25  ;;  %2004 = vmatpush1.bf16.msra.mxu0 %v3502_v54  ;;  %1761 = vmatprep.mubr.bf16.mxu1 %v4852_v31  ;;  %v828_v41 = vmul.f32 %v3577_v47, %v5235_v39  ;;  %v3511_v54 = vld [vmem:[#allocation5 + $0x2d8] ss:$24 sps:$4 sm:$0xff]  }
 0x1df   : > { %v902_v24 = vmul.f32 %v4506_v53, %v826_v3  ;;  %1810 = vmatprep.subr.bf16.mxu1 %v3507_v48  ;;  %v825_v10 = vmul.f32 %v4783_v17, %v5236_v23  ;;  %v945_v14 = vadd.f32 %v4516_v50, %v869_v42  ;;  %v827_v58 = vmul.f32 %v3577_v47, %v5237_v18 }
 0x1e0   : > { %v996_v46 = vpack.c.bf16 %v948_v19, %v946_v22  ;;  %v947_v35 = vadd.f32 %v4516_v50, %v871_v12  ;;  %1811 = vmatpush1.bf16.msra.mxu1 %v3505_v38  ;;  %v904_v11 = vmul.f32 %v4506_v53, %v828_v41  ;;  %2005 = vmatprep.subr.bf16.mxu0 %v3510_v55 }
 0x1e1   : > { %1762 = vmatmul.mubr.bf16.gmra.mrb[24].mxu1 %v4857_v51  ;;  %v901_v63 = vmul.f32 %v4508_v26, %v825_v10  ;;  %v903_v17 = vmul.f32 %v4508_v26, %v827_v58  ;;  %v978_v48 = vadd.f32 %v4511_v16, %v902_v24  ;;  %1812 = vmatprep.subr.bf16.mxu1 %v3513_v43 }
 0x1e2   : > { %1691 = vmatprep.mubr.bf16.mxu0 %v996_v46  ;;  %v995_v5 = vpack.c.bf16 %v947_v35, %v945_v14  ;;  %2006 = vmatpush1.bf16.msra.mxu0 %v3508_v9  ;;  %v980_v6 = vadd.f32 %v4511_v16, %v904_v11 }
 0x1e3   : > { %v977_v47 = vadd.f32 %v4516_v50, %v901_v63  ;;  %v979_v57 = vadd.f32 %v4516_v50, %v903_v17  ;;  %v5238_v50 = vld [vmem:[#allocation24_spill] sm:$0xff] }
 0x1e4   : > { %1813 = vmatpush1.bf16.msra.mxu1 %v3511_v54  ;;  %v4878_v53 = vpack.c.bf16 %v980_v6, %v978_v48 }
 0x1e5   : > { %1692 = vmatmul.mubr.bf16.gmra.mrb[28].mxu0 %v995_v5  ;;  %v4881_v62 = vpack.c.bf16 %v979_v57, %v977_v47 }
 0x1e6   : > { %2007 = vmatprep.mubr.bf16.mxu0 %v4532_v44  ;;  %1771 = vmatprep.mubr.bf16.mxu1 %v4878_v53 }
 0x1e9   : > { %1772 = vmatmul.mubr.bf16.gmra.mrb[28].mxu1 %v4881_v62 }
 0x1ea   : > { %1814 = vmatprep.mubr.bf16.mxu1 %v4532_v44 }
 0x1ed   : > { %2008 = vmatmul.mubr.bf16.vlgmr.msra.gmra.mrb[32].mxu0 %v4534_v61 }
 0x1ee   : > { %2017 = vmatprep.mubr.bf16.mxu0 %v4565_v28 }
 0x1f1   : > { %1815 = vmatmul.mubr.bf16.vlgmr.msra.gmra.mrb[32].mxu1 %v4534_v61 }
 0x1f2   : > { %1824 = vmatprep.mubr.bf16.mxu1 %v4565_v28 }
 0x1f5   : > { %2018 = vmatmul.mubr.bf16.gmra.mrb[36].mxu0 %v4575_v59 }
 0x1f6   : > { %2027 = vmatprep.mubr.bf16.mxu0 %v4610_v60 }
 0x1f9   : > { %1825 = vmatmul.mubr.bf16.gmra.mrb[36].mxu1 %v4575_v59 }
 0x1fa   : > { %1834 = vmatprep.mubr.bf16.mxu1 %v4610_v60 }
 0x1fd   : > { %2028 = vmatmul.mubr.bf16.gmra.mrb[40].mxu0 %v4627_v29 }
 0x1fe   : > { %2037 = vmatprep.mubr.bf16.mxu0 %v4671_v2 }
 0x201   : > { %1835 = vmatmul.mubr.bf16.gmra.mrb[40].mxu1 %v4627_v29 }
 0x202   : > { %1844 = vmatprep.mubr.bf16.mxu1 %v4671_v2 }
 0x205   : > { %2038 = vmatmul.mubr.bf16.gmra.mrb[44].mxu0 %v4683_v13 }
 0x206   : > { %2047 = vmatprep.mubr.bf16.mxu0 %v4724_v1 }
 0x209   : > { %1845 = vmatmul.mubr.bf16.gmra.mrb[44].mxu1 %v4683_v13 }
 0x20a   : > { %1854 = vmatprep.mubr.bf16.mxu1 %v4724_v1 }
 0x20d   : > { %2048 = vmatmul.mubr.bf16.gmra.mrb[48].mxu0 %v4743_v34 }
 0x20e   : > { %2057 = vmatprep.mubr.bf16.mxu0 %v4786_v8 }
 0x211   : > { %1855 = vmatmul.mubr.bf16.gmra.mrb[48].mxu1 %v4743_v34 }
 0x212   : > { %1864 = vmatprep.mubr.bf16.mxu1 %v4786_v8 }
 0x215   : > { %2058 = vmatmul.mubr.bf16.gmra.mrb[52].mxu0 %v4791_v32 }
 0x216   : > { %2067 = vmatprep.mubr.bf16.mxu0 %v4829_v56 }
 0x219   : > { %1865 = vmatmul.mubr.bf16.gmra.mrb[52].mxu1 %v4791_v32 }
 0x21a   : > { %1874 = vmatprep.mubr.bf16.mxu1 %v4829_v56 }
 0x21d   : > { %2068 = vmatmul.mubr.bf16.gmra.mrb[56].mxu0 %v4835_v33 }
 0x21e   : > { %2077 = vmatprep.mubr.bf16.mxu0 %v996_v46 }
 0x221   : > { %1875 = vmatmul.mubr.bf16.gmra.mrb[56].mxu1 %v4835_v33 }
 0x222   : > { %1884 = vmatprep.mubr.bf16.mxu1 %v996_v46 }
 0x225   : > { %2078 = vmatmul.mubr.bf16.gmra.mrb[60].mxu0 %v995_v5 }
 0x226   : > { %2087 = vmatprep.mubr.bf16.mxu0 %v4545_v15 }
 0x229   : > { %1885 = vmatmul.mubr.bf16.gmra.mrb[60].mxu1 %v995_v5 }
 0x22a   : > { %1894 = vmatprep.mubr.bf16.mxu1 %v4545_v15 }
 0x22d   : > { %2088 = vmatmul.mubr.bf16.gmra.mrb[64].mxu0 %v5238_v50 }
 0x22e   : > { %2097 = vmatprep.mubr.bf16.mxu0 %v4586_v52 }
 0x231   : > { %1895 = vmatmul.mubr.bf16.gmra.mrb[64].mxu1 %v5238_v50 }
 0x232   : > { %1904 = vmatprep.mubr.bf16.mxu1 %v4586_v52 }
 0x235   : > { %2098 = vmatmul.mubr.bf16.gmra.mrb[68].mxu0 %v4598_v4 }
 0x236   : > { %2107 = vmatprep.mubr.bf16.mxu0 %v4642_v20 }
 0x239   : > { %1905 = vmatmul.mubr.bf16.gmra.mrb[68].mxu1 %v4598_v4 }
 0x23a   : > { %1914 = vmatprep.mubr.bf16.mxu1 %v4642_v20 }
 0x23d   : > { %2108 = vmatmul.mubr.bf16.gmra.mrb[72].mxu0 %v4655_v49 }
 0x23e   : > { %2117 = vmatprep.mubr.bf16.mxu0 %v4699_v21 }
 0x241   : > { %1915 = vmatmul.mubr.bf16.gmra.mrb[72].mxu1 %v4655_v49 }
 0x242   : > { %1924 = vmatprep.mubr.bf16.mxu1 %v4699_v21 }
 0x245   : > { %2118 = vmatmul.mubr.bf16.gmra.mrb[76].mxu0 %v4712_v0 }
 0x246   : > { %2127 = vmatprep.mubr.bf16.mxu0 %v4763_v7 }
 0x249   : > { %1925 = vmatmul.mubr.bf16.gmra.mrb[76].mxu1 %v4712_v0 }
 0x24a   : > { %1934 = vmatprep.mubr.bf16.mxu1 %v4763_v7 }
 0x24d   : > { %2128 = vmatmul.mubr.bf16.gmra.mrb[80].mxu0 %v4769_v36 }
 0x24e   : > { %2137 = vmatprep.mubr.bf16.mxu0 %v4802_v30 }
 0x251   : > { %1935 = vmatmul.mubr.bf16.gmra.mrb[80].mxu1 %v4769_v36 }
 0x252   : > { %1944 = vmatprep.mubr.bf16.mxu1 %v4802_v30 }
 0x255   : > { %2138 = vmatmul.mubr.bf16.gmra.mrb[84].mxu0 %v4813_v37 }
 0x256   : > { %2147 = vmatprep.mubr.bf16.mxu0 %v4852_v31 }
 0x259   : > { %1945 = vmatmul.mubr.bf16.gmra.mrb[84].mxu1 %v4813_v37 }
 0x25a   : > { %1954 = vmatprep.mubr.bf16.mxu1 %v4852_v31 }
 0x25d   : > { %2148 = vmatmul.mubr.bf16.gmra.mrb[88].mxu0 %v4857_v51 }
 0x25e   : > { %2157 = vmatprep.mubr.bf16.mxu0 %v4878_v53 }
 0x261   : > { %1955 = vmatmul.mubr.bf16.gmra.mrb[88].mxu1 %v4857_v51 }
 0x262   : > { %1964 = vmatprep.mubr.bf16.mxu1 %v4878_v53 }
 0x265   : > { %2158 = vmatmul.mubr.bf16.gmra.mrb[92].mxu0 %v4881_v62 }
 0x269   : > { %1965 = vmatmul.mubr.bf16.gmra.mrb[92].mxu1 %v4881_v62 }
 0x274   : > { %v1623_v26 = vpop.f32.mrb[0].mxu0 }
 0x275   : > { %v1625_v16 = vpop.f32.mrb[1].mxu0 }
 0x276   : > { %v3161_v44 = vpack.c.bf16 %v1625_v16, %v1623_v26  ;;  %v1627_v61 = vpop.f32.mrb[2].mxu0 }
 0x277   : > { %v1629_v15 = vpop.f32.mrb[3].mxu0 }
 0x278   : > { %2744 = vst [vmem:[%s4945_s22] sm:$0xff] %v3161_v44  ;;  %v3164_v28 = vpack.c.bf16 %v1629_v15, %v1627_v61 }
 0x279   : > { %v1703_v59 = vpop.f32.mrb[0].mxu1 }
 0x27a   : > { %2747 = vst [vmem:[%s4945_s22 + $0x18] sm:$0xff] %v3164_v28  ;;  %v1705_v52 = vpop.f32.mrb[1].mxu1 }
 0x27b   : > { %v3209_v4 = vpack.c.bf16 %v1705_v52, %v1703_v59  ;;  %v1707_v60 = vpop.f32.mrb[2].mxu1 }
 0x27c   : > { %v1709_v29 = vpop.f32.mrb[3].mxu1 }
 0x27d   : > { %2792 = vst [vmem:[%s4945_s22 + $0x180] sm:$0xff] %v3209_v4  ;;  %v3212_v20 = vpack.c.bf16 %v1709_v29, %v1707_v60 }
 0x27f   : > { %2795 = vst [vmem:[%s4945_s22 + $0x198] sm:$0xff] %v3212_v20  ;;  %v1633_v49 = vpop.f32.mrb[4].mxu0 }
 0x280   : > { %v1635_v2 = vpop.f32.mrb[5].mxu0 }
 0x281   : > { %v3167_v13 = vpack.c.bf16 %v1635_v2, %v1633_v49  ;;  %v1637_v21 = vpop.f32.mrb[6].mxu0 }
 0x282   : > { %v1639_v0 = vpop.f32.mrb[7].mxu0 }
 0x283   : > { %2750 = vst [vmem:[%s4945_s22 + $0x30] sm:$0xff] %v3167_v13  ;;  %v3170_v1 = vpack.c.bf16 %v1639_v0, %v1637_v21 }
 0x284   : > { %v1713_v34 = vpop.f32.mrb[4].mxu1 }
 0x285   : > { %2753 = vst [vmem:[%s4945_s22 + $0x48] sm:$0xff] %v3170_v1  ;;  %v1715_v7 = vpop.f32.mrb[5].mxu1 }
 0x286   : > { %v3215_v36 = vpack.c.bf16 %v1715_v7, %v1713_v34  ;;  %v1717_v8 = vpop.f32.mrb[6].mxu1 }
 0x287   : > { %v1719_v32 = vpop.f32.mrb[7].mxu1 }
 0x288   : > { %2798 = vst [vmem:[%s4945_s22 + $0x1b0] sm:$0xff] %v3215_v36  ;;  %v3218_v30 = vpack.c.bf16 %v1719_v32, %v1717_v8 }
 0x28a   : > { %2801 = vst [vmem:[%s4945_s22 + $0x1c8] sm:$0xff] %v3218_v30  ;;  %v1643_v37 = vpop.f32.mrb[8].mxu0 }
 0x28b   : > { %v1645_v56 = vpop.f32.mrb[9].mxu0 }
 0x28c   : > { %v3173_v33 = vpack.c.bf16 %v1645_v56, %v1643_v37  ;;  %v1647_v45 = vpop.f32.mrb[10].mxu0 }
 0x28d   : > { %v1649_v27 = vpop.f32.mrb[11].mxu0 }
 0x28e   : > { %2756 = vst [vmem:[%s4945_s22 + $0x60] sm:$0xff] %v3173_v33  ;;  %v3176_v25 = vpack.c.bf16 %v1649_v27, %v1647_v45 }
 0x28f   : > { %v1723_v38 = vpop.f32.mrb[8].mxu1 }
 0x290   : > { %2759 = vst [vmem:[%s4945_s22 + $0x78] sm:$0xff] %v3176_v25  ;;  %v1725_v31 = vpop.f32.mrb[9].mxu1 }
 0x291   : > { %v3221_v22 = vpack.c.bf16 %v1725_v31, %v1723_v38  ;;  %v1727_v40 = vpop.f32.mrb[10].mxu1 }
 0x292   : > { %v1729_v3 = vpop.f32.mrb[11].mxu1 }
 0x293   : > { %2804 = vst [vmem:[%s4945_s22 + $0x1e0] sm:$0xff] %v3221_v22  ;;  %v3224_v55 = vpack.c.bf16 %v1729_v3, %v1727_v40 }
 0x295   : > { %v1653_v51 = vpop.f32.mrb[12].mxu0  ;;  %2807 = vst [vmem:[%s4945_s22 + $0x1f8] sm:$0xff] %v3224_v55 }
 0x296   : > { %v1655_v19 = vpop.f32.mrb[13].mxu0 }
 0x297   : > { %v3179_v42 = vpack.c.bf16 %v1655_v19, %v1653_v51  ;;  %v1657_v12 = vpop.f32.mrb[14].mxu0 }
 0x298   : > { %v1659_v9 = vpop.f32.mrb[15].mxu0 }
 0x299   : > { %2762 = vst [vmem:[%s4945_s22 + $0x90] sm:$0xff] %v3179_v42  ;;  %v3182_v39 = vpack.c.bf16 %v1659_v9, %v1657_v12 }
 0x29b   : > { %2765 = vst [vmem:[%s4945_s22 + $0xa8] sm:$0xff] %v3182_v39  ;;  %v1733_v41 = vpop.f32.mrb[12].mxu1 }
 0x29c   : > { %v1735_v24 = vpop.f32.mrb[13].mxu1 }
 0x29d   : > { %v3227_v23 = vpack.c.bf16 %v1735_v24, %v1733_v41  ;;  %v1737_v10 = vpop.f32.mrb[14].mxu1 }
 0x29e   : > { %v1739_v43 = vpop.f32.mrb[15].mxu1 }
 0x29f   : > { %2810 = vst [vmem:[%s4945_s22 + $0x210] sm:$0xff] %v3227_v23  ;;  %v3230_v46 = vpack.c.bf16 %v1739_v43, %v1737_v10 }
 0x2a0   : > { %v1663_v14 = vpop.f32.mrb[16].mxu0 }
 0x2a1   : > { %2813 = vst [vmem:[%s4945_s22 + $0x228] sm:$0xff] %v3230_v46  ;;  %v1665_v35 = vpop.f32.mrb[17].mxu0 }
 0x2a2   : > { %v3185_v18 = vpack.c.bf16 %v1665_v35, %v1663_v14  ;;  %v1667_v58 = vpop.f32.mrb[18].mxu0 }
 0x2a3   : > { %v1669_v54 = vpop.f32.mrb[19].mxu0 }
 0x2a4   : > { %2768 = vst [vmem:[%s4945_s22 + $0xc0] sm:$0xff] %v3185_v18  ;;  %v3188_v11 = vpack.c.bf16 %v1669_v54, %v1667_v58  ;;  %v1743_v63 = vpop.f32.mrb[16].mxu1 }
 0x2a5   : > { %v1745_v5 = vpop.f32.mrb[17].mxu1 }
 0x2a6   : > { %2771 = vst [vmem:[%s4945_s22 + $0xd8] sm:$0xff] %v3188_v11  ;;  %v3233_v17 = vpack.c.bf16 %v1745_v5, %v1743_v63  ;;  %v1747_v48 = vpop.f32.mrb[18].mxu1 }
 0x2a7   : > { %v1749_v6 = vpop.f32.mrb[19].mxu1 }
 0x2a8   : > { %2816 = vst [vmem:[%s4945_s22 + $0x240] sm:$0xff] %v3233_v17  ;;  %v3236_v47 = vpack.c.bf16 %v1749_v6, %v1747_v48  ;;  %v1673_v57 = vpop.f32.mrb[20].mxu0 }
 0x2a9   : > { %v1675_v53 = vpop.f32.mrb[21].mxu0 }
 0x2aa   : > { %2819 = vst [vmem:[%s4945_s22 + $0x258] sm:$0xff] %v3236_v47  ;;  %v3191_v62 = vpack.c.bf16 %v1675_v53, %v1673_v57  ;;  %v1677_v50 = vpop.f32.mrb[22].mxu0 }
 0x2ab   : > { %v1679_v26 = vpop.f32.mrb[23].mxu0 }
 0x2ac   : > { %2774 = vst [vmem:[%s4945_s22 + $0xf0] sm:$0xff] %v3191_v62  ;;  %v3194_v16 = vpack.c.bf16 %v1679_v26, %v1677_v50  ;;  %v1753_v44 = vpop.f32.mrb[20].mxu1 }
 0x2ad   : > { %v1755_v61 = vpop.f32.mrb[21].mxu1 }
 0x2ae   : > { %2777 = vst [vmem:[%s4945_s22 + $0x108] sm:$0xff] %v3194_v16  ;;  %v3239_v15 = vpack.c.bf16 %v1755_v61, %v1753_v44  ;;  %v1757_v28 = vpop.f32.mrb[22].mxu1 }
 0x2af   : > { %v1759_v59 = vpop.f32.mrb[23].mxu1 }
 0x2b0   : > { %2822 = vst [vmem:[%s4945_s22 + $0x270] sm:$0xff] %v3239_v15  ;;  %v3242_v52 = vpack.c.bf16 %v1759_v59, %v1757_v28  ;;  %v1683_v4 = vpop.f32.mrb[24].mxu0 }
 0x2b1   : > { %v1685_v60 = vpop.f32.mrb[25].mxu0 }
 0x2b2   : > { %2825 = vst [vmem:[%s4945_s22 + $0x288] sm:$0xff] %v3242_v52  ;;  %v3197_v29 = vpack.c.bf16 %v1685_v60, %v1683_v4  ;;  %v1687_v20 = vpop.f32.mrb[26].mxu0 }
 0x2b3   : > { %v1689_v49 = vpop.f32.mrb[27].mxu0 }
 0x2b4   : > { %2780 = vst [vmem:[%s4945_s22 + $0x120] sm:$0xff] %v3197_v29  ;;  %v3200_v2 = vpack.c.bf16 %v1689_v49, %v1687_v20  ;;  %v1763_v13 = vpop.f32.mrb[24].mxu1 }
 0x2b5   : > { %v1765_v21 = vpop.f32.mrb[25].mxu1 }
 0x2b6   : > { %2783 = vst [vmem:[%s4945_s22 + $0x138] sm:$0xff] %v3200_v2  ;;  %v3245_v0 = vpack.c.bf16 %v1765_v21, %v1763_v13  ;;  %v1767_v1 = vpop.f32.mrb[26].mxu1 }
 0x2b7   : > { %v1769_v34 = vpop.f32.mrb[27].mxu1 }
 0x2b8   : > { %2828 = vst [vmem:[%s4945_s22 + $0x2a0] sm:$0xff] %v3245_v0  ;;  %v3248_v7 = vpack.c.bf16 %v1769_v34, %v1767_v1  ;;  %v1693_v36 = vpop.f32.mrb[28].mxu0 }
 0x2b9   : > { %v1695_v8 = vpop.f32.mrb[29].mxu0 }
 0x2ba   : > { %2831 = vst [vmem:[%s4945_s22 + $0x2b8] sm:$0xff] %v3248_v7  ;;  %v3203_v32 = vpack.c.bf16 %v1695_v8, %v1693_v36  ;;  %v1697_v30 = vpop.f32.mrb[30].mxu0 }
 0x2bb   : > { %v1699_v37 = vpop.f32.mrb[31].mxu0 }
 0x2bc   : > { %2786 = vst [vmem:[%s4945_s22 + $0x150] sm:$0xff] %v3203_v32  ;;  %v3206_v56 = vpack.c.bf16 %v1699_v37, %v1697_v30  ;;  %v1773_v33 = vpop.f32.mrb[28].mxu1 }
 0x2bd   : > { %v1775_v45 = vpop.f32.mrb[29].mxu1 }
 0x2be   : > { %2789 = vst [vmem:[%s4945_s22 + $0x168] sm:$0xff] %v3206_v56  ;;  %v3251_v27 = vpack.c.bf16 %v1775_v45, %v1773_v33  ;;  %v1777_v25 = vpop.f32.mrb[30].mxu1 }
 0x2bf   : > { %v1779_v38 = vpop.f32.mrb[31].mxu1 }
 0x2c0   : > { %2834 = vst [vmem:[%s4945_s22 + $0x2d0] sm:$0xff] %v3251_v27  ;;  %v3254_v31 = vpack.c.bf16 %v1779_v38, %v1777_v25  ;;  %v2009_v22 = vpop.f32.mrb[32].mxu0 }
 0x2c1   : > { %v2011_v40 = vpop.f32.mrb[33].mxu0 }
 0x2c2   : > { %2837 = vst [vmem:[%s4945_s22 + $0x2e8] sm:$0xff] %v3254_v31  ;;  %v3163_v3 = vpack.c.bf16 %v2011_v40, %v2009_v22  ;;  %v2013_v55 = vpop.f32.mrb[34].mxu0 }
 0x2c3   : > { %v2015_v51 = vpop.f32.mrb[35].mxu0 }
 0x2c4   : > { %2746 = vst [vmem:[%s4945_s22 + $0x10] sm:$0xff] %v3163_v3  ;;  %v3166_v19 = vpack.c.bf16 %v2015_v51, %v2013_v55  ;;  %v1816_v42 = vpop.f32.mrb[32].mxu1 }
 0x2c5   : > { %v1818_v12 = vpop.f32.mrb[33].mxu1 }
 0x2c6   : > { %2749 = vst [vmem:[%s4945_s22 + $0x28] sm:$0xff] %v3166_v19  ;;  %v3162_v9 = vpack.c.bf16 %v1818_v12, %v1816_v42  ;;  %v1820_v39 = vpop.f32.mrb[34].mxu1 }
 0x2c7   : > { %v1822_v41 = vpop.f32.mrb[35].mxu1 }
 0x2c8   : > { %2745 = vst [vmem:[%s4945_s22 + $0x8] sm:$0xff] %v3162_v9  ;;  %v3165_v24 = vpack.c.bf16 %v1822_v41, %v1820_v39  ;;  %v2019_v23 = vpop.f32.mrb[36].mxu0 }
 0x2c9   : > { %v2021_v10 = vpop.f32.mrb[37].mxu0 }
 0x2ca   : > { %2748 = vst [vmem:[%s4945_s22 + $0x20] sm:$0xff] %v3165_v24  ;;  %v3169_v43 = vpack.c.bf16 %v2021_v10, %v2019_v23  ;;  %v2023_v46 = vpop.f32.mrb[38].mxu0 }
 0x2cb   : > { %v2025_v14 = vpop.f32.mrb[39].mxu0 }
 0x2cc   : > { %2752 = vst [vmem:[%s4945_s22 + $0x40] sm:$0xff] %v3169_v43  ;;  %v3172_v35 = vpack.c.bf16 %v2025_v14, %v2023_v46  ;;  %v1826_v18 = vpop.f32.mrb[36].mxu1 }
 0x2cd   : > { %v1828_v58 = vpop.f32.mrb[37].mxu1 }
 0x2ce   : > { %2755 = vst [vmem:[%s4945_s22 + $0x58] sm:$0xff] %v3172_v35  ;;  %v3168_v54 = vpack.c.bf16 %v1828_v58, %v1826_v18  ;;  %v1830_v11 = vpop.f32.mrb[38].mxu1 }
 0x2cf   : > { %v1832_v63 = vpop.f32.mrb[39].mxu1 }
 0x2d0   : > { %2751 = vst [vmem:[%s4945_s22 + $0x38] sm:$0xff] %v3168_v54  ;;  %v3171_v5 = vpack.c.bf16 %v1832_v63, %v1830_v11  ;;  %v2029_v17 = vpop.f32.mrb[40].mxu0 }
 0x2d1   : > { %v2031_v48 = vpop.f32.mrb[41].mxu0 }
 0x2d2   : > { %2754 = vst [vmem:[%s4945_s22 + $0x50] sm:$0xff] %v3171_v5  ;;  %v3175_v6 = vpack.c.bf16 %v2031_v48, %v2029_v17  ;;  %v2033_v47 = vpop.f32.mrb[42].mxu0 }
 0x2d3   : > { %v2035_v57 = vpop.f32.mrb[43].mxu0 }
 0x2d4   : > { %2758 = vst [vmem:[%s4945_s22 + $0x70] sm:$0xff] %v3175_v6  ;;  %v3178_v53 = vpack.c.bf16 %v2035_v57, %v2033_v47  ;;  %v1836_v62 = vpop.f32.mrb[40].mxu1 }
 0x2d5   : > { %v1838_v50 = vpop.f32.mrb[41].mxu1 }
 0x2d6   : > { %2761 = vst [vmem:[%s4945_s22 + $0x88] sm:$0xff] %v3178_v53  ;;  %v3174_v26 = vpack.c.bf16 %v1838_v50, %v1836_v62  ;;  %v1840_v16 = vpop.f32.mrb[42].mxu1 }
 0x2d7   : > { %v1842_v44 = vpop.f32.mrb[43].mxu1 }
 0x2d8   : > { %2757 = vst [vmem:[%s4945_s22 + $0x68] sm:$0xff] %v3174_v26  ;;  %v3177_v61 = vpack.c.bf16 %v1842_v44, %v1840_v16  ;;  %v2039_v15 = vpop.f32.mrb[44].mxu0 }
 0x2d9   : > { %v2041_v28 = vpop.f32.mrb[45].mxu0 }
 0x2da   : > { %2760 = vst [vmem:[%s4945_s22 + $0x80] sm:$0xff] %v3177_v61  ;;  %v3181_v59 = vpack.c.bf16 %v2041_v28, %v2039_v15  ;;  %v2043_v52 = vpop.f32.mrb[46].mxu0 }
 0x2db   : > { %v2045_v4 = vpop.f32.mrb[47].mxu0 }
 0x2dc   : > { %2764 = vst [vmem:[%s4945_s22 + $0xa0] sm:$0xff] %v3181_v59  ;;  %v3184_v60 = vpack.c.bf16 %v2045_v4, %v2043_v52  ;;  %v1846_v29 = vpop.f32.mrb[44].mxu1 }
 0x2dd   : > { %v1848_v20 = vpop.f32.mrb[45].mxu1 }
 0x2de   : > { %2767 = vst [vmem:[%s4945_s22 + $0xb8] sm:$0xff] %v3184_v60  ;;  %v3180_v49 = vpack.c.bf16 %v1848_v20, %v1846_v29  ;;  %v1850_v2 = vpop.f32.mrb[46].mxu1 }
 0x2df   : > { %v1852_v13 = vpop.f32.mrb[47].mxu1 }
 0x2e0   : > { %2763 = vst [vmem:[%s4945_s22 + $0x98] sm:$0xff] %v3180_v49  ;;  %v3183_v21 = vpack.c.bf16 %v1852_v13, %v1850_v2  ;;  %v2049_v0 = vpop.f32.mrb[48].mxu0 }
 0x2e1   : > { %v2051_v1 = vpop.f32.mrb[49].mxu0 }
 0x2e2   : > { %2766 = vst [vmem:[%s4945_s22 + $0xb0] sm:$0xff] %v3183_v21  ;;  %v3187_v34 = vpack.c.bf16 %v2051_v1, %v2049_v0  ;;  %v2053_v7 = vpop.f32.mrb[50].mxu0 }
 0x2e3   : > { %v2055_v36 = vpop.f32.mrb[51].mxu0 }
 0x2e4   : > { %2770 = vst [vmem:[%s4945_s22 + $0xd0] sm:$0xff] %v3187_v34  ;;  %v3190_v8 = vpack.c.bf16 %v2055_v36, %v2053_v7  ;;  %v1856_v32 = vpop.f32.mrb[48].mxu1 }
 0x2e5   : > { %v1858_v30 = vpop.f32.mrb[49].mxu1 }
 0x2e6   : > { %2773 = vst [vmem:[%s4945_s22 + $0xe8] sm:$0xff] %v3190_v8  ;;  %v3186_v37 = vpack.c.bf16 %v1858_v30, %v1856_v32  ;;  %v1860_v56 = vpop.f32.mrb[50].mxu1 }
 0x2e7   : > { %v1862_v33 = vpop.f32.mrb[51].mxu1 }
 0x2e8   : > { %2769 = vst [vmem:[%s4945_s22 + $0xc8] sm:$0xff] %v3186_v37  ;;  %v3189_v45 = vpack.c.bf16 %v1862_v33, %v1860_v56  ;;  %v2059_v27 = vpop.f32.mrb[52].mxu0 }
 0x2e9   : > { %v2061_v25 = vpop.f32.mrb[53].mxu0 }
 0x2ea   : > { %2772 = vst [vmem:[%s4945_s22 + $0xe0] sm:$0xff] %v3189_v45  ;;  %v3193_v38 = vpack.c.bf16 %v2061_v25, %v2059_v27  ;;  %v2063_v31 = vpop.f32.mrb[54].mxu0 }
 0x2eb   : > { %v2065_v22 = vpop.f32.mrb[55].mxu0 }
 0x2ec   : > { %2776 = vst [vmem:[%s4945_s22 + $0x100] sm:$0xff] %v3193_v38  ;;  %v3196_v40 = vpack.c.bf16 %v2065_v22, %v2063_v31  ;;  %v1866_v3 = vpop.f32.mrb[52].mxu1 }
 0x2ed   : > { %v1868_v55 = vpop.f32.mrb[53].mxu1 }
 0x2ee   : > { %2779 = vst [vmem:[%s4945_s22 + $0x118] sm:$0xff] %v3196_v40  ;;  %v3192_v51 = vpack.c.bf16 %v1868_v55, %v1866_v3  ;;  %v1870_v19 = vpop.f32.mrb[54].mxu1 }
 0x2ef   : > { %v1872_v42 = vpop.f32.mrb[55].mxu1 }
 0x2f0   : > { %2775 = vst [vmem:[%s4945_s22 + $0xf8] sm:$0xff] %v3192_v51  ;;  %v3195_v12 = vpack.c.bf16 %v1872_v42, %v1870_v19  ;;  %v2069_v9 = vpop.f32.mrb[56].mxu0 }
 0x2f1   : > { %v2071_v39 = vpop.f32.mrb[57].mxu0 }
 0x2f2   : > { %2778 = vst [vmem:[%s4945_s22 + $0x110] sm:$0xff] %v3195_v12  ;;  %v3199_v41 = vpack.c.bf16 %v2071_v39, %v2069_v9  ;;  %v2073_v24 = vpop.f32.mrb[58].mxu0 }
 0x2f3   : > { %v2075_v23 = vpop.f32.mrb[59].mxu0 }
 0x2f4   : > { %2782 = vst [vmem:[%s4945_s22 + $0x130] sm:$0xff] %v3199_v41  ;;  %v3202_v10 = vpack.c.bf16 %v2075_v23, %v2073_v24  ;;  %v1876_v43 = vpop.f32.mrb[56].mxu1 }
 0x2f5   : > { %v1878_v46 = vpop.f32.mrb[57].mxu1 }
 0x2f6   : > { %2785 = vst [vmem:[%s4945_s22 + $0x148] sm:$0xff] %v3202_v10  ;;  %v3198_v14 = vpack.c.bf16 %v1878_v46, %v1876_v43  ;;  %v1880_v35 = vpop.f32.mrb[58].mxu1 }
 0x2f7   : > { %v1882_v18 = vpop.f32.mrb[59].mxu1 }
 0x2f8   : > { %2781 = vst [vmem:[%s4945_s22 + $0x128] sm:$0xff] %v3198_v14  ;;  %v3201_v58 = vpack.c.bf16 %v1882_v18, %v1880_v35  ;;  %v2079_v54 = vpop.f32.mrb[60].mxu0 }
 0x2f9   : > { %v2081_v11 = vpop.f32.mrb[61].mxu0 }
 0x2fa   : > { %2784 = vst [vmem:[%s4945_s22 + $0x140] sm:$0xff] %v3201_v58  ;;  %v3205_v63 = vpack.c.bf16 %v2081_v11, %v2079_v54  ;;  %v2083_v5 = vpop.f32.mrb[62].mxu0 }
 0x2fb   : > { %v2085_v17 = vpop.f32.mrb[63].mxu0 }
 0x2fc   : > { %2788 = vst [vmem:[%s4945_s22 + $0x160] sm:$0xff] %v3205_v63  ;;  %v3208_v48 = vpack.c.bf16 %v2085_v17, %v2083_v5  ;;  %v1886_v6 = vpop.f32.mrb[60].mxu1 }
 0x2fd   : > { %v1888_v47 = vpop.f32.mrb[61].mxu1 }
 0x2fe   : > { %2791 = vst [vmem:[%s4945_s22 + $0x178] sm:$0xff] %v3208_v48  ;;  %v3204_v57 = vpack.c.bf16 %v1888_v47, %v1886_v6  ;;  %v1890_v53 = vpop.f32.mrb[62].mxu1 }
 0x2ff   : > { %v1892_v62 = vpop.f32.mrb[63].mxu1 }
 0x300   : > { %2787 = vst [vmem:[%s4945_s22 + $0x158] sm:$0xff] %v3204_v57  ;;  %v3207_v50 = vpack.c.bf16 %v1892_v62, %v1890_v53  ;;  %v2089_v26 = vpop.f32.mrb[64].mxu0 }
 0x301   : > { %v2091_v16 = vpop.f32.mrb[65].mxu0 }
 0x302   : > { %2790 = vst [vmem:[%s4945_s22 + $0x170] sm:$0xff] %v3207_v50  ;;  %v3211_v44 = vpack.c.bf16 %v2091_v16, %v2089_v26  ;;  %v2093_v61 = vpop.f32.mrb[66].mxu0 }
 0x303   : > { %v2095_v15 = vpop.f32.mrb[67].mxu0 }
 0x304   : > { %2794 = vst [vmem:[%s4945_s22 + $0x190] sm:$0xff] %v3211_v44  ;;  %v3214_v28 = vpack.c.bf16 %v2095_v15, %v2093_v61  ;;  %v1896_v59 = vpop.f32.mrb[64].mxu1 }
 0x305   : > { %v1898_v52 = vpop.f32.mrb[65].mxu1 }
 0x306   : > { %2797 = vst [vmem:[%s4945_s22 + $0x1a8] sm:$0xff] %v3214_v28  ;;  %v3210_v4 = vpack.c.bf16 %v1898_v52, %v1896_v59  ;;  %v1900_v60 = vpop.f32.mrb[66].mxu1 }
 0x307   : > { %v1902_v29 = vpop.f32.mrb[67].mxu1 }
 0x308   : > { %2793 = vst [vmem:[%s4945_s22 + $0x188] sm:$0xff] %v3210_v4  ;;  %v3213_v20 = vpack.c.bf16 %v1902_v29, %v1900_v60  ;;  %v2099_v49 = vpop.f32.mrb[68].mxu0 }
 0x309   : > { %v2101_v2 = vpop.f32.mrb[69].mxu0 }
 0x30a   : > { %2796 = vst [vmem:[%s4945_s22 + $0x1a0] sm:$0xff] %v3213_v20  ;;  %v3217_v13 = vpack.c.bf16 %v2101_v2, %v2099_v49  ;;  %v2103_v21 = vpop.f32.mrb[70].mxu0 }
 0x30b   : > { %v2105_v0 = vpop.f32.mrb[71].mxu0 }
 0x30c   : > { %2800 = vst [vmem:[%s4945_s22 + $0x1c0] sm:$0xff] %v3217_v13  ;;  %v3220_v1 = vpack.c.bf16 %v2105_v0, %v2103_v21  ;;  %v1906_v34 = vpop.f32.mrb[68].mxu1 }
 0x30d   : > { %v1908_v7 = vpop.f32.mrb[69].mxu1 }
 0x30e   : > { %2803 = vst [vmem:[%s4945_s22 + $0x1d8] sm:$0xff] %v3220_v1  ;;  %v3216_v36 = vpack.c.bf16 %v1908_v7, %v1906_v34  ;;  %v1910_v8 = vpop.f32.mrb[70].mxu1 }
 0x30f   : > { %v1912_v32 = vpop.f32.mrb[71].mxu1 }
 0x310   : > { %2799 = vst [vmem:[%s4945_s22 + $0x1b8] sm:$0xff] %v3216_v36  ;;  %v3219_v30 = vpack.c.bf16 %v1912_v32, %v1910_v8  ;;  %v2109_v37 = vpop.f32.mrb[72].mxu0 }
 0x311   : > { %v2111_v56 = vpop.f32.mrb[73].mxu0 }
 0x312   : > { %2802 = vst [vmem:[%s4945_s22 + $0x1d0] sm:$0xff] %v3219_v30  ;;  %v3223_v33 = vpack.c.bf16 %v2111_v56, %v2109_v37  ;;  %v2113_v45 = vpop.f32.mrb[74].mxu0 }
 0x313   : > { %v2115_v27 = vpop.f32.mrb[75].mxu0 }
 0x314   : > { %2806 = vst [vmem:[%s4945_s22 + $0x1f0] sm:$0xff] %v3223_v33  ;;  %v3226_v25 = vpack.c.bf16 %v2115_v27, %v2113_v45  ;;  %v1916_v38 = vpop.f32.mrb[72].mxu1 }
 0x315   : > { %v1918_v31 = vpop.f32.mrb[73].mxu1 }
 0x316   : > { %2809 = vst [vmem:[%s4945_s22 + $0x208] sm:$0xff] %v3226_v25  ;;  %v3222_v22 = vpack.c.bf16 %v1918_v31, %v1916_v38  ;;  %v1920_v40 = vpop.f32.mrb[74].mxu1 }
 0x317   : > { %v1922_v3 = vpop.f32.mrb[75].mxu1 }
 0x318   : > { %2805 = vst [vmem:[%s4945_s22 + $0x1e8] sm:$0xff] %v3222_v22  ;;  %v3225_v55 = vpack.c.bf16 %v1922_v3, %v1920_v40  ;;  %v2119_v51 = vpop.f32.mrb[76].mxu0 }
 0x319   : > { %v2121_v19 = vpop.f32.mrb[77].mxu0 }
 0x31a   : > { %2808 = vst [vmem:[%s4945_s22 + $0x200] sm:$0xff] %v3225_v55  ;;  %v3229_v42 = vpack.c.bf16 %v2121_v19, %v2119_v51  ;;  %v2123_v12 = vpop.f32.mrb[78].mxu0 }
 0x31b   : > { %v2125_v9 = vpop.f32.mrb[79].mxu0 }
 0x31c   : > { %2812 = vst [vmem:[%s4945_s22 + $0x220] sm:$0xff] %v3229_v42  ;;  %v3232_v39 = vpack.c.bf16 %v2125_v9, %v2123_v12  ;;  %v1926_v41 = vpop.f32.mrb[76].mxu1 }
 0x31d   : > { %v1928_v24 = vpop.f32.mrb[77].mxu1 }
 0x31e   : > { %2815 = vst [vmem:[%s4945_s22 + $0x238] sm:$0xff] %v3232_v39  ;;  %v3228_v23 = vpack.c.bf16 %v1928_v24, %v1926_v41  ;;  %v1930_v10 = vpop.f32.mrb[78].mxu1 }
 0x31f   : > { %v1932_v43 = vpop.f32.mrb[79].mxu1 }
 0x320   : > { %2811 = vst [vmem:[%s4945_s22 + $0x218] sm:$0xff] %v3228_v23  ;;  %v3231_v46 = vpack.c.bf16 %v1932_v43, %v1930_v10  ;;  %v2129_v14 = vpop.f32.mrb[80].mxu0 }
 0x321   : > { %v2131_v35 = vpop.f32.mrb[81].mxu0 }
 0x322   : > { %2814 = vst [vmem:[%s4945_s22 + $0x230] sm:$0xff] %v3231_v46  ;;  %v3235_v18 = vpack.c.bf16 %v2131_v35, %v2129_v14  ;;  %v2133_v58 = vpop.f32.mrb[82].mxu0 }
 0x323   : > { %v2135_v54 = vpop.f32.mrb[83].mxu0 }
 0x324   : > { %2818 = vst [vmem:[%s4945_s22 + $0x250] sm:$0xff] %v3235_v18  ;;  %v3238_v11 = vpack.c.bf16 %v2135_v54, %v2133_v58  ;;  %v1936_v63 = vpop.f32.mrb[80].mxu1 }
 0x325   : > { %v1938_v5 = vpop.f32.mrb[81].mxu1 }
 0x326   : > { %2821 = vst [vmem:[%s4945_s22 + $0x268] sm:$0xff] %v3238_v11  ;;  %v3234_v17 = vpack.c.bf16 %v1938_v5, %v1936_v63  ;;  %v1940_v48 = vpop.f32.mrb[82].mxu1 }
 0x327   : > { %v1942_v6 = vpop.f32.mrb[83].mxu1 }
 0x328   : > { %2817 = vst [vmem:[%s4945_s22 + $0x248] sm:$0xff] %v3234_v17  ;;  %v3237_v47 = vpack.c.bf16 %v1942_v6, %v1940_v48  ;;  %v2139_v57 = vpop.f32.mrb[84].mxu0 }
 0x329   : > { %v2141_v53 = vpop.f32.mrb[85].mxu0 }
 0x32a   : > { %2820 = vst [vmem:[%s4945_s22 + $0x260] sm:$0xff] %v3237_v47  ;;  %v3241_v62 = vpack.c.bf16 %v2141_v53, %v2139_v57  ;;  %v2143_v50 = vpop.f32.mrb[86].mxu0 }
 0x32b   : > { %v2145_v26 = vpop.f32.mrb[87].mxu0 }
 0x32c   : > { %2824 = vst [vmem:[%s4945_s22 + $0x280] sm:$0xff] %v3241_v62  ;;  %v3244_v16 = vpack.c.bf16 %v2145_v26, %v2143_v50  ;;  %v1946_v44 = vpop.f32.mrb[84].mxu1 }
 0x32d   : > { %v1948_v61 = vpop.f32.mrb[85].mxu1 }
 0x32e   : > { %2827 = vst [vmem:[%s4945_s22 + $0x298] sm:$0xff] %v3244_v16  ;;  %v3240_v15 = vpack.c.bf16 %v1948_v61, %v1946_v44  ;;  %v1950_v28 = vpop.f32.mrb[86].mxu1 }
 0x32f   : > { %v1952_v59 = vpop.f32.mrb[87].mxu1 }
 0x330   : > { %2823 = vst [vmem:[%s4945_s22 + $0x278] sm:$0xff] %v3240_v15  ;;  %v3243_v52 = vpack.c.bf16 %v1952_v59, %v1950_v28  ;;  %v2149_v4 = vpop.f32.mrb[88].mxu0 }
 0x331   : > { %v2151_v60 = vpop.f32.mrb[89].mxu0 }
 0x332   : > { %2826 = vst [vmem:[%s4945_s22 + $0x290] sm:$0xff] %v3243_v52  ;;  %v3247_v29 = vpack.c.bf16 %v2151_v60, %v2149_v4  ;;  %v2153_v20 = vpop.f32.mrb[90].mxu0 }
 0x333   : > { %v2155_v49 = vpop.f32.mrb[91].mxu0 }
 0x334   : > { %2830 = vst [vmem:[%s4945_s22 + $0x2b0] sm:$0xff] %v3247_v29  ;;  %v3250_v2 = vpack.c.bf16 %v2155_v49, %v2153_v20  ;;  %v1956_v13 = vpop.f32.mrb[88].mxu1 }
 0x335   : > { %v1958_v21 = vpop.f32.mrb[89].mxu1 }
 0x336   : > { %2833 = vst [vmem:[%s4945_s22 + $0x2c8] sm:$0xff] %v3250_v2  ;;  %v3246_v0 = vpack.c.bf16 %v1958_v21, %v1956_v13  ;;  %v1960_v1 = vpop.f32.mrb[90].mxu1 }
 0x337   : > { %v1962_v34 = vpop.f32.mrb[91].mxu1 }
 0x338   : > { %2829 = vst [vmem:[%s4945_s22 + $0x2a8] sm:$0xff] %v3246_v0  ;;  %v3249_v7 = vpack.c.bf16 %v1962_v34, %v1960_v1  ;;  %v2159_v36 = vpop.f32.mrb[92].mxu0 }
 0x339   : > { %v2161_v8 = vpop.f32.mrb[93].mxu0 }
 0x33a   : > { %2832 = vst [vmem:[%s4945_s22 + $0x2c0] sm:$0xff] %v3249_v7  ;;  %v3253_v32 = vpack.c.bf16 %v2161_v8, %v2159_v36  ;;  %v2163_v30 = vpop.f32.mrb[94].mxu0 }
 0x33b   : > { %v2165_v37 = vpop.f32.mrb[95].mxu0 }
 0x33c   : > { %2836 = vst [vmem:[%s4945_s22 + $0x2e0] sm:$0xff] %v3253_v32  ;;  %v3256_v56 = vpack.c.bf16 %v2165_v37, %v2163_v30  ;;  %v1966_v33 = vpop.f32.mrb[92].mxu1 }
 0x33d   : > { %v1968_v45 = vpop.f32.mrb[93].mxu1 }
 0x33e   : > { %2839 = vst [vmem:[%s4945_s22 + $0x2f8] sm:$0xff] %v3256_v56  ;;  %v3252_v27 = vpack.c.bf16 %v1968_v45, %v1966_v33  ;;  %v1970_v25 = vpop.f32.mrb[94].mxu1 }
 0x33f   : > { %v1972_v38 = vpop.f32.mrb[95].mxu1 }
 0x340   : > { %2835 = vst [vmem:[%s4945_s22 + $0x2d8] sm:$0xff] %v3252_v27  ;;  %v3255_v31 = vpack.c.bf16 %v1972_v38, %v1970_v25 }
 0x342   : > { %2838 = vst [vmem:[%s4945_s22 + $0x2f0] sm:$0xff] %v3255_v31 }
 0x343   : > { %3649 = shalt.err (!%p3646_p5)
}
 0x344   : > { %s3650_s23 = scalar_lea.hbm %s5046_s6, 12288  ;;  %s3654_s14 = scalar_lea.hbm %s5103_s4, 24576 }
 0x345   : > { %p3651_p9 = scmp.ne.s32.totalorder %s5046_s6, %s3650_s23  ;;  %p3655_p3 = scmp.lt.u32.totalorder %s5046_s6, %s5103_s4 }
 0x346   : > { %p3656_p7 = scmp.lt.u32.totalorder %s3654_s14, %s3650_s23  ;;  %p3658_p4 = scmp.lt.u32.totalorder %s3650_s23, %s5046_s6 }
 0x347   : > { %p3652_p1 = pnand %p3651_p9, %p3854_p10 }
 0x348   : > { %p3657_p13 = por %p3656_p7, %p3655_p3 }
 0x349   : > { %p3653_p2 = pneg %p3652_p1 }
 0x34a   : > { %p3659_p6 = por %p3658_p4, %p3657_p13 }
 0x34c   : > { %p3660_p8 = pnand %p3659_p6, %p3653_p2 }
 0x34e   : > { %3663 = shalt.err (!%p3660_p8)
}
 0x34f   : > { %s3731_s28 = smov 384   ;;  %s3732_s24 = smov 24  }
 0x350   : > { %3297 = dma.vmem_to_hbm [thread:$0]  (%p3854_p10), %s5049_s13, 12288, %s5046_s6, %s2841_s18, %s3731_s28, %s3731_s28, %s3732_s24  }
 0x351 PF: > { %s2872_s30 = sand.u32 1, %s3702_s15   ;;  %p5239_p12 = scmp.ne.s32.totalorder %s5151_s26, 0 }
 0x352   : > { %p5240_p11 = scmp.ge.s32.totalorder %s3722_s20, 2  ;;  %s2873_s9 = scalar_lea.sflag [#allocation4], %s2872_s30 }
 0x354   : > { %p3308_p0 = pnand %p5240_p11, %p5239_p12 }
 0x356   : > { %3697 = dma.done.wait (!%p3308_p0), %s2873_s9, 12288  }
 0x357   : > { %3699 = vsyncadd (!%p3308_p0), %s2873_s9, 4294955008  ;;  %s21_s20 = sadd.s32 1, %s3722_s20   ;;  %s5241_s15 = smov %s3706_s16 }
 0x358   : > { %p18_p5 = scmp.ge.s32.totalorder %s21_s20, 4   ;;  %s5242_s16 = smov %s3710_s17 }
 0x359   : > { %s5243_s17 = smov %s3863_s10  ;;  %s5244_s18 = smov %s3718_s19 }
 0x35a   : > { %s5245_s19 = smov %s5247_s5  ;;  %20 = sbr.rel (!%p18_p5) target bundleno = 7 (0x7), region = 85 }
 0x361   :  { %2878 = vsyncpa [#allocation3], 1 }
 0x362   :  { %2880 = vsyncpa [#allocation3 + $0x1], 1 }
 0x363   :  { %2881 = vsyncpa [#allocation6], 1 }
 0x364   :  { %2882 = vsyncpa [#allocation4], 1 }
 0x365   :  { %2884 = vsyncpa [#allocation4 + $0x1], 1 }

</bundles_post_ra>
